<compile_context>
chip_gen: v5e
topology: v5e:2x2
jax: 0.10.0
libtpu: 0.0.40
codegen_flags: <defaults>
</compile_context>

<pallas_src>
import jax
import jax.numpy as jnp
from jax.experimental import pallas as pl
from jax.experimental.pallas import tpu as pltpu

# bf16 weights for the HBM-bandwidth-bound FC (accumulation stays f32).
FC_WEIGHT_DTYPE = jnp.bfloat16

_FC_TILE_N = 1024     # FC output-tile width: lane-dense, 2 MiB bf16 weight tiles, 2 grid steps.
_DECONV_TILE_N = 512  # lane tile for the deconv matmuls (N = B*Hout*Wout).


# ----------------------------------------------------------------------------
# Pallas kernels
# ----------------------------------------------------------------------------
def fc_kernel(x_ref, w_ref, b_ref, o_ref):
    """One output tile of y = x @ W + b.

    x_ref: (B, K) f32   resident across the grid (constant index_map)
    w_ref: (K, TN) bf16 streamed weight tile, double-buffered by Pallas
    b_ref: (1, TN) f32
    o_ref: (B, TN) f32
    """
    x = x_ref[...].astype(w_ref.dtype)
    acc = jnp.dot(x, w_ref[...], preferred_element_type=jnp.float32)
    o_ref[...] = acc + b_ref[...]


def deconv_relu_kernel(w_ref, p_ref, b_ref, o_ref):
    """o = relu(W @ P + b) in transposed, lane-dense (Cout, N) layout."""
    acc = jnp.dot(w_ref[...], p_ref[...], preferred_element_type=jnp.float32)
    o_ref[...] = jnp.maximum(acc + b_ref[...], 0.0)


def deconv_sigmoid_kernel(w_ref, p_ref, b_ref, o_ref):
    """o = sigmoid(W @ P + b) in transposed, lane-dense (Cout, N) layout."""
    acc = jnp.dot(w_ref[...], p_ref[...], preferred_element_type=jnp.float32)
    y = acc + b_ref[...]
    # EUP reciprocal instead of a VPU divide sequence (perf review).
    o_ref[...] = pl.reciprocal(1.0 + jnp.exp(-y), approx=True)


# ----------------------------------------------------------------------------
# pallas_call wrappers
# ----------------------------------------------------------------------------
def fc_call(x, w, b, tile_n=_FC_TILE_N):
    bsz, k = x.shape
    n = w.shape[1]
    assert n % tile_n == 0
    cost = pl.CostEstimate(
        flops=2 * bsz * k * n,
        transcendentals=0,
        bytes_accessed=w.size * w.dtype.itemsize + 4 * (x.size + n + bsz * n),
    )
    return pl.pallas_call(
        fc_kernel,
        out_shape=jax.ShapeDtypeStruct((bsz, n), jnp.float32),
        grid_spec=pltpu.PrefetchScalarGridSpec(
            num_scalar_prefetch=0,
            grid=(n // tile_n,),
            in_specs=[
                pl.BlockSpec((bsz, k), lambda j: (0, 0)),      # activations: resident
                pl.BlockSpec((k, tile_n), lambda j: (0, j)),   # weight: streamed tiles
                pl.BlockSpec((1, tile_n), lambda j: (0, j)),   # bias tile
            ],
            out_specs=pl.BlockSpec((bsz, tile_n), lambda j: (0, j)),
        ),
        compiler_params=pltpu.CompilerParams(
            dimension_semantics=("parallel",),  # independent output tiles (megacore-splittable)
        ),
        cost_estimate=cost,
    )(x, w, b)


def deconv_call(w, p, b, kernel, tile_n=_DECONV_TILE_N):
    """o(Cout, N) = act(W(Cout, K) @ P(K, N) + b), tiled over lane-dense N."""
    cout, kdim = w.shape
    n = p.shape[1]
    tile_n = min(tile_n, n)
    assert n % tile_n == 0
    return pl.pallas_call(
        kernel,
        out_shape=jax.ShapeDtypeStruct((cout, n), jnp.float32),
        grid_spec=pltpu.PrefetchScalarGridSpec(
            num_scalar_prefetch=0,
            grid=(n // tile_n,),
            in_specs=[
                pl.BlockSpec((cout, kdim), lambda j: (0, 0)),    # tiny weight: resident
                pl.BlockSpec((kdim, tile_n), lambda j: (0, j)),  # patch matrix: streamed
                pl.BlockSpec((cout, 1), lambda j: (0, 0)),       # bias: resident
            ],
            out_specs=pl.BlockSpec((cout, tile_n), lambda j: (0, j)),
        ),
        compiler_params=pltpu.CompilerParams(
            dimension_semantics=("parallel",),
        ),
    )(w, p, b)


# ----------------------------------------------------------------------------
# Glue: ConvTranspose2d(k=3, s=2, p=1, output_padding=1) lowering to a matmul.
# Works in the channel-major (C, B, H, W) layout so no transposes are needed
# between the two deconvs (perf review).  XLA fuses the pad/slice/stack/reshape.
# ----------------------------------------------------------------------------
def deconv_patches_cbhw(x_cbhw):
    """x: (C, B, H, W) -> patches (C*9, B*2H*2W); rows ordered (ci, kh, kw), columns
    ordered (b, oh, ow).  Uses dilate(stride 2) + pad(1 lead, 2 trail) + 3x3 valid
    conv equivalence of the transposed conv."""
    c, bsz, h, w = x_cbhw.shape
    ho, wo = 2 * h, 2 * w
    zero = jnp.array(0.0, dtype=x_cbhw.dtype)
    xp = jax.lax.pad(x_cbhw, zero,
                     ((0, 0, 0), (0, 0, 0), (1, 2, 1), (1, 2, 1)))  # (C,B,2H+2,2W+2)
    slices = [xp[:, :, ki:ki + ho, kj:kj + wo]
              for ki in range(3) for kj in range(3)]                 # each (C,B,ho,wo)
    pat = jnp.stack(slices, axis=1)                                  # (C,9,B,ho,wo)
    return pat.reshape(c * 9, bsz * ho * wo), ho, wo


def convtranspose_weight_to_matmul(wt):
    """PyTorch ConvTranspose2d weight (Cin, Cout, 3, 3) -> (Cout, Cin*9) matrix of the
    equivalent regular conv (channel axes swapped, kernel spatially flipped)."""
    wc = jnp.transpose(wt[:, :, ::-1, ::-1], (1, 0, 2, 3))           # (Cout, Cin, 3, 3)
    cout, cin = wc.shape[0], wc.shape[1]
    return wc.reshape(cout, cin * 9)


# ----------------------------------------------------------------------------
# End-to-end forward
# ----------------------------------------------------------------------------
def decoder_forward(x, params):
    bsz = x.shape[0]
    xf = x.reshape(bsz, -1)                                           # (B, 1024)

    h = fc_call(xf, params["w_fc"], params["b_fc"])                    # (B, 2048) f32
    # torch .view(-1, 32, 8, 8), then go channel-major once for the deconv chain.
    h = h.reshape(bsz, 32, 8, 8).transpose(1, 0, 2, 3)                 # (32,B,8,8)

    p1, h1, w1 = deconv_patches_cbhw(h)                                # (288, B*256)
    y1 = deconv_call(params["w_t1"], p1, params["b_t1"],
                     deconv_relu_kernel)                               # (16, B*256)
    y1 = y1.reshape(16, bsz, h1, w1)                                   # stays (C,B,H,W)

    p2, h2, w2 = deconv_patches_cbhw(y1)                               # (144, B*1024)
    y2 = deconv_call(params["w_t2"], p2, params["b_t2"],
                     deconv_sigmoid_kernel)                            # (2, B*1024)
    return y2.reshape(2, bsz, h2, w2).transpose(1, 0, 2, 3)            # (B,2,32,32)


def init_params(key):
    ks = jax.random.split(key, 6)

    def u(k, shape, bound):
        return jax.random.uniform(k, shape, jnp.float32, -bound, bound)

    # PyTorch-convention parameter tensors.
    w_fc_pt = u(ks[0], (2048, 1024), 1.0 / 32.0)                       # Linear (out, in)
    b_fc_pt = u(ks[1], (2048,), 1.0 / 32.0)
    wt1 = u(ks[2], (32, 16, 3, 3), 1.0 / (16 * 9) ** 0.5)              # ConvT (Cin,Cout,kh,kw)
    bt1 = u(ks[3], (16,), 1.0 / (16 * 9) ** 0.5)
    wt2 = u(ks[4], (16, 2, 3, 3), 1.0 / (2 * 9) ** 0.5)
    bt2 = u(ks[5], (2,), 1.0 / (2 * 9) ** 0.5)

    # Matmul-ready layouts (layout plumbing done once at init, not per forward).
    return {
        "w_fc": w_fc_pt.T.astype(FC_WEIGHT_DTYPE),                     # (1024, 2048) bf16
        "b_fc": b_fc_pt.reshape(1, 2048),                              # f32
        "w_t1": convtranspose_weight_to_matmul(wt1),                   # (16, 288)
        "b_t1": bt1.reshape(16, 1),
        "w_t2": convtranspose_weight_to_matmul(wt2),                   # (2, 144)
        "b_t2": bt2.reshape(2, 1),
        # PyTorch-layout copies, used only by the XLA reference below.
        "wt1_pt": wt1, "bt1_pt": bt1, "wt2_pt": wt2, "bt2_pt": bt2,
    }


def decoder_reference(x, params):
    """Pure-JAX/XLA reference (independent of the kernels' im2col path)."""
    bsz = x.shape[0]
    xf = x.reshape(bsz, -1)
    h = xf @ params["w_fc"].astype(jnp.float32) + params["b_fc"][0]
    h = h.reshape(bsz, 32, 8, 8)

    def tconv(z, w_pt, bias):
        # ConvTranspose2d(k=3,s=2,p=1,out_pad=1) == dilated conv with flipped,
        # channel-swapped kernel, padding (1,2).
        w = jnp.transpose(w_pt[:, :, ::-1, ::-1], (1, 0, 2, 3))        # (Cout,Cin,3,3)
        y = jax.lax.conv_general_dilated(
            z, w, window_strides=(1, 1), padding=((1, 2), (1, 2)),
            lhs_dilation=(2, 2), rhs_dilation=(1, 1),
            dimension_numbers=("NCHW", "OIHW", "NCHW"))
        return y + bias.reshape(1, -1, 1, 1)

    y1 = jax.nn.relu(tconv(h, params["wt1_pt"], params["bt1_pt"]))
    return jax.nn.sigmoid(tconv(y1, params["wt2_pt"], params["bt2_pt"]))


if __name__ == "__main__":
    key = jax.random.PRNGKey(0)
    kx, kp = jax.random.split(key)

    # Decoder input: the latent image (B, 1, 32, 32) -> output (B, 2, 32, 32).
    x = jax.random.normal(kx, (2, 1, 32, 32), dtype=jnp.float32)
    params = init_params(kp)

    out = jax.jit(decoder_forward)(x, params)
    jax.block_until_ready(out)

    assert out.shape == (2, 2, 32, 32), out.shape
    assert bool(jnp.all(jnp.isfinite(out)))
    # Sigmoid range (small slack for the approx EUP reciprocal).
    assert bool(jnp.all((out > -1e-3) & (out < 1.0 + 1e-3)))

    ref = decoder_reference(x, params)
    max_err = float(jnp.max(jnp.abs(out - ref)))
    assert max_err < 2e-2, f"mismatch vs XLA reference: {max_err}"

    print("KERNEL_OK")
</pallas_src>

<mosaic_0001>
module attributes {stable_mosaic.version = 11 : i64} {
  func.func @fc_kernel(%arg0: i32, %arg1: memref<2x1024xf32, #tpu.memory_space<vmem>>, %arg2: memref<1024x1024xbf16, #tpu.memory_space<vmem>>, %arg3: memref<1x1024xf32, #tpu.memory_space<vmem>>, %arg4: memref<2x1024xf32, #tpu.memory_space<vmem>>) attributes {dimension_semantics = [#tpu.dimension_semantics<parallel>], iteration_bounds = array<i64: 2>, scalar_prefetch = 0 : i64, scratch_operands = 0 : i64, tpu.core_type = #tpu.core_type<tc>, window_params = [{pipeline_mode = #tpu.pipeline_mode<synchronous>, transform_indices = @transform_0, window_bounds = array<i64: 2, 1024>}, {transform_indices = @transform_1, window_bounds = array<i64: 1024, 1024>}, {transform_indices = @transform_2, window_bounds = array<i64: 1, 1024>}, {transform_indices = @transform_3, window_bounds = array<i64: 2, 1024>}]} {
    %c0 = arith.constant 0 : index
    %c0_0 = arith.constant 0 : index
    %0 = vector.load %arg1[%c0, %c0_0] : memref<2x1024xf32, #tpu.memory_space<vmem>>, vector<2x1024xf32>
    %1 = arith.truncf %0 : vector<2x1024xf32> to vector<2x1024xbf16>
    %c0_1 = arith.constant 0 : index
    %c0_2 = arith.constant 0 : index
    %2 = vector.load %arg2[%c0_1, %c0_2] : memref<1024x1024xbf16, #tpu.memory_space<vmem>>, vector<1024x1024xbf16>
    %cst = arith.constant dense<0.000000e+00> : vector<2x1024xf32>
    %3 = tpu.matmul %1, %2, %cst {dimension_numbers = #tpu.dot_dimension_numbers<[1], [0], [0], [1], [0, 0, 1, 1], [], []>} : vector<2x1024xbf16>, vector<1024x1024xbf16>, vector<2x1024xf32> -> vector<2x1024xf32>
    %c0_3 = arith.constant 0 : index
    %c0_4 = arith.constant 0 : index
    %4 = vector.load %arg3[%c0_3, %c0_4] : memref<1x1024xf32, #tpu.memory_space<vmem>>, vector<1x1024xf32>
    %5 = vector.broadcast %4 : vector<1x1024xf32> to vector<2x1024xf32>
    %6 = arith.addf %3, %5 : vector<2x1024xf32>
    %c0_5 = arith.constant 0 : index
    %c0_6 = arith.constant 0 : index
    %7 = vector.load %arg4[%c0_5, %c0_6] : memref<2x1024xf32, #tpu.memory_space<vmem>>, vector<2x1024xf32>
    tpu.vector_store %arg4[%c0_5, %c0_6], %6 {strides = array<i32>} : memref<2x1024xf32, #tpu.memory_space<vmem>>, vector<2x1024xf32>,
    return
  }
  func.func @transform_0(%arg0: i32) -> (i32, i32) {
    %c0_i32 = arith.constant 0 : i32
    %c0_i32_0 = arith.constant 0 : i32
    %c0_i32_1 = arith.constant 0 : i32
    return %c0_i32, %c0_i32_0 : i32, i32
  }
  func.func @transform_1(%arg0: i32) -> (i32, i32) {
    %c0_i32 = arith.constant 0 : i32
    %c0_i32_0 = arith.constant 0 : i32
    return %c0_i32, %arg0 : i32, i32
  }
  func.func @transform_2(%arg0: i32) -> (i32, i32) {
    %c0_i32 = arith.constant 0 : i32
    %c0_i32_0 = arith.constant 0 : i32
    return %c0_i32, %arg0 : i32, i32
  }
  func.func @transform_3(%arg0: i32) -> (i32, i32) {
    %c0_i32 = arith.constant 0 : i32
    %c0_i32_0 = arith.constant 0 : i32
    return %c0_i32, %arg0 : i32, i32
  }
}

module attributes {stable_mosaic.version = 11 : i64} {
  func.func @deconv_relu_kernel(%arg0: i32, %arg1: memref<16x288xf32, #tpu.memory_space<vmem>>, %arg2: memref<288x512xf32, #tpu.memory_space<vmem>>, %arg3: memref<16x1xf32, #tpu.memory_space<vmem>>, %arg4: memref<16x512xf32, #tpu.memory_space<vmem>>) attributes {dimension_semantics = [#tpu.dimension_semantics<parallel>], iteration_bounds = array<i64: 1>, scalar_prefetch = 0 : i64, scratch_operands = 0 : i64, tpu.core_type = #tpu.core_type<tc>, window_params = [{pipeline_mode = #tpu.pipeline_mode<synchronous>, transform_indices = @transform_0, window_bounds = array<i64: 16, 288>}, {transform_indices = @transform_1, window_bounds = array<i64: 288, 512>}, {pipeline_mode = #tpu.pipeline_mode<synchronous>, transform_indices = @transform_2, window_bounds = array<i64: 16, 1>}, {transform_indices = @transform_3, window_bounds = array<i64: 16, 512>}]} {
    %c0 = arith.constant 0 : index
    %c0_0 = arith.constant 0 : index
    %0 = vector.load %arg1[%c0, %c0_0] : memref<16x288xf32, #tpu.memory_space<vmem>>, vector<16x288xf32>
    %c0_1 = arith.constant 0 : index
    %c0_2 = arith.constant 0 : index
    %1 = vector.load %arg2[%c0_1, %c0_2] : memref<288x512xf32, #tpu.memory_space<vmem>>, vector<288x512xf32>
    %cst = arith.constant dense<0.000000e+00> : vector<16x512xf32>
    %2 = tpu.matmul %0, %1, %cst {dimension_numbers = #tpu.dot_dimension_numbers<[1], [0], [0], [1], [0, 0, 1, 1], [], []>} : vector<16x288xf32>, vector<288x512xf32>, vector<16x512xf32> -> vector<16x512xf32>
    %c0_3 = arith.constant 0 : index
    %c0_4 = arith.constant 0 : index
    %3 = vector.load %arg3[%c0_3, %c0_4] : memref<16x1xf32, #tpu.memory_space<vmem>>, vector<16x1xf32>
    %4 = vector.broadcast %3 : vector<16x1xf32> to vector<16x512xf32>
    %5 = arith.addf %2, %4 : vector<16x512xf32>
    %cst_5 = arith.constant 0.000000e+00 : f32
    %6 = vector.broadcast %cst_5 : f32 to vector<16x512xf32>
    %7 = arith.maximumf %5, %6 : vector<16x512xf32>
    %c0_6 = arith.constant 0 : index
    %c0_7 = arith.constant 0 : index
    %8 = vector.load %arg4[%c0_6, %c0_7] : memref<16x512xf32, #tpu.memory_space<vmem>>, vector<16x512xf32>
    tpu.vector_store %arg4[%c0_6, %c0_7], %7 {strides = array<i32>} : memref<16x512xf32, #tpu.memory_space<vmem>>, vector<16x512xf32>,
    return
  }
  func.func @transform_0(%arg0: i32) -> (i32, i32) {
    %c0_i32 = arith.constant 0 : i32
    %c0_i32_0 = arith.constant 0 : i32
    %c0_i32_1 = arith.constant 0 : i32
    return %c0_i32, %c0_i32_0 : i32, i32
  }
  func.func @transform_1(%arg0: i32) -> (i32, i32) {
    %c0_i32 = arith.constant 0 : i32
    %c0_i32_0 = arith.constant 0 : i32
    return %c0_i32, %arg0 : i32, i32
  }
  func.func @transform_2(%arg0: i32) -> (i32, i32) {
    %c0_i32 = arith.constant 0 : i32
    %c0_i32_0 = arith.constant 0 : i32
    %c0_i32_1 = arith.constant 0 : i32
    return %c0_i32, %c0_i32_0 : i32, i32
  }
  func.func @transform_3(%arg0: i32) -> (i32, i32) {
    %c0_i32 = arith.constant 0 : i32
    %c0_i32_0 = arith.constant 0 : i32
    return %c0_i32, %arg0 : i32, i32
  }
}

module attributes {stable_mosaic.version = 11 : i64} {
  func.func @deconv_sigmoid_kernel(%arg0: i32, %arg1: memref<2x144xf32, #tpu.memory_space<vmem>>, %arg2: memref<144x512xf32, #tpu.memory_space<vmem>>, %arg3: memref<2x1xf32, #tpu.memory_space<vmem>>, %arg4: memref<2x512xf32, #tpu.memory_space<vmem>>) attributes {dimension_semantics = [#tpu.dimension_semantics<parallel>], iteration_bounds = array<i64: 4>, scalar_prefetch = 0 : i64, scratch_operands = 0 : i64, tpu.core_type = #tpu.core_type<tc>, window_params = [{pipeline_mode = #tpu.pipeline_mode<synchronous>, transform_indices = @transform_0, window_bounds = array<i64: 2, 144>}, {transform_indices = @transform_1, window_bounds = array<i64: 144, 512>}, {pipeline_mode = #tpu.pipeline_mode<synchronous>, transform_indices = @transform_2, window_bounds = array<i64: 2, 1>}, {transform_indices = @transform_3, window_bounds = array<i64: 2, 512>}]} {
    %c0 = arith.constant 0 : index
    %c0_0 = arith.constant 0 : index
    %0 = vector.load %arg1[%c0, %c0_0] : memref<2x144xf32, #tpu.memory_space<vmem>>, vector<2x144xf32>
    %c0_1 = arith.constant 0 : index
    %c0_2 = arith.constant 0 : index
    %1 = vector.load %arg2[%c0_1, %c0_2] : memref<144x512xf32, #tpu.memory_space<vmem>>, vector<144x512xf32>
    %cst = arith.constant dense<0.000000e+00> : vector<2x512xf32>
    %2 = tpu.matmul %0, %1, %cst {dimension_numbers = #tpu.dot_dimension_numbers<[1], [0], [0], [1], [0, 0, 1, 1], [], []>} : vector<2x144xf32>, vector<144x512xf32>, vector<2x512xf32> -> vector<2x512xf32>
    %c0_3 = arith.constant 0 : index
    %c0_4 = arith.constant 0 : index
    %3 = vector.load %arg3[%c0_3, %c0_4] : memref<2x1xf32, #tpu.memory_space<vmem>>, vector<2x1xf32>
    %4 = vector.broadcast %3 : vector<2x1xf32> to vector<2x512xf32>
    %5 = arith.addf %2, %4 : vector<2x512xf32>
    %cst_5 = arith.constant 0.000000e+00 : f32
    %6 = vector.broadcast %cst_5 : f32 to vector<2x512xf32>
    %7 = arith.subf %6, %5 : vector<2x512xf32>
    %8 = math.exp %7 : vector<2x512xf32>
    %cst_6 = arith.constant 1.000000e+00 : f32
    %9 = vector.broadcast %cst_6 : f32 to vector<2x512xf32>
    %10 = arith.addf %9, %8 : vector<2x512xf32>
    %11 = tpu.reciprocal %10 {approx = true} : vector<2x512xf32> -> vector<2x512xf32>
    %c0_7 = arith.constant 0 : index
    %c0_8 = arith.constant 0 : index
    %12 = vector.load %arg4[%c0_7, %c0_8] : memref<2x512xf32, #tpu.memory_space<vmem>>, vector<2x512xf32>
    tpu.vector_store %arg4[%c0_7, %c0_8], %11 {strides = array<i32>} : memref<2x512xf32, #tpu.memory_space<vmem>>, vector<2x512xf32>,
    return
  }
  func.func @transform_0(%arg0: i32) -> (i32, i32) {
    %c0_i32 = arith.constant 0 : i32
    %c0_i32_0 = arith.constant 0 : i32
    %c0_i32_1 = arith.constant 0 : i32
    return %c0_i32, %c0_i32_0 : i32, i32
  }
  func.func @transform_1(%arg0: i32) -> (i32, i32) {
    %c0_i32 = arith.constant 0 : i32
    %c0_i32_0 = arith.constant 0 : i32
    return %c0_i32, %arg0 : i32, i32
  }
  func.func @transform_2(%arg0: i32) -> (i32, i32) {
    %c0_i32 = arith.constant 0 : i32
    %c0_i32_0 = arith.constant 0 : i32
    %c0_i32_1 = arith.constant 0 : i32
    return %c0_i32, %c0_i32_0 : i32, i32
  }
  func.func @transform_3(%arg0: i32) -> (i32, i32) {
    %c0_i32 = arith.constant 0 : i32
    %c0_i32_0 = arith.constant 0 : i32
    return %c0_i32, %arg0 : i32, i32
  }
}

</mosaic_0001>

<bundles_post_ra>
// kernel: decoder_forward.3
= control target key start
LH: loop header
LB: loop body
LE: loop exit
PB: predicated region body
PF: predicated region fallthrough
CT: control target
= control target key end

     0   :  { %8 = vsyncpa [#allocation3], 0  ;;  %s8369_s0 = inlined_call_operand.vmem [shape: f32[2,1024], index: 0, kind: input, shape index: {}]   ;;  %s8370_s1 = inlined_call_operand.hbm [shape: bf16[1024,2048], index: 1, kind: input, shape index: {}]   ;;  %s8371_s2 = inlined_call_operand.hbm [shape: f32[1,2048], index: 2, kind: input, shape index: {}]   ;;  %s8372_s3 = inlined_call_operand.vmem [shape: f32[2,2048], index: 3, kind: output, shape index: {}]  }
   0x1   :  { %10 = vsyncpa [#allocation3 + $0x1], 0 }
   0x2   :  { %11 = vsyncpa [#allocation5], 0 }
   0x3   :  { %13 = vsyncpa [#allocation5 + $0x1], 0  ;;  %s7054_s12 = smov 0   ;;  %s7056_s13 = smov 0  }
   0x4   :  { %s7058_s14 = smov 0   ;;  %s7060_s15 = smov 0  }
   0x5 LB: > { %s4305_s16 = sadd.s32 4294967295, %s7029_s15   ;;  %s7074_s17 = sadd.s32 1, %s7029_s15   ;;  %s7029_s15 = sphi %s7060_s15, %s8380_s15   ;;  %s7025_s14 = sphi %s7058_s14, %s8379_s14   ;;  %s7021_s13 = sphi %s7056_s13, %s8378_s13   ;;  %s7017_s12 = sphi %s7054_s12, %s8377_s12  }
   0x6   : > { %s44_s18 = ssub.s32 %s7029_s15, %s7074_s17  ;;  %s47_s19 = sadd.s32 1, %s7025_s14 }
   0x7   : > { %p45_p0 = scmp.eq.s32.totalorder %s44_s18, 0  ;;  %p54_p1 = scmp.ne.s32.totalorder %s7025_s14, %s7021_s13 }
   0x8   : > { %p55_p2 = scmp.eq.s32.totalorder %s7029_s15, 0  ;;  %p60_p3 = scmp.ne.s32.totalorder %s7021_s13, %s7017_s12 }
   0x9   : > { %s7084_s20 = scalar_select %p45_p0, %s7025_s14, %s47_s19  }
   0xa   : > { %p7086_p4 = por %p55_p2, %p54_p1  ;;  %p61_p5 = scmp.eq.s32.totalorder %s4305_s16, 0 }
   0xb   : > { %p6893_p6 = scmp.lt.s32.totalorder %s7029_s15, 2  ;;  %s7098_s23 = sand.u32 1, %s7025_s14  }
   0xc   : > { %p7093_p7 = por %p61_p5, %p60_p3  ;;  %s4309_s24 = sshll.u32 %s7098_s23, 12 }
   0xd   : > { %s6369_s25 = sshll.u32 %s7029_s15, 5  ;;  %s143_s29 = scalar_lea.vmem [#allocation2], %s4309_s24 }
   0xe   : > { %s148_s28 = scalar_lea.hbm %s8370_s1, %s6369_s25  ;;  %s151_s30 = sshll.u32 %s143_s29, 4  ;;  %s152_s30 = int_to_ptr.vmem [resolvable:$true] %s151_s30 }
   0xf   : > { %s149_s4 = sshll.u32 %s148_s28, 4  ;;  %p7107_p8 = pnand %p6893_p6, %p7086_p4  ;;  %s150_s4 = int_to_ptr.hbm [resolvable:$true] %s149_s4 }
  0x10   : > { %s140_s6 = scalar_lea.sflag [#allocation3], %s7098_s23  ;;  %s6931_s7 = sshra.s32 %s150_s4, 4  ;;  %s6932_s7 = int_to_ptr.hbm [resolvable:$true] %s6931_s7 }
  0x11   : > { %s6933_s8 = scalar_lea.hbm %s6932_s7, 4096  ;;  %p6935_p10 = pneg %p7107_p8 }
  0x12   : > { %p6934_p9 = scmp.ne.s32.totalorder %s6932_s7, %s6933_s8  ;;  %s6938_s11 = scalar_lea.hbm %s8370_s1, 8192 }
  0x13   : > { %p6939_p13 = scmp.lt.s32.totalorder %s6932_s7, %s8370_s1  ;;  %p6940_p0 = scmp.lt.s32.totalorder %s6938_s11, %s6933_s8 }
  0x14   : > { %p6936_p11 = pnand %p6935_p10, %p6934_p9 }
  0x15   : > { %p6941_p1 = por %p6940_p0, %p6939_p13 }
  0x16   : > { %p6937_p12 = pneg %p6936_p11 }
  0x18   : > { %p6942_p2 = pnand %p6941_p1, %p6937_p12 }
  0x1a   : > { %6945 = shalt.err (!%p6942_p2)
}
  0x1b   : > { %s7031_s19 = smov 1024   ;;  %s7032_s21 = smov 512  }
  0x1c   : > { %s7033_s24 = smov 32   ;;  %p4314_p3 = scmp.ge.s32.totalorder %s7029_s15, 1 }
  0x1d   : > { %6889 = dma.hbm_to_vmem [thread:$0]  (!%p7107_p8), %s150_s4, 65536, %s152_s30, %s140_s6, %s7031_s19, %s7032_s21, %s7033_s24  }
  0x1e   : > { %p178_p4 = scmp.lt.s32.totalorder %s7029_s15, 3  ;;  %s4312_s25 = sshll.u32 %s7098_s23, 3 }
  0x1f   : > { %s4313_s27 = sshll.u32 %s7029_s15, 3  ;;  %s165_s28 = scalar_lea.vmem [#allocation4], %s4312_s25 }
  0x20   : > { %p7128_p5 = pnand %p4314_p3, %p178_p4  ;;  %s173_s29 = sshll.u32 %s165_s28, 4  ;;  %s174_s29 = int_to_ptr.vmem [resolvable:$true] %s173_s29 }
  0x21   : > { %s169_s9 = scalar_lea.hbm %s8371_s2, %s4313_s27  ;;  %s162_s11 = scalar_lea.sflag [#allocation5], %s7098_s23 }
  0x22   : > { %s171_s10 = sshll.u32 %s169_s9, 4  ;;  %s6968_s18 = scalar_lea.hbm %s8371_s2, 16  ;;  %s172_s10 = int_to_ptr.hbm [resolvable:$true] %s171_s10 }
  0x23   : > { %s6961_s30 = sshra.s32 %s172_s10, 4  ;;  %s6962_s30 = int_to_ptr.hbm [resolvable:$true] %s6961_s30 }
  0x24   : > { %s6963_s4 = scalar_lea.hbm %s6962_s30, 8  ;;  %p6969_p12 = scmp.lt.s32.totalorder %s6962_s30, %s8371_s2 }
  0x25   : > { %p6964_p6 = scmp.ne.s32.totalorder %s6962_s30, %s6963_s4  ;;  %p6970_p13 = scmp.lt.s32.totalorder %s6968_s18, %s6963_s4 }
  0x27   : > { %p6966_p9 = pnand %p6964_p6, %p6935_p10  ;;  %p6971_p0 = por %p6970_p13, %p6969_p12 }
  0x29   : > { %p6967_p11 = pneg %p6966_p9 }
  0x2b   : > { %p6972_p1 = pnand %p6971_p0, %p6967_p11 }
  0x2d   : > { %6975 = shalt.err (!%p6972_p1)
}
  0x2e   : > { %6892 = dma.hbm_to_vmem [thread:$0]  (!%p7107_p8), %s172_s10, 128, %s174_s29, %s162_s11  }
  0x2f   : > { %182 = sbr.rel (%p7128_p5) target bundleno = 982 (0x3d6), region = 32  ;;  %s184_s23 = sand.u32 (!%p7128_p5), 1, %s7021_s13  }
  0x30   : > { %s4315_s24 = sshll.u32 (!%p7128_p5), %s184_s23, 12  ;;  %s185_s25 = scalar_lea.sflag (!%p7128_p5), [#allocation3], %s184_s23 }
  0x31   : > { %s7151_s27 = scalar_lea.vmem (!%p7128_p5), [#allocation2], %s4315_s24 }
  0x34   : > { %7008 = dma.done.wait (%p7093_p7), %s185_s25, 65536  }
  0x35   : > { %7010 = vsyncadd (%p7093_p7), %s185_s25, 4294901760  ;;  %s4316_s28 = sshll.u32 %s184_s23, 3  ;;  %s195_s7 = scalar_lea.sflag [#allocation5], %s184_s23 }
  0x36   : > { %s7157_s5 = scalar_lea.vmem [#allocation4], %s4316_s28 }
  0x37   : > { %7012 = dma.done.wait (%p7093_p7), %s195_s7, 128  }
  0x38   : > { %7014 = vsyncadd (%p7093_p7), %s195_s7, 4294967168  ;;  %v4545_v0 = vld [vmem:[%s7151_s27 + $0x1c0] sm:$0xf]  ;;  %vm4202_vm0 = vcmask 1041408   ;;  %s8070_s9 = sshll.u32 %s4305_s16, 3  ;;  %vm4204_vm1 = vcmask 1045508  }
  0x39   : > { %v6430_v1 = vld [vmem:[%s7151_s27 + $0x1dc] sm:$0xf0]  ;;  %p230_p7 = scmp.lt.s32.totalorder %s8070_s9, 15  ;;  %vm4206_vm2 = vcmask 1043456  }
  0x3a   : > { %v4801_v2 = vld [vmem:[%s7151_s27 + $0x3c0] sm:$0xf]  ;;  %v4546_v3 = vor.u32 %v6430_v1, %v4545_v0 }
  0x3b   : > { %v6494_v4 = vld [vmem:[%s7151_s27 + $0x3dc] sm:$0xf0]  ;;  %s8382_s9 = smov (!%p230_p7, %s8070_s9), 15 }
  0x3c   : > { %v5057_v5 = vld [vmem:[%s7151_s27 + $0x5c0] sm:$0xf]  ;;  %v4802_v7 = vor.u32 %v6494_v4, %v4801_v2  ;;  %3356 = vmatpush.bf16.msra.mxu0 %v4546_v3  ;;  %s4318_s15 = sshll.u32 %s8382_s9, 1 }
  0x3d   : > { %v6558_v6 = vld [vmem:[%s7151_s27 + $0x5dc] sm:$0xf0]  ;;  %s8115_s11 = scalar_lea.vmem %s8372_s3, %s4318_s15 }
  0x3e   : > { %v5058_v8 = vor.u32 %v6558_v6, %v5057_v5  ;;  %v5313_v9 = vld [vmem:[%s7151_s27 + $0x7c0] sm:$0xf]  ;;  %3369 = vmatpush.bf16.msra.mxu1 %v4802_v7 }
  0x3f   : > { %v6622_v10 = vld [vmem:[%s7151_s27 + $0x7dc] sm:$0xf0] }
  0x40   : > { %v4513_v11 = vld [vmem:[%s7151_s27 + $0x180] sm:$0xf]  ;;  %v5314_v12 = vor.u32 %v6622_v10, %v5313_v9  ;;  %3382 = vmatpush.bf16.msra.mxu2 %v5058_v8 }
  0x41   : > { %v6422_v13 = vld [vmem:[%s7151_s27 + $0x19c] sm:$0xf0] }
  0x42   : > { %v4769_v14 = vld [vmem:[%s7151_s27 + $0x380] sm:$0xf]  ;;  %v4514_v16 = vor.u32 %v6422_v13, %v4513_v11  ;;  %3395 = vmatpush.bf16.msra.mxu3 %v5314_v12 }
  0x43   : > { %v6486_v15 = vld [vmem:[%s7151_s27 + $0x39c] sm:$0xf0] }
  0x44   : > { %v4770_v17 = vor.u32 %v6486_v15, %v4769_v14  ;;  %v5025_v18 = vld [vmem:[%s7151_s27 + $0x580] sm:$0xf]  ;;  %3357 = vmatpush.bf16.msra.mxu0 %v4514_v16 }
  0x45   : > { %v6550_v19 = vld [vmem:[%s7151_s27 + $0x59c] sm:$0xf0] }
  0x46   : > { %v5281_v20 = vld [vmem:[%s7151_s27 + $0x780] sm:$0xf]  ;;  %v5026_v21 = vor.u32 %v6550_v19, %v5025_v18  ;;  %3370 = vmatpush.bf16.msra.mxu1 %v4770_v17 }
  0x47   : > { %v6614_v22 = vld [vmem:[%s7151_s27 + $0x79c] sm:$0xf0] }
  0x48   : > { %v4481_v23 = vld [vmem:[%s7151_s27 + $0x140] sm:$0xf]  ;;  %v5282_v25 = vor.u32 %v6614_v22, %v5281_v20  ;;  %3383 = vmatpush.bf16.msra.mxu2 %v5026_v21 }
  0x49   : > { %v6414_v24 = vld [vmem:[%s7151_s27 + $0x15c] sm:$0xf0] }
  0x4a   : > { %v4737_v26 = vld [vmem:[%s7151_s27 + $0x340] sm:$0xf]  ;;  %v4482_v29 = vor.u32 %v6414_v24, %v4481_v23  ;;  %3396 = vmatpush.bf16.msra.mxu3 %v5282_v25 }
  0x4b   : > { %v6478_v27 = vld [vmem:[%s7151_s27 + $0x35c] sm:$0xf0] }
  0x4c   : > { %v4993_v28 = vld [vmem:[%s7151_s27 + $0x540] sm:$0xf]  ;;  %v4738_v33 = vor.u32 %v6478_v27, %v4737_v26  ;;  %3358 = vmatpush.bf16.msra.mxu0 %v4482_v29 }
  0x4d   : > { %v6542_v30 = vld [vmem:[%s7151_s27 + $0x55c] sm:$0xf0] }
  0x4e   : > { %v5249_v31 = vld [vmem:[%s7151_s27 + $0x740] sm:$0xf]  ;;  %v4994_v34 = vor.u32 %v6542_v30, %v4993_v28  ;;  %3371 = vmatpush.bf16.msra.mxu1 %v4738_v33 }
  0x4f   : > { %v6606_v32 = vld [vmem:[%s7151_s27 + $0x75c] sm:$0xf0] }
  0x50   : > { %v4449_v35 = vld [vmem:[%s7151_s27 + $0x100] sm:$0xf]  ;;  %v5250_v38 = vor.u32 %v6606_v32, %v5249_v31  ;;  %3384 = vmatpush.bf16.msra.mxu2 %v4994_v34 }
  0x51   : > { %v6406_v36 = vld [vmem:[%s7151_s27 + $0x11c] sm:$0xf0] }
  0x52   : > { %v4705_v37 = vld [vmem:[%s7151_s27 + $0x300] sm:$0xf]  ;;  %v4450_v44 = vor.u32 %v6406_v36, %v4449_v35  ;;  %3397 = vmatpush.bf16.msra.mxu3 %v5250_v38 }
  0x53   : > { %v6470_v39 = vld [vmem:[%s7151_s27 + $0x31c] sm:$0xf0] }
  0x54   : > { %v4961_v40 = vld [vmem:[%s7151_s27 + $0x500] sm:$0xf]  ;;  %v4706_v45 = vor.u32 %v6470_v39, %v4705_v37  ;;  %3359 = vmatpush.bf16.msra.mxu0 %v4450_v44 }
  0x55   : > { %v6534_v41 = vld [vmem:[%s7151_s27 + $0x51c] sm:$0xf0] }
  0x56   : > { %v5217_v42 = vld [vmem:[%s7151_s27 + $0x700] sm:$0xf]  ;;  %v4962_v46 = vor.u32 %v6534_v41, %v4961_v40  ;;  %3372 = vmatpush.bf16.msra.mxu1 %v4706_v45 }
  0x57   : > { %v6598_v43 = vld [vmem:[%s7151_s27 + $0x71c] sm:$0xf0] }
  0x58   : > { %v4417_v47 = vld [vmem:[%s7151_s27 + $0xc0] sm:$0xf]  ;;  %v5218_v50 = vor.u32 %v6598_v43, %v5217_v42  ;;  %3385 = vmatpush.bf16.msra.mxu2 %v4962_v46 }
  0x59   : > { %v6398_v48 = vld [vmem:[%s7151_s27 + $0xdc] sm:$0xf0] }
  0x5a   : > { %v4673_v49 = vld [vmem:[%s7151_s27 + $0x2c0] sm:$0xf]  ;;  %v4418_v56 = vor.u32 %v6398_v48, %v4417_v47  ;;  %3398 = vmatpush.bf16.msra.mxu3 %v5218_v50 }
  0x5b   : > { %v6462_v51 = vld [vmem:[%s7151_s27 + $0x2dc] sm:$0xf0] }
  0x5c   : > { %v4929_v52 = vld [vmem:[%s7151_s27 + $0x4c0] sm:$0xf]  ;;  %v4674_v57 = vor.u32 %v6462_v51, %v4673_v49  ;;  %3360 = vmatpush.bf16.msra.mxu0 %v4418_v56 }
  0x5d   : > { %v6526_v53 = vld [vmem:[%s7151_s27 + $0x4dc] sm:$0xf0] }
  0x5e   : > { %v5185_v54 = vld [vmem:[%s7151_s27 + $0x6c0] sm:$0xf]  ;;  %v4930_v58 = vor.u32 %v6526_v53, %v4929_v52  ;;  %3373 = vmatpush.bf16.msra.mxu1 %v4674_v57 }
  0x5f   : > { %v6590_v55 = vld [vmem:[%s7151_s27 + $0x6dc] sm:$0xf0] }
  0x60   : > { %v4385_v59 = vld [vmem:[%s7151_s27 + $0x80] sm:$0xf]  ;;  %v5186_v62 = vor.u32 %v6590_v55, %v5185_v54  ;;  %3386 = vmatpush.bf16.msra.mxu2 %v4930_v58 }
  0x61   : > { %v6390_v60 = vld [vmem:[%s7151_s27 + $0x9c] sm:$0xf0] }
  0x62   : > { %v4641_v61 = vld [vmem:[%s7151_s27 + $0x280] sm:$0xf]  ;;  %v4386_v4 = vor.u32 %v6390_v60, %v4385_v59  ;;  %3399 = vmatpush.bf16.msra.mxu3 %v5186_v62  ;;  %v235_v59 = vld [vmem:[%s8369_s0] sm:$0xff] }
  0x63   : > { %v6454_v63 = vld [vmem:[%s7151_s27 + $0x29c] sm:$0xf0]  ;;  %239 = vst [vmem:[#allocation1] ss:$4 sm:$0xff] %v235_v59 }
  0x64   : > { %v4897_v0 = vld [vmem:[%s7151_s27 + $0x480] sm:$0xf]  ;;  %v4642_v5 = vor.u32 %v6454_v63, %v4641_v61  ;;  %3361 = vmatpush.bf16.msra.mxu0 %v4386_v4 }
  0x65   : > { %v6518_v1 = vld [vmem:[%s7151_s27 + $0x49c] sm:$0xf0] }
  0x66   : > { %v5153_v2 = vld [vmem:[%s7151_s27 + $0x680] sm:$0xf]  ;;  %v4898_v6 = vor.u32 %v6518_v1, %v4897_v0  ;;  %3374 = vmatpush.bf16.msra.mxu1 %v4642_v5 }
  0x67   : > { %v6582_v3 = vld [vmem:[%s7151_s27 + $0x69c] sm:$0xf0] }
  0x68   : > { %v4353_v7 = vld [vmem:[%s7151_s27 + $0x40] sm:$0xf]  ;;  %v5154_v10 = vor.u32 %v6582_v3, %v5153_v2  ;;  %3387 = vmatpush.bf16.msra.mxu2 %v4898_v6 }
  0x69   : > { %v6382_v8 = vld [vmem:[%s7151_s27 + $0x5c] sm:$0xf0] }
  0x6a   : > { %v4609_v9 = vld [vmem:[%s7151_s27 + $0x240] sm:$0xf]  ;;  %v4354_v16 = vor.u32 %v6382_v8, %v4353_v7  ;;  %3400 = vmatpush.bf16.msra.mxu3 %v5154_v10 }
  0x6b   : > { %v6446_v11 = vld [vmem:[%s7151_s27 + $0x25c] sm:$0xf0] }
  0x6c   : > { %v4865_v12 = vld [vmem:[%s7151_s27 + $0x440] sm:$0xf]  ;;  %v4610_v19 = vor.u32 %v6446_v11, %v4609_v9  ;;  %3362 = vmatpush.bf16.msra.mxu0 %v4354_v16 }
  0x6d   : > { %v6510_v13 = vld [vmem:[%s7151_s27 + $0x45c] sm:$0xf0] }
  0x6e   : > { %v5121_v14 = vld [vmem:[%s7151_s27 + $0x640] sm:$0xf]  ;;  %v4866_v20 = vor.u32 %v6510_v13, %v4865_v12  ;;  %3375 = vmatpush.bf16.msra.mxu1 %v4610_v19 }
  0x6f   : > { %v6574_v15 = vld [vmem:[%s7151_s27 + $0x65c] sm:$0xf0] }
  0x70   : > { %v4321_v17 = vld [vmem:[%s7151_s27] sm:$0xf]  ;;  %v5122_v24 = vor.u32 %v6574_v15, %v5121_v14  ;;  %3388 = vmatpush.bf16.msra.mxu2 %v4866_v20 }
  0x71   : > { %v6374_v18 = vld [vmem:[%s7151_s27 + $0x1c] sm:$0xf0] }
  0x72   : > { %v4577_v21 = vld [vmem:[%s7151_s27 + $0x200] sm:$0xf]  ;;  %v4322_v31 = vor.u32 %v6374_v18, %v4321_v17  ;;  %3401 = vmatpush.bf16.msra.mxu3 %v5122_v24 }
  0x73   : > { %v6438_v22 = vld [vmem:[%s7151_s27 + $0x21c] sm:$0xf0] }
  0x74   : > { %v4833_v23 = vld [vmem:[%s7151_s27 + $0x400] sm:$0xf]  ;;  %v4578_v35 = vor.u32 %v6438_v22, %v4577_v21  ;;  %3363 = vmatpush.bf16.msra.mxu0 %v4322_v31  ;;  %v244_v22 = vld.sshfl [vmem:[#allocation1 + $0x10] sm:$0xff pattern:$0x73625140] }
  0x75   : > { %v6502_v25 = vld [vmem:[%s7151_s27 + $0x41c] sm:$0xf0] }
  0x76   : > { %v5089_v26 = vld [vmem:[%s7151_s27 + $0x600] sm:$0xf]  ;;  %v4834_v36 = vor.u32 %v6502_v25, %v4833_v23  ;;  %3376 = vmatpush.bf16.msra.mxu1 %v4578_v35  ;;  %v242_v23 = vld.sshfl [vmem:[#allocation1] sm:$0xff pattern:$0x73625140]  ;;  %v7268_v25 = vpack.c.bf16 %v244_v22, %v244_v22 }
  0x77   : > { %v6566_v27 = vld [vmem:[%s7151_s27 + $0x61c] sm:$0xf0] }
  0x78   : > { %v5569_v28 = vld [vmem:[%s7151_s27 + $0x9c0] sm:$0xf]  ;;  %v5090_v39 = vor.u32 %v6566_v27, %v5089_v26  ;;  %3389 = vmatpush.bf16.msra.mxu2 %v4834_v36  ;;  %v7270_v26 = vpack.c.bf16 %v242_v23, %v242_v23  ;;  %v245_v27 = vld.sshfl [vmem:[#allocation1 + $0x18] sm:$0xff pattern:$0x73625140] }
  0x79   : > { %v6686_v29 = vld [vmem:[%s7151_s27 + $0x9dc] sm:$0xf0]  ;;  %v7274_v31 = vpack.c.bf16 %v245_v27, %v245_v27 }
  0x7a   : > { %v5825_v30 = vld [vmem:[%s7151_s27 + $0xbc0] sm:$0xf]  ;;  %v5570_v40 = vor.u32 %v6686_v29, %v5569_v28  ;;  %3402 = vmatpush.bf16.msra.mxu3 %v5090_v39  ;;  %3364 = vmatmul.bf16.vlgmr.msra.gmra.mxu0 %v7270_v26 }
  0x7b   : > { %v6750_v32 = vld [vmem:[%s7151_s27 + $0xbdc] sm:$0xf0]  ;;  %3390 = vmatmul.bf16.vlgmr.msra.gmra.mxu2 %v7268_v25 }
  0x7c   : > { %v6081_v33 = vld [vmem:[%s7151_s27 + $0xdc0] sm:$0xf]  ;;  %v5826_v41 = vor.u32 %v6750_v32, %v5825_v30  ;;  %3408 = vmatpush.bf16.msrb.mxu0 %v5570_v40 }
  0x7d   : > { %v6814_v34 = vld [vmem:[%s7151_s27 + $0xddc] sm:$0xf0]  ;;  %3403 = vmatmul.bf16.vlgmr.msra.gmra.mxu3 %v7274_v31 }
  0x7e   : > { %v6337_v37 = vld [vmem:[%s7151_s27 + $0xfc0] sm:$0xf]  ;;  %v6082_v42 = vor.u32 %v6814_v34, %v6081_v33  ;;  %3421 = vmatpush.bf16.msrb.mxu1 %v5826_v41 }
  0x7f   : > { %v6878_v38 = vld [vmem:[%s7151_s27 + $0xfdc] sm:$0xf0] }
  0x80   : > { %v5537_v43 = vld [vmem:[%s7151_s27 + $0x980] sm:$0xf]  ;;  %v6338_v46 = vor.u32 %v6878_v38, %v6337_v37  ;;  %3434 = vmatpush.bf16.msrb.mxu2 %v6082_v42 }
  0x81   : > { %v6678_v44 = vld [vmem:[%s7151_s27 + $0x99c] sm:$0xf0] }
  0x82   : > { %v5793_v45 = vld [vmem:[%s7151_s27 + $0xb80] sm:$0xf]  ;;  %v5538_v52 = vor.u32 %v6678_v44, %v5537_v43  ;;  %3447 = vmatpush.bf16.msrb.mxu3 %v6338_v46 }
  0x83   : > { %v6742_v47 = vld [vmem:[%s7151_s27 + $0xb9c] sm:$0xf0] }
  0x84   : > { %v6049_v48 = vld [vmem:[%s7151_s27 + $0xd80] sm:$0xf]  ;;  %v5794_v55 = vor.u32 %v6742_v47, %v5793_v45  ;;  %3409 = vmatpush.bf16.msrb.mxu0 %v5538_v52 }
  0x85   : > { %v6806_v49 = vld [vmem:[%s7151_s27 + $0xd9c] sm:$0xf0] }
  0x86   : > { %v6305_v50 = vld [vmem:[%s7151_s27 + $0xf80] sm:$0xf]  ;;  %v6050_v56 = vor.u32 %v6806_v49, %v6049_v48  ;;  %3422 = vmatpush.bf16.msrb.mxu1 %v5794_v55 }
  0x87   : > { %v6870_v51 = vld [vmem:[%s7151_s27 + $0xf9c] sm:$0xf0] }
  0x88   : > { %v5505_v53 = vld [vmem:[%s7151_s27 + $0x940] sm:$0xf]  ;;  %v6306_v60 = vor.u32 %v6870_v51, %v6305_v50  ;;  %3435 = vmatpush.bf16.msrb.mxu2 %v6050_v56 }
  0x89   : > { %v6670_v54 = vld [vmem:[%s7151_s27 + $0x95c] sm:$0xf0] }
  0x8a   : > { %v5761_v57 = vld [vmem:[%s7151_s27 + $0xb40] sm:$0xf]  ;;  %v5506_v1 = vor.u32 %v6670_v54, %v5505_v53  ;;  %3448 = vmatpush.bf16.msrb.mxu3 %v6306_v60 }
  0x8b   : > { %v6734_v58 = vld [vmem:[%s7151_s27 + $0xb5c] sm:$0xf0] }
  0x8c   : > { %v6017_v61 = vld [vmem:[%s7151_s27 + $0xd40] sm:$0xf]  ;;  %v5762_v3 = vor.u32 %v6734_v58, %v5761_v57  ;;  %3410 = vmatpush.bf16.msrb.mxu0 %v5506_v1 }
  0x8d   : > { %v6798_v62 = vld [vmem:[%s7151_s27 + $0xd5c] sm:$0xf0] }
  0x8e   : > { %v6273_v63 = vld [vmem:[%s7151_s27 + $0xf40] sm:$0xf]  ;;  %v6018_v4 = vor.u32 %v6798_v62, %v6017_v61  ;;  %3423 = vmatpush.bf16.msrb.mxu1 %v5762_v3 }
  0x8f   : > { %v6862_v0 = vld [vmem:[%s7151_s27 + $0xf5c] sm:$0xf0] }
  0x90   : > { %v5473_v2 = vld [vmem:[%s7151_s27 + $0x900] sm:$0xf]  ;;  %v6274_v8 = vor.u32 %v6862_v0, %v6273_v63  ;;  %3436 = vmatpush.bf16.msrb.mxu2 %v6018_v4 }
  0x91   : > { %v6662_v5 = vld [vmem:[%s7151_s27 + $0x91c] sm:$0xf0] }
  0x92   : > { %v5729_v6 = vld [vmem:[%s7151_s27 + $0xb00] sm:$0xf]  ;;  %v5474_v15 = vor.u32 %v6662_v5, %v5473_v2  ;;  %3449 = vmatpush.bf16.msrb.mxu3 %v6274_v8  ;;  %v6490_v8 = vld [vmem:[%s7151_s27 + $0x3c4] sm:$0xf] }
  0x93   : > { %v6726_v7 = vld [vmem:[%s7151_s27 + $0xb1c] sm:$0xf0] }
  0x94   : > { %v5985_v9 = vld [vmem:[%s7151_s27 + $0xd00] sm:$0xf]  ;;  %v5730_v20 = vor.u32 %v6726_v7, %v5729_v6  ;;  %3411 = vmatpush.bf16.msrb.mxu0 %v5474_v15  ;;  %v6426_v6 = vld [vmem:[%s7151_s27 + $0x1c4] sm:$0xf] }
  0x95   : > { %v6790_v10 = vld [vmem:[%s7151_s27 + $0xd1c] sm:$0xf0]  ;;  %v4547_v7 = vld [vmem:[%s7151_s27 + $0x1e0] sm:$0xf0] }
  0x96   : > { %v6241_v11 = vld [vmem:[%s7151_s27 + $0xf00] sm:$0xf]  ;;  %v5986_v21 = vor.u32 %v6790_v10, %v5985_v9  ;;  %3424 = vmatpush.bf16.msrb.mxu1 %v5730_v20  ;;  %v4803_v9 = vld [vmem:[%s7151_s27 + $0x3e0] sm:$0xf0] }
  0x97   : > { %v6854_v12 = vld [vmem:[%s7151_s27 + $0xf1c] sm:$0xf0]  ;;  %v6554_v10 = vld [vmem:[%s7151_s27 + $0x5c4] sm:$0xf] }
  0x98   : > { %v5441_v13 = vld [vmem:[%s7151_s27 + $0x8c0] sm:$0xf]  ;;  %v6242_v24 = vor.u32 %v6854_v12, %v6241_v11  ;;  %3437 = vmatpush.bf16.msrb.mxu2 %v5986_v21  ;;  %v5059_v12 = vld [vmem:[%s7151_s27 + $0x5e0] sm:$0xf0]  ;;  %v4550_v21 = vor.u32 %v6426_v6, %v4547_v7 }
  0x99   : > { %v6654_v14 = vld [vmem:[%s7151_s27 + $0x8dc] sm:$0xf0]  ;;  %v5062_v27 = vor.u32 %v6554_v10, %v5059_v12  ;;  %v4419_v6 = vld [vmem:[%s7151_s27 + $0xe0] sm:$0xf0] }
  0x9a   : > { %v5697_v16 = vld [vmem:[%s7151_s27 + $0xac0] sm:$0xf]  ;;  %v5442_v33 = vor.u32 %v6654_v14, %v5441_v13  ;;  %3450 = vmatpush.bf16.msrb.mxu3 %v6242_v24  ;;  %v6618_v13 = vld [vmem:[%s7151_s27 + $0x7c4] sm:$0xf]  ;;  %v4806_v24 = vor.u32 %v6490_v8, %v4803_v9 }
  0x9b   : > { %v6718_v17 = vld [vmem:[%s7151_s27 + $0xadc] sm:$0xf0]  ;;  %v5315_v14 = vld [vmem:[%s7151_s27 + $0x7e0] sm:$0xf0] }
  0x9c   : > { %v5953_v18 = vld [vmem:[%s7151_s27 + $0xcc0] sm:$0xf]  ;;  %v5698_v34 = vor.u32 %v6718_v17, %v5697_v16  ;;  %3412 = vmatpush.bf16.msrb.mxu0 %v5442_v33  ;;  %v6418_v17 = vld [vmem:[%s7151_s27 + $0x184] sm:$0xf] }
  0x9d   : > { %v6782_v19 = vld [vmem:[%s7151_s27 + $0xcdc] sm:$0xf0]  ;;  %v4771_v33 = vld [vmem:[%s7151_s27 + $0x3a0] sm:$0xf0] }
  0x9e   : > { %v243_v28 = vld.sshfl [vmem:[#allocation1 + $0x8] sm:$0xff pattern:$0x73625140]  ;;  %v5954_v35 = vor.u32 %v6782_v19, %v5953_v18  ;;  %3425 = vmatpush.bf16.msrb.mxu1 %v5698_v34 }
  0x9f   : > { %v6209_v29 = vld [vmem:[%s7151_s27 + $0xec0] sm:$0xf]  ;;  %v7276_v32 = vpack.c.bf16 %v243_v28, %v243_v28  ;;  %v4515_v18 = vld [vmem:[%s7151_s27 + $0x1a0] sm:$0xf0] }
  0xa0   : > { %v6846_v30 = vld [vmem:[%s7151_s27 + $0xedc] sm:$0xf0]  ;;  %3438 = vmatpush.bf16.msrb.mxu2 %v5954_v35  ;;  %v6482_v28 = vld [vmem:[%s7151_s27 + $0x384] sm:$0xf] }
  0xa1   : > { %v5409_v36 = vld [vmem:[%s7151_s27 + $0x880] sm:$0xf]  ;;  %v6210_v39 = vor.u32 %v6846_v30, %v6209_v29  ;;  %3377 = vmatmul.bf16.vlgmr.msra.gmra.mxu1 %v7276_v32  ;;  %v5318_v30 = vor.u32 %v6618_v13, %v5315_v14  ;;  %v6546_v34 = vld [vmem:[%s7151_s27 + $0x584] sm:$0xf] }
  0xa2   : > { %v6646_v37 = vld [vmem:[%s7151_s27 + $0x89c] sm:$0xf0]  ;;  %v5027_v35 = vld [vmem:[%s7151_s27 + $0x5a0] sm:$0xf0] }
  0xa3   : > { %v5665_v38 = vld [vmem:[%s7151_s27 + $0xa80] sm:$0xf]  ;;  %v5410_v45 = vor.u32 %v6646_v37, %v5409_v36  ;;  %3451 = vmatpush.bf16.msrb.mxu3 %v6210_v39  ;;  %v6610_v37 = vld [vmem:[%s7151_s27 + $0x784] sm:$0xf] }
  0xa4   : > { %v6710_v40 = vld [vmem:[%s7151_s27 + $0xa9c] sm:$0xf0]  ;;  %v6458_v7 = vld [vmem:[%s7151_s27 + $0x2c4] sm:$0xf] }
  0xa5   : > { %v5921_v41 = vld [vmem:[%s7151_s27 + $0xc80] sm:$0xf]  ;;  %v5666_v48 = vor.u32 %v6710_v40, %v5665_v38  ;;  %3413 = vmatpush.bf16.msrb.mxu0 %v5410_v45  ;;  %v5283_v38 = vld [vmem:[%s7151_s27 + $0x7a0] sm:$0xf0] }
  0xa6   : > { %v6774_v42 = vld [vmem:[%s7151_s27 + $0xc9c] sm:$0xf0]  ;;  %v6410_v45 = vld [vmem:[%s7151_s27 + $0x144] sm:$0xf] }
  0xa7   : > { %v6177_v43 = vld [vmem:[%s7151_s27 + $0xe80] sm:$0xf]  ;;  %v5922_v49 = vor.u32 %v6774_v42, %v5921_v41  ;;  %3426 = vmatpush.bf16.msrb.mxu1 %v5666_v48  ;;  %v4518_v41 = vor.u32 %v6418_v17, %v4515_v18  ;;  %v5286_v48 = vor.u32 %v6610_v37, %v5283_v38  ;;  %v4675_v9 = vld [vmem:[%s7151_s27 + $0x2e0] sm:$0xf0] }
  0xa8   : > { %v6838_v44 = vld [vmem:[%s7151_s27 + $0xe9c] sm:$0xf0]  ;;  %v6522_v10 = vld [vmem:[%s7151_s27 + $0x4c4] sm:$0xf] }
  0xa9   : > { %v5377_v46 = vld [vmem:[%s7151_s27 + $0x840] sm:$0xf]  ;;  %v6178_v53 = vor.u32 %v6838_v44, %v6177_v43  ;;  %3439 = vmatpush.bf16.msrb.mxu2 %v5922_v49  ;;  %v4774_v43 = vor.u32 %v6482_v28, %v4771_v33  ;;  %v5030_v44 = vor.u32 %v6546_v34, %v5027_v35  ;;  %v4739_v49 = vld [vmem:[%s7151_s27 + $0x360] sm:$0xf0] }
  0xaa   : > { %v6638_v47 = vld [vmem:[%s7151_s27 + $0x85c] sm:$0xf0]  ;;  %v6586_v12 = vld [vmem:[%s7151_s27 + $0x6c4] sm:$0xf] }
  0xab   : > { %v5633_v50 = vld [vmem:[%s7151_s27 + $0xa40] sm:$0xf]  ;;  %v5378_v59 = vor.u32 %v6638_v47, %v5377_v46  ;;  %3452 = vmatpush.bf16.msrb.mxu3 %v6178_v53  ;;  %v4483_v46 = vld [vmem:[%s7151_s27 + $0x160] sm:$0xf0] }
  0xac   : > { %v6702_v51 = vld [vmem:[%s7151_s27 + $0xa5c] sm:$0xf0]  ;;  %v6474_v47 = vld [vmem:[%s7151_s27 + $0x344] sm:$0xf] }
  0xad   : > { %v236_v52 = vld [vmem:[%s8369_s0 + $0x8] sm:$0xff]  ;;  %v5634_v63 = vor.u32 %v6702_v51, %v5633_v50  ;;  %3414 = vmatpush.bf16.msrb.mxu0 %v5378_v59 }
  0xae   : > { %v5889_v54 = vld [vmem:[%s7151_s27 + $0xc40] sm:$0xf]  ;;  %241 = vst [vmem:[#allocation1 + $0x20] ss:$4 sm:$0xff] %v236_v52  ;;  %v6538_v50 = vld [vmem:[%s7151_s27 + $0x544] sm:$0xf] }
  0xaf   : > { %v6766_v55 = vld [vmem:[%s7151_s27 + $0xc5c] sm:$0xf0]  ;;  %3427 = vmatpush.bf16.msrb.mxu1 %v5634_v63  ;;  %v4995_v51 = vld [vmem:[%s7151_s27 + $0x560] sm:$0xf0] }
  0xb0   : > { %v6145_v56 = vld [vmem:[%s7151_s27 + $0xe40] sm:$0xf]  ;;  %v5890_v0 = vor.u32 %v6766_v55, %v5889_v54  ;;  %v6602_v52 = vld [vmem:[%s7151_s27 + $0x744] sm:$0xf]  ;;  %v4486_v54 = vor.u32 %v6410_v45, %v4483_v46  ;;  %v4742_v55 = vor.u32 %v6474_v47, %v4739_v49 }
  0xb1   : > { %v6830_v57 = vld [vmem:[%s7151_s27 + $0xe5c] sm:$0xf0]  ;;  %v5251_v53 = vld [vmem:[%s7151_s27 + $0x760] sm:$0xf0] }
  0xb2   : > { %v5345_v58 = vld [vmem:[%s7151_s27 + $0x800] sm:$0xf]  ;;  %v6146_v4 = vor.u32 %v6830_v57, %v6145_v56  ;;  %3440 = vmatpush.bf16.msrb.mxu2 %v5890_v0  ;;  %v4998_v56 = vor.u32 %v6538_v50, %v4995_v51  ;;  %v6402_v57 = vld [vmem:[%s7151_s27 + $0x104] sm:$0xf] }
  0xb3   : > { %v6630_v60 = vld [vmem:[%s7151_s27 + $0x81c] sm:$0xf0]  ;;  %v6466_v59 = vld [vmem:[%s7151_s27 + $0x304] sm:$0xf] }
  0xb4   : > { %v5601_v61 = vld [vmem:[%s7151_s27 + $0xa00] sm:$0xf]  ;;  %v5346_v11 = vor.u32 %v6630_v60, %v5345_v58  ;;  %3453 = vmatpush.bf16.msrb.mxu3 %v6146_v4  ;;  %v4451_v58 = vld [vmem:[%s7151_s27 + $0x120] sm:$0xf0]  ;;  %v5254_v60 = vor.u32 %v6602_v52, %v5251_v53 }
  0xb5   : > { %v6694_v62 = vld [vmem:[%s7151_s27 + $0xa1c] sm:$0xf0]  ;;  %v248_v19 = vld.sshfl [vmem:[#allocation1 + $0x30] sm:$0xff pattern:$0x73625140] }
  0xb6   : > { %v5857_v1 = vld [vmem:[%s7151_s27 + $0xc00] sm:$0xf]  ;;  %v5602_v15 = vor.u32 %v6694_v62, %v5601_v61  ;;  %v246_v22 = vld.sshfl [vmem:[#allocation1 + $0x20] sm:$0xff pattern:$0x73625140]  ;;  %3415 = vmatpush.bf16.msrb.mxu0 %v5346_v11  ;;  %v7323_v36 = vpack.c.bf16 %v248_v19, %v248_v19 }
  0xb7   : > { %v6758_v2 = vld [vmem:[%s7151_s27 + $0xc1c] sm:$0xf0]  ;;  %v249_v23 = vld.sshfl [vmem:[#allocation1 + $0x38] sm:$0xff pattern:$0x73625140]  ;;  %v7327_v39 = vpack.c.bf16 %v246_v22, %v246_v22 }
  0xb8   : > { %v6113_v3 = vld [vmem:[%s7151_s27 + $0xe00] sm:$0xf]  ;;  %v5858_v16 = vor.u32 %v6758_v2, %v5857_v1  ;;  %3428 = vmatpush.bf16.msrb.mxu1 %v5602_v15  ;;  %v7329_v40 = vpack.c.bf16 %v249_v23, %v249_v23  ;;  %v4707_v61 = vld [vmem:[%s7151_s27 + $0x320] sm:$0xf0]  ;;  %v4454_v2 = vor.u32 %v6402_v57, %v4451_v58  ;;  %v4678_v15 = vor.u32 %v6458_v7, %v4675_v9 }
  0xb9   : > { %v6822_v5 = vld [vmem:[%s7151_s27 + $0xe1c] sm:$0xf0]  ;;  %3416 = vmatmul.bf16.vlgmr.msrb.gmra.mxu0 %v7327_v39  ;;  %v6530_v62 = vld [vmem:[%s7151_s27 + $0x504] sm:$0xf] }
  0xba   : > { %v6114_v20 = vor.u32 %v6822_v5, %v6113_v3  ;;  %v247_v29 = vld.sshfl [vmem:[#allocation1 + $0x28] sm:$0xff pattern:$0x73625140]  ;;  %3441 = vmatpush.bf16.msrb.mxu2 %v5858_v16  ;;  %3460 = vmatpush.bf16.msra.mxu0 %v4550_v21  ;;  %v4710_v3 = vor.u32 %v6466_v59, %v4707_v61 }
  0xbb   : > { %v7331_v42 = vpack.c.bf16 %v247_v29, %v247_v29  ;;  %v4963_v63 = vld [vmem:[%s7151_s27 + $0x520] sm:$0xf0] }
  0xbc   : > { %3454 = vmatpush.bf16.msrb.mxu3 %v6114_v20  ;;  %3473 = vmatpush.bf16.msra.mxu1 %v4806_v24  ;;  %v6594_v0 = vld [vmem:[%s7151_s27 + $0x704] sm:$0xf]  ;;  %v4966_v4 = vor.u32 %v6530_v62, %v4963_v63 }
  0xbd   : > { %3442 = vmatmul.bf16.vlgmr.msrb.gmra.mxu2 %v7323_v36  ;;  %3429 = vmatmul.bf16.vlgmr.msrb.gmra.mxu1 %v7331_v42  ;;  %v5219_v1 = vld [vmem:[%s7151_s27 + $0x720] sm:$0xf0] }
  0xbe   : > { %3486 = vmatpush.bf16.msra.mxu2 %v5062_v27  ;;  %3461 = vmatpush.bf16.msra.mxu0 %v4518_v41  ;;  %v6394_v5 = vld [vmem:[%s7151_s27 + $0xc4] sm:$0xf]  ;;  %v5222_v8 = vor.u32 %v6594_v0, %v5219_v1 }
  0xbf   : > { %3455 = vmatmul.bf16.vlgmr.msrb.gmra.mxu3 %v7329_v40  ;;  %v4931_v11 = vld [vmem:[%s7151_s27 + $0x4e0] sm:$0xf0]  ;;  %v4422_v14 = vor.u32 %v6394_v5, %v4419_v6 }
  0xc0   : > { %3499 = vmatpush.bf16.msra.mxu3 %v5318_v30  ;;  %3474 = vmatpush.bf16.msra.mxu1 %v4774_v43  ;;  %v5187_v13 = vld [vmem:[%s7151_s27 + $0x6e0] sm:$0xf0]  ;;  %v4934_v16 = vor.u32 %v6522_v10, %v4931_v11 }
  0xc1   : > { %v6386_v17 = vld [vmem:[%s7151_s27 + $0x84] sm:$0xf]  ;;  %v5190_v20 = vor.u32 %v6586_v12, %v5187_v13 }
  0xc2   : > { %3487 = vmatpush.bf16.msra.mxu2 %v5030_v44  ;;  %3462 = vmatpush.bf16.msra.mxu0 %v4486_v54  ;;  %v4387_v18 = vld [vmem:[%s7151_s27 + $0xa0] sm:$0xf0] }
  0xc3   : > { %v6450_v19 = vld [vmem:[%s7151_s27 + $0x284] sm:$0xf]  ;;  %v4390_v28 = vor.u32 %v6386_v17, %v4387_v18 }
  0xc4   : > { %3500 = vmatpush.bf16.msra.mxu3 %v5286_v48  ;;  %3475 = vmatpush.bf16.msra.mxu1 %v4742_v55  ;;  %v4643_v21 = vld [vmem:[%s7151_s27 + $0x2a0] sm:$0xf0] }
  0xc5   : > { %v6514_v22 = vld [vmem:[%s7151_s27 + $0x484] sm:$0xf]  ;;  %v4646_v29 = vor.u32 %v6450_v19, %v4643_v21 }
  0xc6   : > { %3488 = vmatpush.bf16.msra.mxu2 %v4998_v56  ;;  %3463 = vmatpush.bf16.msra.mxu0 %v4454_v2  ;;  %v4899_v23 = vld [vmem:[%s7151_s27 + $0x4a0] sm:$0xf0] }
  0xc7   : > { %v6578_v24 = vld [vmem:[%s7151_s27 + $0x684] sm:$0xf]  ;;  %v4902_v30 = vor.u32 %v6514_v22, %v4899_v23 }
  0xc8   : > { %3501 = vmatpush.bf16.msra.mxu3 %v5254_v60  ;;  %3476 = vmatpush.bf16.msra.mxu1 %v4710_v3  ;;  %v5155_v27 = vld [vmem:[%s7151_s27 + $0x6a0] sm:$0xf0] }
  0xc9   : > { %v6378_v33 = vld [vmem:[%s7151_s27 + $0x44] sm:$0xf]  ;;  %v5158_v37 = vor.u32 %v6578_v24, %v5155_v27 }
  0xca   : > { %3489 = vmatpush.bf16.msra.mxu2 %v4966_v4  ;;  %3464 = vmatpush.bf16.msra.mxu0 %v4422_v14  ;;  %v4355_v34 = vld [vmem:[%s7151_s27 + $0x60] sm:$0xf0] }
  0xcb   : > { %v6442_v35 = vld [vmem:[%s7151_s27 + $0x244] sm:$0xf]  ;;  %v4358_v46 = vor.u32 %v6378_v33, %v4355_v34 }
  0xcc   : > { %3502 = vmatpush.bf16.msra.mxu3 %v5222_v8  ;;  %3477 = vmatpush.bf16.msra.mxu1 %v4678_v15  ;;  %v4611_v38 = vld [vmem:[%s7151_s27 + $0x260] sm:$0xf0] }
  0xcd   : > { %v6506_v41 = vld [vmem:[%s7151_s27 + $0x444] sm:$0xf]  ;;  %v4614_v49 = vor.u32 %v6442_v35, %v4611_v38 }
  0xce   : > { %3490 = vmatpush.bf16.msra.mxu2 %v4934_v16  ;;  %v4867_v43 = vld [vmem:[%s7151_s27 + $0x460] sm:$0xf0]  ;;  %3465 = vmatpush.bf16.msra.mxu0 %v4390_v28 }
  0xcf   : > { %v6570_v44 = vld [vmem:[%s7151_s27 + $0x644] sm:$0xf]  ;;  %v4870_v50 = vor.u32 %v6506_v41, %v4867_v43 }
  0xd0   : > { %3503 = vmatpush.bf16.msra.mxu3 %v5190_v20  ;;  %v5123_v45 = vld [vmem:[%s7151_s27 + $0x660] sm:$0xf0]  ;;  %3478 = vmatpush.bf16.msra.mxu1 %v4646_v29 }
  0xd1   : > { %v6370_v47 = vld [vmem:[%s7151_s27 + $0x4] sm:$0xf]  ;;  %v5126_v54 = vor.u32 %v6570_v44, %v5123_v45 }
  0xd2   : > { %v4323_v48 = vld [vmem:[%s7151_s27 + $0x20] sm:$0xf0]  ;;  %3491 = vmatpush.bf16.msra.mxu2 %v4902_v30  ;;  %3466 = vmatpush.bf16.msra.mxu0 %v4358_v46 }
  0xd3   : > { %v6434_v51 = vld [vmem:[%s7151_s27 + $0x204] sm:$0xf]  ;;  %v4326_v61 = vor.u32 %v6370_v47, %v4323_v48 }
  0xd4   : > { %v4579_v52 = vld [vmem:[%s7151_s27 + $0x220] sm:$0xf0]  ;;  %3504 = vmatpush.bf16.msra.mxu3 %v5158_v37  ;;  %3479 = vmatpush.bf16.msra.mxu1 %v4614_v49 }
  0xd5   : > { %v6498_v53 = vld [vmem:[%s7151_s27 + $0x404] sm:$0xf]  ;;  %v4582_v1 = vor.u32 %v6434_v51, %v4579_v52 }
  0xd6   : > { %v4835_v55 = vld [vmem:[%s7151_s27 + $0x420] sm:$0xf0]  ;;  %3492 = vmatpush.bf16.msra.mxu2 %v4870_v50  ;;  %3467 = vmatpush.bf16.msra.mxu0 %v4326_v61 }
  0xd7   : > { %v6562_v56 = vld [vmem:[%s7151_s27 + $0x604] sm:$0xf]  ;;  %v4838_v2 = vor.u32 %v6498_v53, %v4835_v55 }
  0xd8   : > { %v5091_v57 = vld [vmem:[%s7151_s27 + $0x620] sm:$0xf0]  ;;  %3505 = vmatpush.bf16.msra.mxu3 %v5126_v54  ;;  %3480 = vmatpush.bf16.msra.mxu1 %v4582_v1 }
  0xd9   : > { %v6682_v58 = vld [vmem:[%s7151_s27 + $0x9c4] sm:$0xf]  ;;  %v5094_v5 = vor.u32 %v6562_v56, %v5091_v57  ;;  %3468 = vmatmul.bf16.vlgmr.msra.gmra.mxu0 %v7270_v26 }
  0xda   : > { %v5571_v59 = vld [vmem:[%s7151_s27 + $0x9e0] sm:$0xf0]  ;;  %3493 = vmatpush.bf16.msra.mxu2 %v4838_v2 }
  0xdb   : > { %v6746_v60 = vld [vmem:[%s7151_s27 + $0xbc4] sm:$0xf]  ;;  %v5574_v6 = vor.u32 %v6682_v58, %v5571_v59  ;;  %3481 = vmatmul.bf16.vlgmr.msra.gmra.mxu1 %v7276_v32 }
  0xdc   : > { %v5827_v62 = vld [vmem:[%s7151_s27 + $0xbe0] sm:$0xf0]  ;;  %3506 = vmatpush.bf16.msra.mxu3 %v5094_v5 }
  0xdd   : > { %v6810_v63 = vld [vmem:[%s7151_s27 + $0xdc4] sm:$0xf]  ;;  %v5830_v7 = vor.u32 %v6746_v60, %v5827_v62  ;;  %3512 = vmatpush.bf16.msrb.mxu0 %v5574_v6  ;;  %3494 = vmatmul.bf16.vlgmr.msra.gmra.mxu2 %v7268_v25 }
  0xde   : > { %v6083_v0 = vld [vmem:[%s7151_s27 + $0xde0] sm:$0xf0] }
  0xdf   : > { %v6874_v3 = vld [vmem:[%s7151_s27 + $0xfc4] sm:$0xf]  ;;  %v6086_v8 = vor.u32 %v6810_v63, %v6083_v0  ;;  %3525 = vmatpush.bf16.msrb.mxu1 %v5830_v7  ;;  %3507 = vmatmul.bf16.vlgmr.msra.gmra.mxu3 %v7274_v31 }
  0xe0   : > { %v6339_v4 = vld [vmem:[%s7151_s27 + $0xfe0] sm:$0xf0] }
  0xe1   : > { %v6674_v9 = vld [vmem:[%s7151_s27 + $0x984] sm:$0xf]  ;;  %v6342_v12 = vor.u32 %v6874_v3, %v6339_v4  ;;  %3538 = vmatpush.bf16.msrb.mxu2 %v6086_v8 }
  0xe2   : > { %v5539_v10 = vld [vmem:[%s7151_s27 + $0x9a0] sm:$0xf0] }
  0xe3   : > { %v6738_v11 = vld [vmem:[%s7151_s27 + $0xb84] sm:$0xf]  ;;  %v5542_v18 = vor.u32 %v6674_v9, %v5539_v10  ;;  %3551 = vmatpush.bf16.msrb.mxu3 %v6342_v12 }
  0xe4   : > { %v5795_v13 = vld [vmem:[%s7151_s27 + $0xba0] sm:$0xf0] }
  0xe5   : > { %v6802_v14 = vld [vmem:[%s7151_s27 + $0xd84] sm:$0xf]  ;;  %v5798_v19 = vor.u32 %v6738_v11, %v5795_v13  ;;  %3513 = vmatpush.bf16.msrb.mxu0 %v5542_v18 }
  0xe6   : > { %v6051_v15 = vld [vmem:[%s7151_s27 + $0xda0] sm:$0xf0] }
  0xe7   : > { %v6866_v16 = vld [vmem:[%s7151_s27 + $0xf84] sm:$0xf]  ;;  %v6054_v20 = vor.u32 %v6802_v14, %v6051_v15  ;;  %3526 = vmatpush.bf16.msrb.mxu1 %v5798_v19 }
  0xe8   : > { %v6307_v17 = vld [vmem:[%s7151_s27 + $0xfa0] sm:$0xf0] }
  0xe9   : > { %v6666_v21 = vld [vmem:[%s7151_s27 + $0x944] sm:$0xf]  ;;  %v6310_v24 = vor.u32 %v6866_v16, %v6307_v17  ;;  %3539 = vmatpush.bf16.msrb.mxu2 %v6054_v20 }
  0xea   : > { %v5507_v22 = vld [vmem:[%s7151_s27 + $0x960] sm:$0xf0] }
  0xeb   : > { %v6730_v23 = vld [vmem:[%s7151_s27 + $0xb44] sm:$0xf]  ;;  %v5510_v34 = vor.u32 %v6666_v21, %v5507_v22  ;;  %3552 = vmatpush.bf16.msrb.mxu3 %v6310_v24 }
  0xec   : > { %v5763_v27 = vld [vmem:[%s7151_s27 + $0xb60] sm:$0xf0] }
  0xed   : > { %v6794_v28 = vld [vmem:[%s7151_s27 + $0xd44] sm:$0xf]  ;;  %v5766_v35 = vor.u32 %v6730_v23, %v5763_v27  ;;  %3514 = vmatpush.bf16.msrb.mxu0 %v5510_v34 }
  0xee   : > { %v6019_v29 = vld [vmem:[%s7151_s27 + $0xd60] sm:$0xf0] }
  0xef   : > { %v6858_v30 = vld [vmem:[%s7151_s27 + $0xf44] sm:$0xf]  ;;  %v6022_v37 = vor.u32 %v6794_v28, %v6019_v29  ;;  %3527 = vmatpush.bf16.msrb.mxu1 %v5766_v35 }
  0xf0   : > { %v6275_v33 = vld [vmem:[%s7151_s27 + $0xf60] sm:$0xf0] }
  0xf1   : > { %v6658_v38 = vld [vmem:[%s7151_s27 + $0x904] sm:$0xf]  ;;  %v6278_v44 = vor.u32 %v6858_v30, %v6275_v33  ;;  %3540 = vmatpush.bf16.msrb.mxu2 %v6022_v37 }
  0xf2   : > { %v5475_v41 = vld [vmem:[%s7151_s27 + $0x920] sm:$0xf0] }
  0xf3   : > { %v6722_v43 = vld [vmem:[%s7151_s27 + $0xb04] sm:$0xf]  ;;  %v5478_v50 = vor.u32 %v6658_v38, %v5475_v41  ;;  %3553 = vmatpush.bf16.msrb.mxu3 %v6278_v44  ;;  %v4553_v41 = vld [vmem:[%s7151_s27 + $0x1c8] sm:$0xf] }
  0xf4   : > { %v5731_v45 = vld [vmem:[%s7151_s27 + $0xb20] sm:$0xf0]  ;;  %v4809_v44 = vld [vmem:[%s7151_s27 + $0x3c8] sm:$0xf] }
  0xf5   : > { %v6786_v46 = vld [vmem:[%s7151_s27 + $0xd04] sm:$0xf]  ;;  %v5734_v51 = vor.u32 %v6722_v43, %v5731_v45  ;;  %3515 = vmatpush.bf16.msrb.mxu0 %v5478_v50  ;;  %v6431_v43 = vld [vmem:[%s7151_s27 + $0x1e4] sm:$0xf0] }
  0xf6   : > { %v5987_v47 = vld [vmem:[%s7151_s27 + $0xd20] sm:$0xf0] }
  0xf7   : > { %v6850_v48 = vld [vmem:[%s7151_s27 + $0xf04] sm:$0xf]  ;;  %v5990_v52 = vor.u32 %v6786_v46, %v5987_v47  ;;  %3528 = vmatpush.bf16.msrb.mxu1 %v5734_v51  ;;  %v6495_v46 = vld [vmem:[%s7151_s27 + $0x3e4] sm:$0xf0] }
  0xf8   : > { %v6243_v49 = vld [vmem:[%s7151_s27 + $0xf20] sm:$0xf0]  ;;  %v5065_v47 = vld [vmem:[%s7151_s27 + $0x5c8] sm:$0xf] }
  0xf9   : > { %v6650_v53 = vld [vmem:[%s7151_s27 + $0x8c4] sm:$0xf]  ;;  %v6246_v56 = vor.u32 %v6850_v48, %v6243_v49  ;;  %3541 = vmatpush.bf16.msrb.mxu2 %v5990_v52  ;;  %v6559_v48 = vld [vmem:[%s7151_s27 + $0x5e4] sm:$0xf0] }
  0xfa   : > { %v5443_v54 = vld [vmem:[%s7151_s27 + $0x8e0] sm:$0xf0]  ;;  %v5321_v51 = vld [vmem:[%s7151_s27 + $0x7c8] sm:$0xf] }
  0xfb   : > { %v6714_v55 = vld [vmem:[%s7151_s27 + $0xac4] sm:$0xf]  ;;  %v5446_v62 = vor.u32 %v6650_v53, %v5443_v54  ;;  %3554 = vmatpush.bf16.msrb.mxu3 %v6246_v56  ;;  %v6623_v52 = vld [vmem:[%s7151_s27 + $0x7e4] sm:$0xf0]  ;;  %v4554_v54 = vor.u32 %v6431_v43, %v4553_v41  ;;  %v5066_v56 = vor.u32 %v6559_v48, %v5065_v47 }
  0xfc   : > { %v5699_v57 = vld [vmem:[%s7151_s27 + $0xae0] sm:$0xf0]  ;;  %v4937_v41 = vld [vmem:[%s7151_s27 + $0x4c8] sm:$0xf] }
  0xfd   : > { %v6778_v58 = vld [vmem:[%s7151_s27 + $0xcc4] sm:$0xf]  ;;  %v5702_v63 = vor.u32 %v6714_v55, %v5699_v57  ;;  %3516 = vmatpush.bf16.msrb.mxu0 %v5446_v62  ;;  %v4810_v55 = vor.u32 %v6495_v46, %v4809_v44  ;;  %v4521_v57 = vld [vmem:[%s7151_s27 + $0x188] sm:$0xf] }
  0xfe   : > { %v5955_v59 = vld [vmem:[%s7151_s27 + $0xce0] sm:$0xf0]  ;;  %v5033_v62 = vld [vmem:[%s7151_s27 + $0x588] sm:$0xf] }
  0xff   : > { %v6842_v60 = vld [vmem:[%s7151_s27 + $0xec4] sm:$0xf]  ;;  %v5958_v0 = vor.u32 %v6778_v58, %v5955_v59  ;;  %3529 = vmatpush.bf16.msrb.mxu1 %v5702_v63  ;;  %v6423_v58 = vld [vmem:[%s7151_s27 + $0x1a4] sm:$0xf0] }
 0x100   : > { %v6211_v61 = vld [vmem:[%s7151_s27 + $0xee0] sm:$0xf0]  ;;  %v4777_v59 = vld [vmem:[%s7151_s27 + $0x388] sm:$0xf] }
 0x101   : > { %v6642_v1 = vld [vmem:[%s7151_s27 + $0x884] sm:$0xf]  ;;  %v6214_v4 = vor.u32 %v6842_v60, %v6211_v61  ;;  %3542 = vmatpush.bf16.msrb.mxu2 %v5958_v0  ;;  %v5322_v60 = vor.u32 %v6623_v52, %v5321_v51  ;;  %v6487_v61 = vld [vmem:[%s7151_s27 + $0x3a4] sm:$0xf0] }
 0x102   : > { %v5411_v2 = vld [vmem:[%s7151_s27 + $0x8a0] sm:$0xf0]  ;;  %v6551_v63 = vld [vmem:[%s7151_s27 + $0x5a4] sm:$0xf0] }
 0x103   : > { %v6706_v3 = vld [vmem:[%s7151_s27 + $0xa84] sm:$0xf]  ;;  %v5414_v10 = vor.u32 %v6642_v1, %v5411_v2  ;;  %3555 = vmatpush.bf16.msrb.mxu3 %v6214_v4  ;;  %v5289_v0 = vld [vmem:[%s7151_s27 + $0x788] sm:$0xf]  ;;  %v4522_v2 = vor.u32 %v6423_v58, %v4521_v57  ;;  %v5034_v4 = vor.u32 %v6551_v63, %v5033_v62 }
 0x104   : > { %v5667_v5 = vld [vmem:[%s7151_s27 + $0xaa0] sm:$0xf0]  ;;  %v6615_v1 = vld [vmem:[%s7151_s27 + $0x7a4] sm:$0xf0] }
 0x105   : > { %v6770_v6 = vld [vmem:[%s7151_s27 + $0xc84] sm:$0xf]  ;;  %v5670_v11 = vor.u32 %v6706_v3, %v5667_v5  ;;  %3517 = vmatpush.bf16.msrb.mxu0 %v5414_v10  ;;  %v4778_v3 = vor.u32 %v6487_v61, %v4777_v59  ;;  %v4489_v5 = vld [vmem:[%s7151_s27 + $0x148] sm:$0xf] }
 0x106   : > { %v5923_v7 = vld [vmem:[%s7151_s27 + $0xca0] sm:$0xf0]  ;;  %v5001_v10 = vld [vmem:[%s7151_s27 + $0x548] sm:$0xf] }
 0x107   : > { %v6834_v8 = vld [vmem:[%s7151_s27 + $0xe84] sm:$0xf]  ;;  %v5926_v12 = vor.u32 %v6770_v6, %v5923_v7  ;;  %3530 = vmatpush.bf16.msrb.mxu1 %v5670_v11  ;;  %v6415_v6 = vld [vmem:[%s7151_s27 + $0x164] sm:$0xf0] }
 0x108   : > { %v6179_v9 = vld [vmem:[%s7151_s27 + $0xea0] sm:$0xf0]  ;;  %v4745_v7 = vld [vmem:[%s7151_s27 + $0x348] sm:$0xf] }
 0x109   : > { %v6634_v13 = vld [vmem:[%s7151_s27 + $0x844] sm:$0xf]  ;;  %v6182_v16 = vor.u32 %v6834_v8, %v6179_v9  ;;  %3543 = vmatpush.bf16.msrb.mxu2 %v5926_v12  ;;  %v5290_v8 = vor.u32 %v6615_v1, %v5289_v0  ;;  %v6479_v9 = vld [vmem:[%s7151_s27 + $0x364] sm:$0xf0] }
 0x10a   : > { %v5379_v14 = vld [vmem:[%s7151_s27 + $0x860] sm:$0xf0]  ;;  %v6543_v11 = vld [vmem:[%s7151_s27 + $0x564] sm:$0xf0] }
 0x10b   : > { %v6698_v15 = vld [vmem:[%s7151_s27 + $0xa44] sm:$0xf]  ;;  %v5382_v22 = vor.u32 %v6634_v13, %v5379_v14  ;;  %3556 = vmatpush.bf16.msrb.mxu3 %v6182_v16  ;;  %v5257_v12 = vld [vmem:[%s7151_s27 + $0x748] sm:$0xf]  ;;  %v4490_v14 = vor.u32 %v6415_v6, %v4489_v5  ;;  %v5002_v16 = vor.u32 %v6543_v11, %v5001_v10 }
 0x10c   : > { %v5635_v17 = vld [vmem:[%s7151_s27 + $0xa60] sm:$0xf0]  ;;  %v6607_v13 = vld [vmem:[%s7151_s27 + $0x764] sm:$0xf0] }
 0x10d   : > { %v6762_v18 = vld [vmem:[%s7151_s27 + $0xc44] sm:$0xf]  ;;  %v5638_v27 = vor.u32 %v6698_v15, %v5635_v17  ;;  %3518 = vmatpush.bf16.msrb.mxu0 %v5382_v22  ;;  %v4746_v15 = vor.u32 %v6479_v9, %v4745_v7  ;;  %v4457_v17 = vld [vmem:[%s7151_s27 + $0x108] sm:$0xf] }
 0x10e   : > { %v5891_v19 = vld [vmem:[%s7151_s27 + $0xc60] sm:$0xf0]  ;;  %v4969_v22 = vld [vmem:[%s7151_s27 + $0x508] sm:$0xf] }
 0x10f   : > { %v6826_v20 = vld [vmem:[%s7151_s27 + $0xe44] sm:$0xf]  ;;  %v5894_v28 = vor.u32 %v6762_v18, %v5891_v19  ;;  %3531 = vmatpush.bf16.msrb.mxu1 %v5638_v27  ;;  %v6407_v18 = vld [vmem:[%s7151_s27 + $0x124] sm:$0xf0] }
 0x110   : > { %v6147_v21 = vld [vmem:[%s7151_s27 + $0xe60] sm:$0xf0]  ;;  %v4713_v19 = vld [vmem:[%s7151_s27 + $0x308] sm:$0xf] }
 0x111   : > { %v6626_v23 = vld [vmem:[%s7151_s27 + $0x804] sm:$0xf]  ;;  %v6150_v34 = vor.u32 %v6826_v20, %v6147_v21  ;;  %3544 = vmatpush.bf16.msrb.mxu2 %v5894_v28  ;;  %v5258_v20 = vor.u32 %v6607_v13, %v5257_v12  ;;  %v6471_v21 = vld [vmem:[%s7151_s27 + $0x324] sm:$0xf0]  ;;  %v4458_v28 = vor.u32 %v6407_v18, %v4457_v17 }
 0x112   : > { %v5347_v24 = vld [vmem:[%s7151_s27 + $0x820] sm:$0xf0]  ;;  %v6599_v27 = vld [vmem:[%s7151_s27 + $0x724] sm:$0xf0] }
 0x113   : > { %v6690_v29 = vld [vmem:[%s7151_s27 + $0xa04] sm:$0xf]  ;;  %v5350_v45 = vor.u32 %v6626_v23, %v5347_v24  ;;  %3557 = vmatpush.bf16.msrb.mxu3 %v6150_v34  ;;  %v6535_v23 = vld [vmem:[%s7151_s27 + $0x524] sm:$0xf0] }
 0x114   : > { %v5603_v30 = vld [vmem:[%s7151_s27 + $0xa20] sm:$0xf0]  ;;  %v5225_v24 = vld [vmem:[%s7151_s27 + $0x708] sm:$0xf] }
 0x115   : > { %v6754_v33 = vld [vmem:[%s7151_s27 + $0xc04] sm:$0xf]  ;;  %v5606_v49 = vor.u32 %v6690_v29, %v5603_v30  ;;  %3519 = vmatpush.bf16.msrb.mxu0 %v5350_v45  ;;  %v4714_v29 = vor.u32 %v6471_v21, %v4713_v19  ;;  %v4970_v30 = vor.u32 %v6535_v23, %v4969_v22  ;;  %v6399_v34 = vld [vmem:[%s7151_s27 + $0xe4] sm:$0xf0] }
 0x116   : > { %v5859_v35 = vld [vmem:[%s7151_s27 + $0xc20] sm:$0xf0]  ;;  %v6527_v43 = vld [vmem:[%s7151_s27 + $0x4e4] sm:$0xf0] }
 0x117   : > { %v6818_v37 = vld [vmem:[%s7151_s27 + $0xe04] sm:$0xf]  ;;  %v5862_v50 = vor.u32 %v6754_v33, %v5859_v35  ;;  %3532 = vmatpush.bf16.msrb.mxu1 %v5606_v49  ;;  %v4425_v33 = vld [vmem:[%s7151_s27 + $0xc8] sm:$0xf]  ;;  %v4938_v48 = vor.u32 %v6527_v43, %v4937_v41 }
 0x118   : > { %v6115_v38 = vld [vmem:[%s7151_s27 + $0xe20] sm:$0xf0]  ;;  %3520 = vmatmul.bf16.vlgmr.msrb.gmra.mxu0 %v7327_v39  ;;  %v4681_v35 = vld [vmem:[%s7151_s27 + $0x2c8] sm:$0xf]  ;;  %v4426_v46 = vor.u32 %v6399_v34, %v4425_v33 }
 0x119   : > { %v6118_v53 = vor.u32 %v6818_v37, %v6115_v38  ;;  %3545 = vmatpush.bf16.msrb.mxu2 %v5862_v50  ;;  %3564 = vmatpush.bf16.msra.mxu0 %v4554_v54  ;;  %v5226_v37 = vor.u32 %v6599_v27, %v5225_v24  ;;  %v6463_v38 = vld [vmem:[%s7151_s27 + $0x2e4] sm:$0xf0] }
 0x11a   : > { %3533 = vmatmul.bf16.vlgmr.msrb.gmra.mxu1 %v7331_v42  ;;  %v5193_v44 = vld [vmem:[%s7151_s27 + $0x6c8] sm:$0xf]  ;;  %v4682_v47 = vor.u32 %v6463_v38, %v4681_v35 }
 0x11b   : > { %3558 = vmatpush.bf16.msrb.mxu3 %v6118_v53  ;;  %3577 = vmatpush.bf16.msra.mxu1 %v4810_v55  ;;  %v6591_v45 = vld [vmem:[%s7151_s27 + $0x6e4] sm:$0xf0] }
 0x11c   : > { %3546 = vmatmul.bf16.vlgmr.msrb.gmra.mxu2 %v7323_v36  ;;  %v4393_v49 = vld [vmem:[%s7151_s27 + $0x88] sm:$0xf]  ;;  %v5194_v52 = vor.u32 %v6591_v45, %v5193_v44 }
 0x11d   : > { %3590 = vmatpush.bf16.msra.mxu2 %v5066_v56  ;;  %3565 = vmatpush.bf16.msra.mxu0 %v4522_v2  ;;  %v6391_v50 = vld [vmem:[%s7151_s27 + $0xa4] sm:$0xf0] }
 0x11e   : > { %3559 = vmatmul.bf16.vlgmr.msrb.gmra.mxu3 %v7329_v40  ;;  %v4649_v51 = vld [vmem:[%s7151_s27 + $0x288] sm:$0xf]  ;;  %v4394_v58 = vor.u32 %v6391_v50, %v4393_v49 }
 0x11f   : > { %3603 = vmatpush.bf16.msra.mxu3 %v5322_v60  ;;  %3578 = vmatpush.bf16.msra.mxu1 %v4778_v3  ;;  %v6455_v53 = vld [vmem:[%s7151_s27 + $0x2a4] sm:$0xf0] }
 0x120   : > { %v4905_v54 = vld [vmem:[%s7151_s27 + $0x488] sm:$0xf]  ;;  %v4650_v59 = vor.u32 %v6455_v53, %v4649_v51 }
 0x121   : > { %3591 = vmatpush.bf16.msra.mxu2 %v5034_v4  ;;  %3566 = vmatpush.bf16.msra.mxu0 %v4490_v14  ;;  %v6519_v55 = vld [vmem:[%s7151_s27 + $0x4a4] sm:$0xf0] }
 0x122   : > { %v5161_v56 = vld [vmem:[%s7151_s27 + $0x688] sm:$0xf]  ;;  %v4906_v60 = vor.u32 %v6519_v55, %v4905_v54 }
 0x123   : > { %3604 = vmatpush.bf16.msra.mxu3 %v5290_v8  ;;  %3579 = vmatpush.bf16.msra.mxu1 %v4746_v15  ;;  %v6583_v57 = vld [vmem:[%s7151_s27 + $0x6a4] sm:$0xf0] }
 0x124   : > { %v4361_v61 = vld [vmem:[%s7151_s27 + $0x48] sm:$0xf]  ;;  %v5162_v0 = vor.u32 %v6583_v57, %v5161_v56 }
 0x125   : > { %3592 = vmatpush.bf16.msra.mxu2 %v5002_v16  ;;  %3567 = vmatpush.bf16.msra.mxu0 %v4458_v28  ;;  %v6383_v62 = vld [vmem:[%s7151_s27 + $0x64] sm:$0xf0] }
 0x126   : > { %v4617_v63 = vld [vmem:[%s7151_s27 + $0x248] sm:$0xf]  ;;  %v4362_v6 = vor.u32 %v6383_v62, %v4361_v61 }
 0x127   : > { %3605 = vmatpush.bf16.msra.mxu3 %v5258_v20  ;;  %3580 = vmatpush.bf16.msra.mxu1 %v4714_v29  ;;  %v6447_v1 = vld [vmem:[%s7151_s27 + $0x264] sm:$0xf0] }
 0x128   : > { %v4873_v2 = vld [vmem:[%s7151_s27 + $0x448] sm:$0xf]  ;;  %v4618_v9 = vor.u32 %v6447_v1, %v4617_v63 }
 0x129   : > { %3593 = vmatpush.bf16.msra.mxu2 %v4970_v30  ;;  %3568 = vmatpush.bf16.msra.mxu0 %v4426_v46  ;;  %v6511_v3 = vld [vmem:[%s7151_s27 + $0x464] sm:$0xf0] }
 0x12a   : > { %v5129_v4 = vld [vmem:[%s7151_s27 + $0x648] sm:$0xf]  ;;  %v4874_v10 = vor.u32 %v6511_v3, %v4873_v2 }
 0x12b   : > { %3606 = vmatpush.bf16.msra.mxu3 %v5226_v37  ;;  %3581 = vmatpush.bf16.msra.mxu1 %v4682_v47  ;;  %v6575_v5 = vld [vmem:[%s7151_s27 + $0x664] sm:$0xf0] }
 0x12c   : > { %v4329_v7 = vld [vmem:[%s7151_s27 + $0x8] sm:$0xf]  ;;  %v5130_v14 = vor.u32 %v6575_v5, %v5129_v4 }
 0x12d   : > { %3594 = vmatpush.bf16.msra.mxu2 %v4938_v48  ;;  %3569 = vmatpush.bf16.msra.mxu0 %v4394_v58  ;;  %v6375_v8 = vld [vmem:[%s7151_s27 + $0x24] sm:$0xf0] }
 0x12e   : > { %v4585_v11 = vld [vmem:[%s7151_s27 + $0x208] sm:$0xf]  ;;  %v4330_v21 = vor.u32 %v6375_v8, %v4329_v7 }
 0x12f   : > { %3607 = vmatpush.bf16.msra.mxu3 %v5194_v52  ;;  %3582 = vmatpush.bf16.msra.mxu1 %v4650_v59  ;;  %v6439_v12 = vld [vmem:[%s7151_s27 + $0x224] sm:$0xf0] }
 0x130   : > { %v4841_v13 = vld [vmem:[%s7151_s27 + $0x408] sm:$0xf]  ;;  %v4586_v27 = vor.u32 %v6439_v12, %v4585_v11 }
 0x131   : > { %3595 = vmatpush.bf16.msra.mxu2 %v4906_v60  ;;  %v6503_v15 = vld [vmem:[%s7151_s27 + $0x424] sm:$0xf0]  ;;  %3570 = vmatpush.bf16.msra.mxu0 %v4362_v6 }
 0x132   : > { %v5097_v16 = vld [vmem:[%s7151_s27 + $0x608] sm:$0xf]  ;;  %v4842_v28 = vor.u32 %v6503_v15, %v4841_v13 }
 0x133   : > { %3608 = vmatpush.bf16.msra.mxu3 %v5162_v0  ;;  %v6567_v17 = vld [vmem:[%s7151_s27 + $0x624] sm:$0xf0]  ;;  %3583 = vmatpush.bf16.msra.mxu1 %v4618_v9 }
 0x134   : > { %v5577_v18 = vld [vmem:[%s7151_s27 + $0x9c8] sm:$0xf]  ;;  %v5098_v33 = vor.u32 %v6567_v17, %v5097_v16 }
 0x135   : > { %v6687_v19 = vld [vmem:[%s7151_s27 + $0x9e4] sm:$0xf0]  ;;  %3596 = vmatpush.bf16.msra.mxu2 %v4874_v10  ;;  %3571 = vmatpush.bf16.msra.mxu0 %v4330_v21 }
 0x136   : > { %v5833_v20 = vld [vmem:[%s7151_s27 + $0xbc8] sm:$0xf]  ;;  %v5578_v34 = vor.u32 %v6687_v19, %v5577_v18 }
 0x137   : > { %v6751_v22 = vld [vmem:[%s7151_s27 + $0xbe4] sm:$0xf0]  ;;  %3609 = vmatpush.bf16.msra.mxu3 %v5130_v14  ;;  %3584 = vmatpush.bf16.msra.mxu1 %v4586_v27 }
 0x138   : > { %v6089_v23 = vld [vmem:[%s7151_s27 + $0xdc8] sm:$0xf]  ;;  %v5834_v35 = vor.u32 %v6751_v22, %v5833_v20  ;;  %3572 = vmatmul.bf16.vlgmr.msra.gmra.mxu0 %v7270_v26 }
 0x139   : > { %v6815_v24 = vld [vmem:[%s7151_s27 + $0xde4] sm:$0xf0]  ;;  %3597 = vmatpush.bf16.msra.mxu2 %v4842_v28  ;;  %3616 = vmatpush.bf16.msrb.mxu0 %v5578_v34 }
 0x13a   : > { %v6345_v29 = vld [vmem:[%s7151_s27 + $0xfc8] sm:$0xf]  ;;  %v6090_v37 = vor.u32 %v6815_v24, %v6089_v23  ;;  %3585 = vmatmul.bf16.vlgmr.msra.gmra.mxu1 %v7276_v32 }
 0x13b   : > { %v6879_v30 = vld [vmem:[%s7151_s27 + $0xfe4] sm:$0xf0]  ;;  %3610 = vmatpush.bf16.msra.mxu3 %v5098_v33  ;;  %3629 = vmatpush.bf16.msrb.mxu1 %v5834_v35 }
 0x13c   : > { %v5545_v38 = vld [vmem:[%s7151_s27 + $0x988] sm:$0xf]  ;;  %v6346_v44 = vor.u32 %v6879_v30, %v6345_v29  ;;  %3598 = vmatmul.bf16.vlgmr.msra.gmra.mxu2 %v7268_v25 }
 0x13d   : > { %v6679_v41 = vld [vmem:[%s7151_s27 + $0x9a4] sm:$0xf0]  ;;  %3642 = vmatpush.bf16.msrb.mxu2 %v6090_v37 }
 0x13e   : > { %v5801_v43 = vld [vmem:[%s7151_s27 + $0xb88] sm:$0xf]  ;;  %v5546_v50 = vor.u32 %v6679_v41, %v5545_v38  ;;  %3611 = vmatmul.bf16.vlgmr.msra.gmra.mxu3 %v7274_v31 }
 0x13f   : > { %v6743_v45 = vld [vmem:[%s7151_s27 + $0xba4] sm:$0xf0]  ;;  %3655 = vmatpush.bf16.msrb.mxu3 %v6346_v44 }
 0x140   : > { %v6057_v46 = vld [vmem:[%s7151_s27 + $0xd88] sm:$0xf]  ;;  %v5802_v51 = vor.u32 %v6743_v45, %v5801_v43  ;;  %3617 = vmatpush.bf16.msrb.mxu0 %v5546_v50 }
 0x141   : > { %v6807_v47 = vld [vmem:[%s7151_s27 + $0xda4] sm:$0xf0] }
 0x142   : > { %v6313_v48 = vld [vmem:[%s7151_s27 + $0xf88] sm:$0xf]  ;;  %v6058_v52 = vor.u32 %v6807_v47, %v6057_v46  ;;  %3630 = vmatpush.bf16.msrb.mxu1 %v5802_v51 }
 0x143   : > { %v6871_v49 = vld [vmem:[%s7151_s27 + $0xfa4] sm:$0xf0] }
 0x144   : > { %v5513_v53 = vld [vmem:[%s7151_s27 + $0x948] sm:$0xf]  ;;  %v6314_v56 = vor.u32 %v6871_v49, %v6313_v48  ;;  %3643 = vmatpush.bf16.msrb.mxu2 %v6058_v52 }
 0x145   : > { %v6671_v54 = vld [vmem:[%s7151_s27 + $0x964] sm:$0xf0] }
 0x146   : > { %v5769_v55 = vld [vmem:[%s7151_s27 + $0xb48] sm:$0xf]  ;;  %v5514_v62 = vor.u32 %v6671_v54, %v5513_v53  ;;  %3656 = vmatpush.bf16.msrb.mxu3 %v6314_v56  ;;  %v3365_v56 = vpop.f32.mrf.mxu0 }
 0x147   : > { %v6735_v57 = vld [vmem:[%s7151_s27 + $0xb64] sm:$0xf0] }
 0x148   : > { %v6025_v58 = vld [vmem:[%s7151_s27 + $0xd48] sm:$0xf]  ;;  %v5770_v63 = vor.u32 %v6735_v57, %v5769_v55  ;;  %3618 = vmatpush.bf16.msrb.mxu0 %v5514_v62 }
 0x149   : > { %v6799_v59 = vld [vmem:[%s7151_s27 + $0xd64] sm:$0xf0] }
 0x14a   : > { %v6281_v60 = vld [vmem:[%s7151_s27 + $0xf48] sm:$0xf]  ;;  %v6026_v0 = vor.u32 %v6799_v59, %v6025_v58  ;;  %3631 = vmatpush.bf16.msrb.mxu1 %v5770_v63 }
 0x14b   : > { %v6863_v61 = vld [vmem:[%s7151_s27 + $0xf64] sm:$0xf0] }
 0x14c   : > { %v5481_v1 = vld [vmem:[%s7151_s27 + $0x908] sm:$0xf]  ;;  %v6282_v4 = vor.u32 %v6863_v61, %v6281_v60  ;;  %3644 = vmatpush.bf16.msrb.mxu2 %v6026_v0  ;;  %v3378_v61 = vpop.f32.mrf.mxu1 }
 0x14d   : > { %v6663_v2 = vld [vmem:[%s7151_s27 + $0x924] sm:$0xf0] }
 0x14e   : > { %v5737_v3 = vld [vmem:[%s7151_s27 + $0xb08] sm:$0xf]  ;;  %v5482_v10 = vor.u32 %v6663_v2, %v5481_v1  ;;  %3657 = vmatpush.bf16.msrb.mxu3 %v6282_v4 }
 0x14f   : > { %v6727_v5 = vld [vmem:[%s7151_s27 + $0xb24] sm:$0xf0] }
 0x150   : > { %v5993_v6 = vld [vmem:[%s7151_s27 + $0xd08] sm:$0xf]  ;;  %v5738_v11 = vor.u32 %v6727_v5, %v5737_v3  ;;  %3619 = vmatpush.bf16.msrb.mxu0 %v5482_v10  ;;  %v6491_v10 = vld [vmem:[%s7151_s27 + $0x3cc] sm:$0xf] }
 0x151   : > { %v6791_v7 = vld [vmem:[%s7151_s27 + $0xd24] sm:$0xf0] }
 0x152   : > { %v6249_v8 = vld [vmem:[%s7151_s27 + $0xf08] sm:$0xf]  ;;  %v5994_v12 = vor.u32 %v6791_v7, %v5993_v6  ;;  %3632 = vmatpush.bf16.msrb.mxu1 %v5738_v11  ;;  %v3391_v11 = vpop.f32.mrf.mxu2 }
 0x153   : > { %v6855_v9 = vld [vmem:[%s7151_s27 + $0xf24] sm:$0xf0] }
 0x154   : > { %v5449_v13 = vld [vmem:[%s7151_s27 + $0x8c8] sm:$0xf]  ;;  %v6250_v16 = vor.u32 %v6855_v9, %v6249_v8  ;;  %3645 = vmatpush.bf16.msrb.mxu2 %v5994_v12  ;;  %v6427_v8 = vld [vmem:[%s7151_s27 + $0x1cc] sm:$0xf] }
 0x155   : > { %v6655_v14 = vld [vmem:[%s7151_s27 + $0x8e4] sm:$0xf0]  ;;  %v4555_v9 = vld [vmem:[%s7151_s27 + $0x1e8] sm:$0xf0] }
 0x156   : > { %v5705_v15 = vld [vmem:[%s7151_s27 + $0xac8] sm:$0xf]  ;;  %v5450_v22 = vor.u32 %v6655_v14, %v5449_v13  ;;  %3658 = vmatpush.bf16.msrb.mxu3 %v6250_v16  ;;  %v4811_v13 = vld [vmem:[%s7151_s27 + $0x3e8] sm:$0xf0] }
 0x157   : > { %v6719_v17 = vld [vmem:[%s7151_s27 + $0xae4] sm:$0xf0]  ;;  %v6555_v14 = vld [vmem:[%s7151_s27 + $0x5cc] sm:$0xf] }
 0x158   : > { %v5961_v18 = vld [vmem:[%s7151_s27 + $0xcc8] sm:$0xf]  ;;  %v5706_v24 = vor.u32 %v6719_v17, %v5705_v15  ;;  %3620 = vmatpush.bf16.msrb.mxu0 %v5450_v22  ;;  %v5067_v15 = vld [vmem:[%s7151_s27 + $0x5e8] sm:$0xf0]  ;;  %v4558_v22 = vor.u32 %v6427_v8, %v4555_v9 }
 0x159   : > { %v6783_v19 = vld [vmem:[%s7151_s27 + $0xce4] sm:$0xf0]  ;;  %v5227_v8 = vld [vmem:[%s7151_s27 + $0x728] sm:$0xf0] }
 0x15a   : > { %v6217_v20 = vld [vmem:[%s7151_s27 + $0xec8] sm:$0xf]  ;;  %v5962_v27 = vor.u32 %v6783_v19, %v5961_v18  ;;  %3633 = vmatpush.bf16.msrb.mxu1 %v5706_v24  ;;  %v6619_v19 = vld [vmem:[%s7151_s27 + $0x7cc] sm:$0xf]  ;;  %v4814_v24 = vor.u32 %v6491_v10, %v4811_v13 }
 0x15b   : > { %v6847_v21 = vld [vmem:[%s7151_s27 + $0xee4] sm:$0xf0]  ;;  %v6395_v13 = vld [vmem:[%s7151_s27 + $0xcc] sm:$0xf] }
 0x15c   : > { %v5417_v23 = vld [vmem:[%s7151_s27 + $0x888] sm:$0xf]  ;;  %v6218_v33 = vor.u32 %v6847_v21, %v6217_v20  ;;  %3646 = vmatpush.bf16.msrb.mxu2 %v5962_v27  ;;  %v5323_v20 = vld [vmem:[%s7151_s27 + $0x7e8] sm:$0xf0]  ;;  %v5070_v27 = vor.u32 %v6555_v14, %v5067_v15 }
 0x15d   : > { %v6647_v28 = vld [vmem:[%s7151_s27 + $0x8a4] sm:$0xf0]  ;;  %v4427_v14 = vld [vmem:[%s7151_s27 + $0xe8] sm:$0xf0] }
 0x15e   : > { %v5673_v29 = vld [vmem:[%s7151_s27 + $0xa88] sm:$0xf]  ;;  %v5418_v43 = vor.u32 %v6647_v28, %v5417_v23  ;;  %3659 = vmatpush.bf16.msrb.mxu3 %v6218_v33  ;;  %v3404_v23 = vpop.f32.mrf.mxu3  ;;  %v6419_v28 = vld [vmem:[%s7151_s27 + $0x18c] sm:$0xf] }
 0x15f   : > { %v7569_v30 = vld [vmem:[%s7157_s5] sm:$0xff] }
 0x160   : > { %v6711_v34 = vld [vmem:[%s7151_s27 + $0xaa4] sm:$0xf0]  ;;  %v780_v44 = vperm.slane %v7569_v30, 0  ;;  %3621 = vmatpush.bf16.msrb.mxu0 %v5418_v43  ;;  %v6483_v33 = vld [vmem:[%s7151_s27 + $0x38c] sm:$0xf] }
 0x161   : > { %v5929_v35 = vld [vmem:[%s7151_s27 + $0xc88] sm:$0xf]  ;;  %v5674_v45 = vor.u32 %v6711_v34, %v5673_v29  ;;  %v4523_v29 = vld [vmem:[%s7151_s27 + $0x1a8] sm:$0xf0] }
 0x162   : > { %v6775_v37 = vld [vmem:[%s7151_s27 + $0xca4] sm:$0xf0]  ;;  %v3366_v60 = vadd.f32 %v3365_v56, %v780_v44  ;;  %v5035_v43 = vld [vmem:[%s7151_s27 + $0x5a8] sm:$0xf0]  ;;  %v3380_v44 = vpop.f32.mrf.mxu1 }
 0x163   : > { %v6185_v38 = vld [vmem:[%s7151_s27 + $0xe88] sm:$0xf]  ;;  %v5930_v46 = vor.u32 %v6775_v37, %v5929_v35  ;;  %3634 = vmatpush.bf16.msrb.mxu1 %v5674_v45  ;;  %v3367_v35 = vpop.f32.mrf.mxu0  ;;  %v5326_v37 = vor.u32 %v6619_v19, %v5323_v20  ;;  %v6611_v45 = vld [vmem:[%s7151_s27 + $0x78c] sm:$0xf] }
 0x164   : > { %v6839_v41 = vld [vmem:[%s7151_s27 + $0xea4] sm:$0xf0]  ;;  %v3379_v7 = vadd.f32 %v3378_v61, %v3366_v60  ;;  %v6539_v56 = vld [vmem:[%s7151_s27 + $0x54c] sm:$0xf] }
 0x165   : > { %v5385_v47 = vld [vmem:[%s7151_s27 + $0x848] sm:$0xf]  ;;  %v6186_v50 = vor.u32 %v6839_v41, %v6185_v38  ;;  %3647 = vmatpush.bf16.msrb.mxu2 %v5930_v46  ;;  %v4779_v38 = vld [vmem:[%s7151_s27 + $0x3a8] sm:$0xf0] }
 0x166   : > { %v6639_v48 = vld [vmem:[%s7151_s27 + $0x864] sm:$0xf0]  ;;  %v3392_v16 = vadd.f32 %v3391_v11, %v3379_v7  ;;  %v6547_v41 = vld [vmem:[%s7151_s27 + $0x58c] sm:$0xf]  ;;  %v3406_v61 = vpop.f32.mrf.mxu3 }
 0x167   : > { %v5641_v49 = vld [vmem:[%s7151_s27 + $0xa48] sm:$0xf]  ;;  %v5386_v57 = vor.u32 %v6639_v48, %v5385_v47  ;;  %3660 = vmatpush.bf16.msrb.mxu3 %v6186_v50  ;;  %v5291_v46 = vld [vmem:[%s7151_s27 + $0x7a8] sm:$0xf0]  ;;  %v4526_v47 = vor.u32 %v6419_v28, %v4523_v29  ;;  %v4782_v48 = vor.u32 %v6483_v33, %v4779_v38 }
 0x168   : > { %v6703_v51 = vld [vmem:[%s7151_s27 + $0xa64] sm:$0xf0]  ;;  %v3405_v34 = vadd.f32 %v3404_v23, %v3392_v16  ;;  %v6411_v50 = vld [vmem:[%s7151_s27 + $0x14c] sm:$0xf] }
 0x169   : > { %v5897_v52 = vld [vmem:[%s7151_s27 + $0xc48] sm:$0xf]  ;;  %v5642_v62 = vor.u32 %v6703_v51, %v5641_v49  ;;  %3622 = vmatpush.bf16.msrb.mxu0 %v5386_v57  ;;  %v5038_v49 = vor.u32 %v6547_v41, %v5035_v43  ;;  %v4491_v51 = vld [vmem:[%s7151_s27 + $0x168] sm:$0xf0] }
 0x16a   : > { %v6767_v53 = vld [vmem:[%s7151_s27 + $0xc64] sm:$0xf0]  ;;  %v5003_v57 = vld [vmem:[%s7151_s27 + $0x568] sm:$0xf0]  ;;  %v4494_v60 = vor.u32 %v6411_v50, %v4491_v51 }
 0x16b   : > { %v6153_v54 = vld [vmem:[%s7151_s27 + $0xe48] sm:$0xf]  ;;  %v5898_v63 = vor.u32 %v6767_v53, %v5897_v52  ;;  %3635 = vmatpush.bf16.msrb.mxu1 %v5642_v62  ;;  %v6475_v52 = vld [vmem:[%s7151_s27 + $0x34c] sm:$0xf]  ;;  %v3393_v53 = vpop.f32.mrf.mxu2  ;;  %v3417_v10 = vpop.f32.mrf.mxu0 }
 0x16c   : > { %v6831_v55 = vld [vmem:[%s7151_s27 + $0xe64] sm:$0xf0]  ;;  %v6595_v7 = vld [vmem:[%s7151_s27 + $0x70c] sm:$0xf]  ;;  %v3418_v16 = vadd.f32 %v3417_v10, %v3405_v34 }
 0x16d   : > { %v5353_v58 = vld [vmem:[%s7151_s27 + $0x808] sm:$0xf]  ;;  %v6154_v3 = vor.u32 %v6831_v55, %v6153_v54  ;;  %3648 = vmatpush.bf16.msrb.mxu2 %v5898_v63  ;;  %v5294_v54 = vor.u32 %v6611_v45, %v5291_v46  ;;  %v4747_v55 = vld [vmem:[%s7151_s27 + $0x368] sm:$0xf0]  ;;  %v5006_v63 = vor.u32 %v6539_v56, %v5003_v57 }
 0x16e   : > { %v6631_v59 = vld [vmem:[%s7151_s27 + $0x824] sm:$0xf0]  ;;  %v4750_v62 = vor.u32 %v6475_v52, %v4747_v55  ;;  %v6459_v15 = vld [vmem:[%s7151_s27 + $0x2cc] sm:$0xf]  ;;  %v3456_v46 = vpop.f32.mrf.mxu3 }
 0x16f   : > { %v5609_v0 = vld [vmem:[%s7151_s27 + $0xa08] sm:$0xf]  ;;  %v5354_v12 = vor.u32 %v6631_v59, %v5353_v58  ;;  %3661 = vmatpush.bf16.msrb.mxu3 %v6154_v3  ;;  %v6603_v58 = vld [vmem:[%s7151_s27 + $0x74c] sm:$0xf] }
 0x170   : > { %v6695_v1 = vld [vmem:[%s7151_s27 + $0xa24] sm:$0xf0]  ;;  %v5259_v59 = vld [vmem:[%s7151_s27 + $0x768] sm:$0xf0] }
 0x171   : > { %v5865_v2 = vld [vmem:[%s7151_s27 + $0xc08] sm:$0xf]  ;;  %v5610_v17 = vor.u32 %v6695_v1, %v5609_v0  ;;  %3623 = vmatpush.bf16.msrb.mxu0 %v5354_v12  ;;  %v6403_v0 = vld [vmem:[%s7151_s27 + $0x10c] sm:$0xf]  ;;  %v5262_v3 = vor.u32 %v6603_v58, %v5259_v59 }
 0x172   : > { %v6759_v4 = vld [vmem:[%s7151_s27 + $0xc24] sm:$0xf0]  ;;  %v4459_v1 = vld [vmem:[%s7151_s27 + $0x128] sm:$0xf0] }
 0x173   : > { %v6121_v5 = vld [vmem:[%s7151_s27 + $0xe08] sm:$0xf]  ;;  %v5866_v18 = vor.u32 %v6759_v4, %v5865_v2  ;;  %3636 = vmatpush.bf16.msrb.mxu1 %v5610_v17  ;;  %v6467_v2 = vld [vmem:[%s7151_s27 + $0x30c] sm:$0xf]  ;;  %v4462_v9 = vor.u32 %v6403_v0, %v4459_v1  ;;  %v3430_v17 = vpop.f32.mrf.mxu1  ;;  %v3419_v51 = vpop.f32.mrf.mxu0 }
 0x174   : > { %v6823_v6 = vld [vmem:[%s7151_s27 + $0xe24] sm:$0xf0]  ;;  %3624 = vmatmul.bf16.vlgmr.msrb.gmra.mxu0 %v7327_v39  ;;  %v4715_v4 = vld [vmem:[%s7151_s27 + $0x328] sm:$0xf0] }
 0x175   : > { %v6122_v21 = vor.u32 %v6823_v6, %v6121_v5  ;;  %3649 = vmatpush.bf16.msrb.mxu2 %v5866_v18  ;;  %3668 = vmatpush.bf16.msra.mxu0 %v4558_v22  ;;  %v6531_v5 = vld [vmem:[%s7151_s27 + $0x50c] sm:$0xf]  ;;  %v4718_v11 = vor.u32 %v6467_v2, %v4715_v4  ;;  %v5230_v18 = vor.u32 %v6595_v7, %v5227_v8 }
 0x176   : > { %3637 = vmatmul.bf16.vlgmr.msrb.gmra.mxu1 %v7331_v42  ;;  %v4971_v6 = vld [vmem:[%s7151_s27 + $0x528] sm:$0xf0] }
 0x177   : > { %3662 = vmatpush.bf16.msrb.mxu3 %v6122_v21  ;;  %3681 = vmatpush.bf16.msra.mxu1 %v4814_v24  ;;  %v4974_v12 = vor.u32 %v6531_v5, %v4971_v6  ;;  %v4683_v19 = vld [vmem:[%s7151_s27 + $0x2e8] sm:$0xf0]  ;;  %v3431_v24 = vadd.f32 %v3430_v17, %v3418_v16 }
 0x178   : > { %3650 = vmatmul.bf16.vlgmr.msrb.gmra.mxu2 %v7323_v36  ;;  %v6523_v20 = vld [vmem:[%s7151_s27 + $0x4cc] sm:$0xf]  ;;  %v4686_v28 = vor.u32 %v6459_v15, %v4683_v19 }
 0x179   : > { %3694 = vmatpush.bf16.msra.mxu2 %v5070_v27  ;;  %3669 = vmatpush.bf16.msra.mxu0 %v4526_v47  ;;  %v4939_v21 = vld [vmem:[%s7151_s27 + $0x4e8] sm:$0xf0]  ;;  %v4430_v27 = vor.u32 %v6395_v13, %v4427_v14  ;;  %v3458_v13 = vpop.f32.mrf.mxu3 }
 0x17a   : > { %3663 = vmatmul.bf16.vlgmr.msrb.gmra.mxu3 %v7329_v40  ;;  %v6587_v22 = vld [vmem:[%s7151_s27 + $0x6cc] sm:$0xf]  ;;  %v4942_v29 = vor.u32 %v6523_v20, %v4939_v21 }
 0x17b   : > { %3707 = vmatpush.bf16.msra.mxu3 %v5326_v37  ;;  %3682 = vmatpush.bf16.msra.mxu1 %v4782_v48  ;;  %v5195_v23 = vld [vmem:[%s7151_s27 + $0x6e8] sm:$0xf0]  ;;  %v3443_v37 = vpop.f32.mrf.mxu2  ;;  %v3432_v57 = vpop.f32.mrf.mxu1 }
 0x17c   : > { %v6387_v33 = vld [vmem:[%s7151_s27 + $0x8c] sm:$0xf]  ;;  %v5198_v38 = vor.u32 %v6587_v22, %v5195_v23  ;;  %v3444_v45 = vadd.f32 %v3443_v37, %v3431_v24 }
 0x17d   : > { %3695 = vmatpush.bf16.msra.mxu2 %v5038_v49  ;;  %3670 = vmatpush.bf16.msra.mxu0 %v4494_v60  ;;  %v4395_v34 = vld [vmem:[%s7151_s27 + $0xa8] sm:$0xf0] }
 0x17e   : > { %v6451_v35 = vld [vmem:[%s7151_s27 + $0x28c] sm:$0xf]  ;;  %v4398_v49 = vor.u32 %v6387_v33, %v4395_v34  ;;  %v7645_v50 = vadd.f32 %v3456_v46, %v3444_v45 }
 0x17f   : > { %3708 = vmatpush.bf16.msra.mxu3 %v5294_v54  ;;  %3683 = vmatpush.bf16.msra.mxu1 %v4750_v62  ;;  %v4651_v41 = vld [vmem:[%s7151_s27 + $0x2a8] sm:$0xf0] }
 0x180   : > { %v6515_v43 = vld [vmem:[%s7151_s27 + $0x48c] sm:$0xf]  ;;  %v4654_v52 = vor.u32 %v6451_v35, %v4651_v41 }
 0x181   : > { %3696 = vmatpush.bf16.msra.mxu2 %v5006_v63  ;;  %3671 = vmatpush.bf16.msra.mxu0 %v4462_v9  ;;  %v4907_v44 = vld [vmem:[%s7151_s27 + $0x4a8] sm:$0xf0] }
 0x182   : > { %v6579_v47 = vld [vmem:[%s7151_s27 + $0x68c] sm:$0xf]  ;;  %v4910_v53 = vor.u32 %v6515_v43, %v4907_v44 }
 0x183   : > { %3709 = vmatpush.bf16.msra.mxu3 %v5262_v3  ;;  %3684 = vmatpush.bf16.msra.mxu1 %v4718_v11  ;;  %v5163_v48 = vld [vmem:[%s7151_s27 + $0x6a8] sm:$0xf0]  ;;  %v3445_v8 = vpop.f32.mrf.mxu2 }
 0x184   : > { %v6379_v54 = vld [vmem:[%s7151_s27 + $0x4c] sm:$0xf]  ;;  %v5166_v58 = vor.u32 %v6579_v47, %v5163_v48 }
 0x185   : > { %3697 = vmatpush.bf16.msra.mxu2 %v4974_v12  ;;  %3672 = vmatpush.bf16.msra.mxu0 %v4430_v27  ;;  %v4363_v55 = vld [vmem:[%s7151_s27 + $0x68] sm:$0xf0] }
 0x186   : > { %v6443_v56 = vld [vmem:[%s7151_s27 + $0x24c] sm:$0xf]  ;;  %v4366_v0 = vor.u32 %v6379_v54, %v4363_v55 }
 0x187   : > { %3710 = vmatpush.bf16.msra.mxu3 %v5230_v18  ;;  %3685 = vmatpush.bf16.msra.mxu1 %v4686_v28  ;;  %v4619_v59 = vld [vmem:[%s7151_s27 + $0x268] sm:$0xf0] }
 0x188   : > { %v6507_v60 = vld [vmem:[%s7151_s27 + $0x44c] sm:$0xf]  ;;  %v4622_v3 = vor.u32 %v6443_v56, %v4619_v59 }
 0x189   : > { %3698 = vmatpush.bf16.msra.mxu2 %v4942_v29  ;;  %v4875_v61 = vld [vmem:[%s7151_s27 + $0x468] sm:$0xf0]  ;;  %3673 = vmatpush.bf16.msra.mxu0 %v4398_v49 }
 0x18a   : > { %v6571_v62 = vld [vmem:[%s7151_s27 + $0x64c] sm:$0xf]  ;;  %v4878_v4 = vor.u32 %v6507_v60, %v4875_v61 }
 0x18b   : > { %3711 = vmatpush.bf16.msra.mxu3 %v5198_v38  ;;  %v5131_v63 = vld [vmem:[%s7151_s27 + $0x668] sm:$0xf0]  ;;  %3686 = vmatpush.bf16.msra.mxu1 %v4654_v52 }
 0x18c   : > { %v6371_v1 = vld [vmem:[%s7151_s27 + $0xc] sm:$0xf]  ;;  %v5134_v9 = vor.u32 %v6571_v62, %v5131_v63 }
 0x18d   : > { %v4331_v2 = vld [vmem:[%s7151_s27 + $0x28] sm:$0xf0]  ;;  %3699 = vmatpush.bf16.msra.mxu2 %v4910_v53  ;;  %3674 = vmatpush.bf16.msra.mxu0 %v4366_v0 }
 0x18e   : > { %v6435_v5 = vld [vmem:[%s7151_s27 + $0x20c] sm:$0xf]  ;;  %v4334_v17 = vor.u32 %v6371_v1, %v4331_v2  ;;  %v781_v2 = vperm.slane %v7569_v30, 1 }
 0x18f   : > { %v4587_v6 = vld [vmem:[%s7151_s27 + $0x228] sm:$0xf0]  ;;  %3712 = vmatpush.bf16.msra.mxu3 %v5166_v58  ;;  %3687 = vmatpush.bf16.msra.mxu1 %v4622_v3 }
 0x190   : > { %v6499_v7 = vld [vmem:[%s7151_s27 + $0x40c] sm:$0xf]  ;;  %v4590_v21 = vor.u32 %v6435_v5, %v4587_v6 }
 0x191   : > { %v4843_v10 = vld [vmem:[%s7151_s27 + $0x428] sm:$0xf0]  ;;  %3700 = vmatpush.bf16.msra.mxu2 %v4878_v4  ;;  %3675 = vmatpush.bf16.msra.mxu0 %v4334_v17 }
 0x192   : > { %v6563_v11 = vld [vmem:[%s7151_s27 + $0x60c] sm:$0xf]  ;;  %v4846_v22 = vor.u32 %v6499_v7, %v4843_v10  ;;  %v3469_v10 = vpop.f32.mrf.mxu0 }
 0x193   : > { %v5099_v12 = vld [vmem:[%s7151_s27 + $0x628] sm:$0xf0]  ;;  %3713 = vmatpush.bf16.msra.mxu3 %v5134_v9  ;;  %3688 = vmatpush.bf16.msra.mxu1 %v4590_v21 }
 0x194   : > { %v6683_v14 = vld [vmem:[%s7151_s27 + $0x9cc] sm:$0xf]  ;;  %v5102_v27 = vor.u32 %v6563_v11, %v5099_v12  ;;  %3676 = vmatmul.bf16.vlgmr.msra.gmra.mxu0 %v7270_v26 }
 0x195   : > { %v5579_v15 = vld [vmem:[%s7151_s27 + $0x9e8] sm:$0xf0]  ;;  %3701 = vmatpush.bf16.msra.mxu2 %v4846_v22 }
 0x196   : > { %v6747_v16 = vld [vmem:[%s7151_s27 + $0xbcc] sm:$0xf]  ;;  %v5582_v28 = vor.u32 %v6683_v14, %v5579_v15  ;;  %3689 = vmatmul.bf16.vlgmr.msra.gmra.mxu1 %v7276_v32  ;;  %v3470_v15 = vadd.f32 %v3469_v10, %v781_v2 }
 0x197   : > { %v5835_v18 = vld [vmem:[%s7151_s27 + $0xbe8] sm:$0xf0]  ;;  %3714 = vmatpush.bf16.msra.mxu3 %v5102_v27 }
 0x198   : > { %v6811_v19 = vld [vmem:[%s7151_s27 + $0xdcc] sm:$0xf]  ;;  %v5838_v29 = vor.u32 %v6747_v16, %v5835_v18  ;;  %3720 = vmatpush.bf16.msrb.mxu0 %v5582_v28  ;;  %3702 = vmatmul.bf16.vlgmr.msra.gmra.mxu2 %v7268_v25  ;;  %v3482_v16 = vpop.f32.mrf.mxu1 }
 0x199   : > { %v6091_v20 = vld [vmem:[%s7151_s27 + $0xde8] sm:$0xf0] }
 0x19a   : > { %v6875_v23 = vld [vmem:[%s7151_s27 + $0xfcc] sm:$0xf]  ;;  %v6094_v33 = vor.u32 %v6811_v19, %v6091_v20  ;;  %3733 = vmatpush.bf16.msrb.mxu1 %v5838_v29  ;;  %3715 = vmatmul.bf16.vlgmr.msra.gmra.mxu3 %v7274_v31 }
 0x19b   : > { %v6347_v24 = vld [vmem:[%s7151_s27 + $0xfe8] sm:$0xf0] }
 0x19c   : > { %v6675_v34 = vld [vmem:[%s7151_s27 + $0x98c] sm:$0xf]  ;;  %v6350_v38 = vor.u32 %v6875_v23, %v6347_v24  ;;  %3746 = vmatpush.bf16.msrb.mxu2 %v6094_v33  ;;  %v3483_v23 = vadd.f32 %v3482_v16, %v3470_v15  ;;  %v4817_v15 = vld [vmem:[%s7151_s27 + $0x3d0] sm:$0xf] }
 0x19d   : > { %v5547_v35 = vld [vmem:[%s7151_s27 + $0x9a8] sm:$0xf0] }
 0x19e   : > { %v6739_v37 = vld [vmem:[%s7151_s27 + $0xb8c] sm:$0xf]  ;;  %v5550_v47 = vor.u32 %v6675_v34, %v5547_v35  ;;  %3759 = vmatpush.bf16.msrb.mxu3 %v6350_v38  ;;  %v3495_v35 = vpop.f32.mrf.mxu2 }
 0x19f   : > { %v5803_v41 = vld [vmem:[%s7151_s27 + $0xba8] sm:$0xf0] }
 0x1a0   : > { %v6803_v43 = vld [vmem:[%s7151_s27 + $0xd8c] sm:$0xf]  ;;  %v5806_v48 = vor.u32 %v6739_v37, %v5803_v41  ;;  %3721 = vmatpush.bf16.msrb.mxu0 %v5550_v47 }
 0x1a1   : > { %v6059_v44 = vld [vmem:[%s7151_s27 + $0xda8] sm:$0xf0] }
 0x1a2   : > { %v6867_v45 = vld [vmem:[%s7151_s27 + $0xf8c] sm:$0xf]  ;;  %v6062_v49 = vor.u32 %v6803_v43, %v6059_v44  ;;  %3734 = vmatpush.bf16.msrb.mxu1 %v5806_v48  ;;  %v3496_v44 = vadd.f32 %v3495_v35, %v3483_v23  ;;  %v6624_v23 = vld [vmem:[%s7151_s27 + $0x7ec] sm:$0xf0] }
 0x1a3   : > { %v6315_v46 = vld [vmem:[%s7151_s27 + $0xfa8] sm:$0xf0]  ;;  %v4785_v35 = vld [vmem:[%s7151_s27 + $0x390] sm:$0xf] }
 0x1a4   : > { %v6667_v51 = vld [vmem:[%s7151_s27 + $0x94c] sm:$0xf]  ;;  %v6318_v54 = vor.u32 %v6867_v45, %v6315_v46  ;;  %3747 = vmatpush.bf16.msrb.mxu2 %v6062_v49  ;;  %v3508_v45 = vpop.f32.mrf.mxu3 }
 0x1a5   : > { %v5515_v52 = vld [vmem:[%s7151_s27 + $0x968] sm:$0xf0]  ;;  %v7716_v49 = vadd.f32 %v3508_v45, %v3496_v44  ;;  %v5297_v44 = vld [vmem:[%s7151_s27 + $0x790] sm:$0xf] }
 0x1a6   : > { %v6731_v53 = vld [vmem:[%s7151_s27 + $0xb4c] sm:$0xf]  ;;  %v5518_v60 = vor.u32 %v6667_v51, %v5515_v52  ;;  %3760 = vmatpush.bf16.msrb.mxu3 %v6318_v54  ;;  %v3471_v51 = vpop.f32.mrf.mxu0  ;;  %v6616_v45 = vld [vmem:[%s7151_s27 + $0x7ac] sm:$0xf0] }
 0x1a7   : > { %v5771_v55 = vld [vmem:[%s7151_s27 + $0xb68] sm:$0xf0]  ;;  %v4497_v51 = vld [vmem:[%s7151_s27 + $0x150] sm:$0xf] }
 0x1a8   : > { %v6795_v56 = vld [vmem:[%s7151_s27 + $0xd4c] sm:$0xf]  ;;  %v5774_v62 = vor.u32 %v6731_v53, %v5771_v55  ;;  %3722 = vmatpush.bf16.msrb.mxu0 %v5518_v60 }
 0x1a9   : > { %v6027_v57 = vld [vmem:[%s7151_s27 + $0xd68] sm:$0xf0] }
 0x1aa   : > { %v6859_v58 = vld [vmem:[%s7151_s27 + $0xf4c] sm:$0xf]  ;;  %v6030_v63 = vor.u32 %v6795_v56, %v6027_v57  ;;  %3735 = vmatpush.bf16.msrb.mxu1 %v5774_v62  ;;  %v3484_v57 = vpop.f32.mrf.mxu1 }
 0x1ab   : > { %v6283_v59 = vld [vmem:[%s7151_s27 + $0xf68] sm:$0xf0]  ;;  %v6544_v57 = vld [vmem:[%s7151_s27 + $0x56c] sm:$0xf0] }
 0x1ac   : > { %v6659_v61 = vld [vmem:[%s7151_s27 + $0x90c] sm:$0xf]  ;;  %v6286_v3 = vor.u32 %v6859_v58, %v6283_v59  ;;  %3748 = vmatpush.bf16.msrb.mxu2 %v6030_v63 }
 0x1ad   : > { %v5483_v0 = vld [vmem:[%s7151_s27 + $0x928] sm:$0xf0] }
 0x1ae   : > { %v6723_v1 = vld [vmem:[%s7151_s27 + $0xb0c] sm:$0xf]  ;;  %v5486_v9 = vor.u32 %v6659_v61, %v5483_v0  ;;  %3761 = vmatpush.bf16.msrb.mxu3 %v6286_v3 }
 0x1af   : > { %v5739_v4 = vld [vmem:[%s7151_s27 + $0xb28] sm:$0xf0] }
 0x1b0   : > { %v6787_v5 = vld [vmem:[%s7151_s27 + $0xd0c] sm:$0xf]  ;;  %v5742_v30 = vor.u32 %v6723_v1, %v5739_v4  ;;  %3723 = vmatpush.bf16.msrb.mxu0 %v5486_v9 }
 0x1b1   : > { %v5995_v6 = vld [vmem:[%s7151_s27 + $0xd28] sm:$0xf0] }
 0x1b2   : > { %v6851_v7 = vld [vmem:[%s7151_s27 + $0xf0c] sm:$0xf]  ;;  %v5998_v11 = vor.u32 %v6787_v5, %v5995_v6  ;;  %3736 = vmatpush.bf16.msrb.mxu1 %v5742_v30 }
 0x1b3   : > { %v6251_v8 = vld [vmem:[%s7151_s27 + $0xf28] sm:$0xf0] }
 0x1b4   : > { %v6651_v12 = vld [vmem:[%s7151_s27 + $0x8cc] sm:$0xf]  ;;  %v6254_v17 = vor.u32 %v6851_v7, %v6251_v8  ;;  %3749 = vmatpush.bf16.msrb.mxu2 %v5998_v11  ;;  %v3497_v8 = vpop.f32.mrf.mxu2 }
 0x1b5   : > { %v5451_v13 = vld [vmem:[%s7151_s27 + $0x8e8] sm:$0xf0] }
 0x1b6   : > { %v6715_v14 = vld [vmem:[%s7151_s27 + $0xacc] sm:$0xf]  ;;  %v5454_v24 = vor.u32 %v6651_v12, %v5451_v13  ;;  %3762 = vmatpush.bf16.msrb.mxu3 %v6254_v17  ;;  %v3510_v12 = vpop.f32.mrf.mxu3  ;;  %v4561_v13 = vld [vmem:[%s7151_s27 + $0x1d0] sm:$0xf] }
 0x1b7   : > { %v5707_v18 = vld [vmem:[%s7151_s27 + $0xae8] sm:$0xf0]  ;;  %v6496_v17 = vld [vmem:[%s7151_s27 + $0x3ec] sm:$0xf0]  ;;  %v3534_v12 = vpop.f32.mrf.mxu1 }
 0x1b8   : > { %v6779_v19 = vld [vmem:[%s7151_s27 + $0xccc] sm:$0xf]  ;;  %v5710_v27 = vor.u32 %v6715_v14, %v5707_v18  ;;  %3724 = vmatpush.bf16.msrb.mxu0 %v5454_v24  ;;  %v6432_v14 = vld [vmem:[%s7151_s27 + $0x1ec] sm:$0xf0] }
 0x1b9   : > { %v5963_v20 = vld [vmem:[%s7151_s27 + $0xce8] sm:$0xf0]  ;;  %v5073_v18 = vld [vmem:[%s7151_s27 + $0x5d0] sm:$0xf] }
 0x1ba   : > { %v6843_v21 = vld [vmem:[%s7151_s27 + $0xecc] sm:$0xf]  ;;  %v5966_v28 = vor.u32 %v6779_v19, %v5963_v20  ;;  %3737 = vmatpush.bf16.msrb.mxu1 %v5710_v27  ;;  %v6560_v19 = vld [vmem:[%s7151_s27 + $0x5ec] sm:$0xf0]  ;;  %v4562_v27 = vor.u32 %v6432_v14, %v4561_v13 }
 0x1bb   : > { %v6219_v22 = vld [vmem:[%s7151_s27 + $0xee8] sm:$0xf0]  ;;  %v4433_v13 = vld [vmem:[%s7151_s27 + $0xd0] sm:$0xf] }
 0x1bc   : > { %v6643_v29 = vld [vmem:[%s7151_s27 + $0x88c] sm:$0xf]  ;;  %v6222_v37 = vor.u32 %v6843_v21, %v6219_v22  ;;  %3750 = vmatpush.bf16.msrb.mxu2 %v5966_v28  ;;  %v5329_v22 = vld [vmem:[%s7151_s27 + $0x7d0] sm:$0xf]  ;;  %v4818_v28 = vor.u32 %v6496_v17, %v4817_v15 }
 0x1bd   : > { %v5419_v33 = vld [vmem:[%s7151_s27 + $0x8a8] sm:$0xf0]  ;;  %v6400_v14 = vld [vmem:[%s7151_s27 + $0xec] sm:$0xf0] }
 0x1be   : > { %v6707_v34 = vld [vmem:[%s7151_s27 + $0xa8c] sm:$0xf]  ;;  %v5422_v48 = vor.u32 %v6643_v29, %v5419_v33  ;;  %3763 = vmatpush.bf16.msrb.mxu3 %v6222_v37  ;;  %v5074_v29 = vor.u32 %v6560_v19, %v5073_v18  ;;  %v4529_v33 = vld [vmem:[%s7151_s27 + $0x190] sm:$0xf]  ;;  %v5330_v37 = vor.u32 %v6624_v23, %v5329_v22 }
 0x1bf   : > { %v5675_v38 = vld [vmem:[%s7151_s27 + $0xaa8] sm:$0xf0]  ;;  %v4689_v15 = vld [vmem:[%s7151_s27 + $0x2d0] sm:$0xf] }
 0x1c0   : > { %v6771_v41 = vld [vmem:[%s7151_s27 + $0xc8c] sm:$0xf]  ;;  %v5678_v52 = vor.u32 %v6707_v34, %v5675_v38  ;;  %3725 = vmatpush.bf16.msrb.mxu0 %v5422_v48  ;;  %v6424_v34 = vld [vmem:[%s7151_s27 + $0x1ac] sm:$0xf0] }
 0x1c1   : > { %v5931_v43 = vld [vmem:[%s7151_s27 + $0xca8] sm:$0xf0]  ;;  %v6488_v38 = vld [vmem:[%s7151_s27 + $0x3ac] sm:$0xf0] }
 0x1c2   : > { %v6835_v46 = vld [vmem:[%s7151_s27 + $0xe8c] sm:$0xf]  ;;  %v5934_v53 = vor.u32 %v6771_v41, %v5931_v43  ;;  %3738 = vmatpush.bf16.msrb.mxu1 %v5678_v52  ;;  %v5041_v41 = vld [vmem:[%s7151_s27 + $0x590] sm:$0xf] }
 0x1c3   : > { %v6187_v47 = vld [vmem:[%s7151_s27 + $0xea8] sm:$0xf0]  ;;  %v6552_v43 = vld [vmem:[%s7151_s27 + $0x5ac] sm:$0xf0] }
 0x1c4   : > { %v6635_v54 = vld [vmem:[%s7151_s27 + $0x84c] sm:$0xf]  ;;  %v6190_v58 = vor.u32 %v6835_v46, %v6187_v47  ;;  %3751 = vmatpush.bf16.msrb.mxu2 %v5934_v53  ;;  %v4530_v46 = vor.u32 %v6424_v34, %v4529_v33  ;;  %v4786_v47 = vor.u32 %v6488_v38, %v4785_v35  ;;  %v5042_v48 = vor.u32 %v6552_v43, %v5041_v41  ;;  %v6416_v52 = vld [vmem:[%s7151_s27 + $0x16c] sm:$0xf0] }
 0x1c5   : > { %v5387_v55 = vld [vmem:[%s7151_s27 + $0x868] sm:$0xf0]  ;;  %v4753_v53 = vld [vmem:[%s7151_s27 + $0x350] sm:$0xf] }
 0x1c6   : > { %v6699_v56 = vld [vmem:[%s7151_s27 + $0xa4c] sm:$0xf]  ;;  %v5390_v0 = vor.u32 %v6635_v54, %v5387_v55  ;;  %3764 = vmatpush.bf16.msrb.mxu3 %v6190_v58  ;;  %v5298_v54 = vor.u32 %v6616_v45, %v5297_v44  ;;  %v6480_v55 = vld [vmem:[%s7151_s27 + $0x36c] sm:$0xf0] }
 0x1c7   : > { %v5643_v59 = vld [vmem:[%s7151_s27 + $0xa68] sm:$0xf0]  ;;  %v5265_v58 = vld [vmem:[%s7151_s27 + $0x750] sm:$0xf] }
 0x1c8   : > { %v6763_v60 = vld [vmem:[%s7151_s27 + $0xc4c] sm:$0xf]  ;;  %v5646_v3 = vor.u32 %v6699_v56, %v5643_v59  ;;  %3726 = vmatpush.bf16.msrb.mxu0 %v5390_v0  ;;  %v5009_v56 = vld [vmem:[%s7151_s27 + $0x550] sm:$0xf] }
 0x1c9   : > { %v5899_v61 = vld [vmem:[%s7151_s27 + $0xc68] sm:$0xf0]  ;;  %v6608_v59 = vld [vmem:[%s7151_s27 + $0x76c] sm:$0xf0] }
 0x1ca   : > { %v6827_v62 = vld [vmem:[%s7151_s27 + $0xe4c] sm:$0xf]  ;;  %v5902_v4 = vor.u32 %v6763_v60, %v5899_v61  ;;  %3739 = vmatpush.bf16.msrb.mxu1 %v5646_v3  ;;  %v4498_v60 = vor.u32 %v6416_v52, %v4497_v51  ;;  %v4754_v61 = vor.u32 %v6480_v55, %v4753_v53  ;;  %v6408_v0 = vld [vmem:[%s7151_s27 + $0x12c] sm:$0xf0] }
 0x1cb   : > { %v6155_v63 = vld [vmem:[%s7151_s27 + $0xe68] sm:$0xf0]  ;;  %v6472_v3 = vld [vmem:[%s7151_s27 + $0x32c] sm:$0xf0] }
 0x1cc   : > { %v6627_v1 = vld [vmem:[%s7151_s27 + $0x80c] sm:$0xf]  ;;  %v6158_v9 = vor.u32 %v6827_v62, %v6155_v63  ;;  %3752 = vmatpush.bf16.msrb.mxu2 %v5902_v4  ;;  %v5010_v62 = vor.u32 %v6544_v57, %v5009_v56  ;;  %v4465_v63 = vld [vmem:[%s7151_s27 + $0x110] sm:$0xf]  ;;  %v3536_v57 = vpop.f32.mrf.mxu1 }
 0x1cd   : > { %v5355_v2 = vld [vmem:[%s7151_s27 + $0x828] sm:$0xf0]  ;;  %v4977_v4 = vld [vmem:[%s7151_s27 + $0x510] sm:$0xf]  ;;  %v4466_v8 = vor.u32 %v6408_v0, %v4465_v63 }
 0x1ce   : > { %v6691_v5 = vld [vmem:[%s7151_s27 + $0xa0c] sm:$0xf]  ;;  %v5358_v16 = vor.u32 %v6627_v1, %v5355_v2  ;;  %3765 = vmatpush.bf16.msrb.mxu3 %v6158_v9  ;;  %v4721_v1 = vld [vmem:[%s7151_s27 + $0x310] sm:$0xf]  ;;  %v5266_v2 = vor.u32 %v6608_v59, %v5265_v58  ;;  %v3521_v9 = vpop.f32.mrf.mxu0 }
 0x1cf   : > { %v5611_v6 = vld [vmem:[%s7151_s27 + $0xa28] sm:$0xf0]  ;;  %v6464_v17 = vld [vmem:[%s7151_s27 + $0x2ec] sm:$0xf0] }
 0x1d0   : > { %v6755_v7 = vld [vmem:[%s7151_s27 + $0xc0c] sm:$0xf]  ;;  %v5614_v20 = vor.u32 %v6691_v5, %v5611_v6  ;;  %3727 = vmatpush.bf16.msrb.mxu0 %v5358_v16  ;;  %v6536_v5 = vld [vmem:[%s7151_s27 + $0x52c] sm:$0xf0]  ;;  %v4690_v23 = vor.u32 %v6464_v17, %v4689_v15 }
 0x1d1   : > { %v5867_v10 = vld [vmem:[%s7151_s27 + $0xc28] sm:$0xf0]  ;;  %v5233_v6 = vld [vmem:[%s7151_s27 + $0x710] sm:$0xf] }
 0x1d2   : > { %v6819_v30 = vld [vmem:[%s7151_s27 + $0xe0c] sm:$0xf]  ;;  %v5870_v21 = vor.u32 %v6755_v7, %v5867_v10  ;;  %3740 = vmatpush.bf16.msrb.mxu1 %v5614_v20  ;;  %v6600_v7 = vld [vmem:[%s7151_s27 + $0x72c] sm:$0xf0]  ;;  %v4722_v10 = vor.u32 %v6472_v3, %v4721_v1 }
 0x1d3   : > { %v6123_v11 = vld [vmem:[%s7151_s27 + $0xe28] sm:$0xf0]  ;;  %3728 = vmatmul.bf16.vlgmr.msrb.gmra.mxu0 %v7327_v39  ;;  %v5234_v16 = vor.u32 %v6600_v7, %v5233_v6  ;;  %v4945_v18 = vld [vmem:[%s7151_s27 + $0x4d0] sm:$0xf] }
 0x1d4   : > { %v6126_v24 = vor.u32 %v6819_v30, %v6123_v11  ;;  %3753 = vmatpush.bf16.msrb.mxu2 %v5870_v21  ;;  %3772 = vmatpush.bf16.msra.mxu0 %v4562_v27  ;;  %v4978_v30 = vor.u32 %v6536_v5, %v4977_v4  ;;  %v3522_v11 = vadd.f32 %v3521_v9, %v7716_v49  ;;  %v6528_v19 = vld [vmem:[%s7151_s27 + $0x4ec] sm:$0xf0]  ;;  %v3547_v27 = vpop.f32.mrf.mxu2 }
 0x1d5   : > { %3741 = vmatmul.bf16.vlgmr.msrb.gmra.mxu1 %v7331_v42  ;;  %v5201_v21 = vld [vmem:[%s7151_s27 + $0x6d0] sm:$0xf]  ;;  %v4434_v49 = vor.u32 %v6400_v14, %v4433_v13 }
 0x1d6   : > { %3766 = vmatpush.bf16.msrb.mxu3 %v6126_v24  ;;  %3785 = vmatpush.bf16.msra.mxu1 %v4818_v28  ;;  %v3535_v20 = vadd.f32 %v3534_v12, %v3522_v11  ;;  %v6592_v22 = vld [vmem:[%s7151_s27 + $0x6ec] sm:$0xf0]  ;;  %v4946_v24 = vor.u32 %v6528_v19, %v4945_v18  ;;  %v3523_v51 = vpop.f32.mrf.mxu0 }
 0x1d7   : > { %3754 = vmatmul.bf16.vlgmr.msrb.gmra.mxu2 %v7323_v36  ;;  %v4401_v28 = vld [vmem:[%s7151_s27 + $0x90] sm:$0xf]  ;;  %v5202_v34 = vor.u32 %v6592_v22, %v5201_v21 }
 0x1d8   : > { %3798 = vmatpush.bf16.msra.mxu2 %v5074_v29  ;;  %3773 = vmatpush.bf16.msra.mxu0 %v4530_v46  ;;  %v6392_v29 = vld [vmem:[%s7151_s27 + $0xac] sm:$0xf0]  ;;  %v3548_v35 = vadd.f32 %v3547_v27, %v3535_v20 }
 0x1d9   : > { %3767 = vmatmul.bf16.vlgmr.msrb.gmra.mxu3 %v7329_v40  ;;  %v4657_v33 = vld [vmem:[%s7151_s27 + $0x290] sm:$0xf] }
 0x1da   : > { %3811 = vmatpush.bf16.msra.mxu3 %v5330_v37  ;;  %3786 = vmatpush.bf16.msra.mxu1 %v4786_v47  ;;  %v3560_v37 = vpop.f32.mrf.mxu3  ;;  %v6456_v38 = vld [vmem:[%s7151_s27 + $0x2ac] sm:$0xf0]  ;;  %v4402_v47 = vor.u32 %v6392_v29, %v4401_v28 }
 0x1db   : > { %v4913_v41 = vld [vmem:[%s7151_s27 + $0x490] sm:$0xf]  ;;  %v3561_v46 = vadd.f32 %v3560_v37, %v3548_v35  ;;  %v4658_v52 = vor.u32 %v6456_v38, %v4657_v33 }
 0x1dc   : > { %3799 = vmatpush.bf16.msra.mxu2 %v5042_v48  ;;  %3774 = vmatpush.bf16.msra.mxu0 %v4498_v60  ;;  %v6520_v43 = vld [vmem:[%s7151_s27 + $0x4ac] sm:$0xf0] }
 0x1dd   : > { %v5169_v44 = vld [vmem:[%s7151_s27 + $0x690] sm:$0xf]  ;;  %v4914_v53 = vor.u32 %v6520_v43, %v4913_v41  ;;  %v4196_v58 = vrot.slane %v3561_v46, 6 }
 0x1de   : > { %3812 = vmatpush.bf16.msra.mxu3 %v5298_v54  ;;  %3787 = vmatpush.bf16.msra.mxu1 %v4754_v61  ;;  %v6584_v45 = vld [vmem:[%s7151_s27 + $0x6ac] sm:$0xf0] }
 0x1df   : > { %v4369_v48 = vld [vmem:[%s7151_s27 + $0x50] sm:$0xf]  ;;  %v5170_v59 = vor.u32 %v6584_v45, %v5169_v44  ;;  %v7797_v0 = vsel %vm4202_vm0, %v7645_v50, %v4196_v58 }
 0x1e0   : > { %3800 = vmatpush.bf16.msra.mxu2 %v5010_v62  ;;  %3775 = vmatpush.bf16.msra.mxu0 %v4466_v8  ;;  %v6384_v54 = vld [vmem:[%s7151_s27 + $0x6c] sm:$0xf0]  ;;  %v3549_v8 = vpop.f32.mrf.mxu2 }
 0x1e1   : > { %v4625_v55 = vld [vmem:[%s7151_s27 + $0x250] sm:$0xf]  ;;  %v4370_v1 = vor.u32 %v6384_v54, %v4369_v48 }
 0x1e2   : > { %3813 = vmatpush.bf16.msra.mxu3 %v5266_v2  ;;  %3788 = vmatpush.bf16.msra.mxu1 %v4722_v10  ;;  %v6448_v56 = vld [vmem:[%s7151_s27 + $0x26c] sm:$0xf0]  ;;  %v3562_v12 = vpop.f32.mrf.mxu3 }
 0x1e3   : > { %v4881_v60 = vld [vmem:[%s7151_s27 + $0x450] sm:$0xf]  ;;  %v4626_v4 = vor.u32 %v6448_v56, %v4625_v55 }
 0x1e4   : > { %3801 = vmatpush.bf16.msra.mxu2 %v4978_v30  ;;  %3776 = vmatpush.bf16.msra.mxu0 %v4434_v49  ;;  %v6512_v61 = vld [vmem:[%s7151_s27 + $0x46c] sm:$0xf0] }
 0x1e5   : > { %v5137_v62 = vld [vmem:[%s7151_s27 + $0x650] sm:$0xf]  ;;  %v4882_v5 = vor.u32 %v6512_v61, %v4881_v60 }
 0x1e6   : > { %3814 = vmatpush.bf16.msra.mxu3 %v5234_v16  ;;  %3789 = vmatpush.bf16.msra.mxu1 %v4690_v23  ;;  %v6576_v63 = vld [vmem:[%s7151_s27 + $0x66c] sm:$0xf0] }
 0x1e7   : > { %v4337_v2 = vld [vmem:[%s7151_s27 + $0x10] sm:$0xf]  ;;  %v5138_v9 = vor.u32 %v6576_v63, %v5137_v62 }
 0x1e8   : > { %3802 = vmatpush.bf16.msra.mxu2 %v4946_v24  ;;  %3777 = vmatpush.bf16.msra.mxu0 %v4402_v47  ;;  %v6376_v3 = vld [vmem:[%s7151_s27 + $0x2c] sm:$0xf0] }
 0x1e9   : > { %v4593_v6 = vld [vmem:[%s7151_s27 + $0x210] sm:$0xf]  ;;  %v4338_v16 = vor.u32 %v6376_v3, %v4337_v2  ;;  %v7839_v2 = vld [vmem:[%s7157_s5] sm:$0xff] }
 0x1ea   : > { %3815 = vmatpush.bf16.msra.mxu3 %v5202_v34  ;;  %3790 = vmatpush.bf16.msra.mxu1 %v4658_v52  ;;  %v6440_v7 = vld [vmem:[%s7151_s27 + $0x22c] sm:$0xf0]  ;;  %v782_v3 = vperm.slane %v7839_v2, 2 }
 0x1eb   : > { %v4849_v50 = vld [vmem:[%s7151_s27 + $0x410] sm:$0xf]  ;;  %v4594_v20 = vor.u32 %v6440_v7, %v4593_v6 }
 0x1ec   : > { %3803 = vmatpush.bf16.msra.mxu2 %v4914_v53  ;;  %v6504_v10 = vld [vmem:[%s7151_s27 + $0x42c] sm:$0xf0]  ;;  %3778 = vmatpush.bf16.msra.mxu0 %v4370_v1 }
 0x1ed   : > { %v5105_v30 = vld [vmem:[%s7151_s27 + $0x610] sm:$0xf]  ;;  %v4850_v21 = vor.u32 %v6504_v10, %v4849_v50  ;;  %v3573_v10 = vpop.f32.mrf.mxu0 }
 0x1ee   : > { %3816 = vmatpush.bf16.msra.mxu3 %v5170_v59  ;;  %v6568_v11 = vld [vmem:[%s7151_s27 + $0x62c] sm:$0xf0]  ;;  %3791 = vmatpush.bf16.msra.mxu1 %v4626_v4 }
 0x1ef   : > { %v5585_v13 = vld [vmem:[%s7151_s27 + $0x9d0] sm:$0xf]  ;;  %v5106_v23 = vor.u32 %v6568_v11, %v5105_v30 }
 0x1f0   : > { %v6688_v14 = vld [vmem:[%s7151_s27 + $0x9ec] sm:$0xf0]  ;;  %3804 = vmatpush.bf16.msra.mxu2 %v4882_v5  ;;  %3779 = vmatpush.bf16.msra.mxu0 %v4338_v16  ;;  %v3586_v16 = vpop.f32.mrf.mxu1 }
 0x1f1   : > { %v5841_v15 = vld [vmem:[%s7151_s27 + $0xbd0] sm:$0xf]  ;;  %v5586_v24 = vor.u32 %v6688_v14, %v5585_v13 }
 0x1f2   : > { %v6752_v17 = vld [vmem:[%s7151_s27 + $0xbec] sm:$0xf0]  ;;  %3817 = vmatpush.bf16.msra.mxu3 %v5138_v9  ;;  %3792 = vmatpush.bf16.msra.mxu1 %v4594_v20 }
 0x1f3   : > { %v6097_v18 = vld [vmem:[%s7151_s27 + $0xdd0] sm:$0xf]  ;;  %v5842_v27 = vor.u32 %v6752_v17, %v5841_v15  ;;  %3780 = vmatmul.bf16.vlgmr.msra.gmra.mxu0 %v7270_v26  ;;  %v3574_v15 = vadd.f32 %v3573_v10, %v782_v3 }
 0x1f4   : > { %v6816_v19 = vld [vmem:[%s7151_s27 + $0xdec] sm:$0xf0]  ;;  %3805 = vmatpush.bf16.msra.mxu2 %v4850_v21  ;;  %3824 = vmatpush.bf16.msrb.mxu0 %v5586_v24 }
 0x1f5   : > { %v6353_v22 = vld [vmem:[%s7151_s27 + $0xfd0] sm:$0xf]  ;;  %v6098_v28 = vor.u32 %v6816_v19, %v6097_v18  ;;  %3793 = vmatmul.bf16.vlgmr.msra.gmra.mxu1 %v7276_v32 }
 0x1f6   : > { %v6880_v49 = vld [vmem:[%s7151_s27 + $0xfec] sm:$0xf0]  ;;  %3818 = vmatpush.bf16.msra.mxu3 %v5106_v23  ;;  %3837 = vmatpush.bf16.msrb.mxu1 %v5842_v27 }
 0x1f7   : > { %v5553_v29 = vld [vmem:[%s7151_s27 + $0x990] sm:$0xf]  ;;  %v6354_v35 = vor.u32 %v6880_v49, %v6353_v22  ;;  %3806 = vmatmul.bf16.vlgmr.msra.gmra.mxu2 %v7268_v25  ;;  %v3587_v49 = vadd.f32 %v3586_v16, %v3574_v15  ;;  %v4563_v15 = vld [vmem:[%s7151_s27 + $0x1f0] sm:$0xf0] }
 0x1f8   : > { %v6680_v33 = vld [vmem:[%s7151_s27 + $0x9ac] sm:$0xf0]  ;;  %3850 = vmatpush.bf16.msrb.mxu2 %v6098_v28  ;;  %v6492_v16 = vld [vmem:[%s7151_s27 + $0x3d4] sm:$0xf] }
 0x1f9   : > { %v5809_v34 = vld [vmem:[%s7151_s27 + $0xb90] sm:$0xf]  ;;  %v5554_v45 = vor.u32 %v6680_v33, %v5553_v29  ;;  %3819 = vmatmul.bf16.vlgmr.msra.gmra.mxu3 %v7274_v31 }
 0x1fa   : > { %v6744_v37 = vld [vmem:[%s7151_s27 + $0xbac] sm:$0xf0]  ;;  %3863 = vmatpush.bf16.msrb.mxu3 %v6354_v35 }
 0x1fb   : > { %v6065_v38 = vld [vmem:[%s7151_s27 + $0xd90] sm:$0xf]  ;;  %v5810_v46 = vor.u32 %v6744_v37, %v5809_v34  ;;  %3825 = vmatpush.bf16.msrb.mxu0 %v5554_v45  ;;  %v3599_v34 = vpop.f32.mrf.mxu2 }
 0x1fc   : > { %v6808_v41 = vld [vmem:[%s7151_s27 + $0xdac] sm:$0xf0] }
 0x1fd   : > { %v6321_v43 = vld [vmem:[%s7151_s27 + $0xf90] sm:$0xf]  ;;  %v6066_v47 = vor.u32 %v6808_v41, %v6065_v38  ;;  %3838 = vmatpush.bf16.msrb.mxu1 %v5810_v46 }
 0x1fe   : > { %v6872_v44 = vld [vmem:[%s7151_s27 + $0xfac] sm:$0xf0] }
 0x1ff   : > { %v5521_v48 = vld [vmem:[%s7151_s27 + $0x950] sm:$0xf]  ;;  %v6322_v53 = vor.u32 %v6872_v44, %v6321_v43  ;;  %3851 = vmatpush.bf16.msrb.mxu2 %v6066_v47  ;;  %v3600_v43 = vadd.f32 %v3599_v34, %v3587_v49  ;;  %v3612_v44 = vpop.f32.mrf.mxu3  ;;  %v6620_v49 = vld [vmem:[%s7151_s27 + $0x7d4] sm:$0xf] }
 0x200   : > { %v6672_v51 = vld [vmem:[%s7151_s27 + $0x96c] sm:$0xf0]  ;;  %v4531_v34 = vld [vmem:[%s7151_s27 + $0x1b0] sm:$0xf0] }
 0x201   : > { %v5777_v52 = vld [vmem:[%s7151_s27 + $0xb50] sm:$0xf]  ;;  %v5522_v59 = vor.u32 %v6672_v51, %v5521_v48  ;;  %3864 = vmatpush.bf16.msrb.mxu3 %v6322_v53  ;;  %v7863_v48 = vadd.f32 %v3612_v44, %v3600_v43  ;;  %v3575_v51 = vpop.f32.mrf.mxu0  ;;  %v5043_v43 = vld [vmem:[%s7151_s27 + $0x5b0] sm:$0xf0] }
 0x202   : > { %v6736_v54 = vld [vmem:[%s7151_s27 + $0xb6c] sm:$0xf0]  ;;  %v6612_v44 = vld [vmem:[%s7151_s27 + $0x794] sm:$0xf] }
 0x203   : > { %v6033_v55 = vld [vmem:[%s7151_s27 + $0xd50] sm:$0xf]  ;;  %v5778_v61 = vor.u32 %v6736_v54, %v5777_v52  ;;  %3826 = vmatpush.bf16.msrb.mxu0 %v5522_v59 }
 0x204   : > { %v6800_v56 = vld [vmem:[%s7151_s27 + $0xd6c] sm:$0xf0] }
 0x205   : > { %v6289_v57 = vld [vmem:[%s7151_s27 + $0xf50] sm:$0xf]  ;;  %v6034_v62 = vor.u32 %v6800_v56, %v6033_v55  ;;  %3839 = vmatpush.bf16.msrb.mxu1 %v5778_v61 }
 0x206   : > { %v6864_v58 = vld [vmem:[%s7151_s27 + $0xf6c] sm:$0xf0] }
 0x207   : > { %v5489_v60 = vld [vmem:[%s7151_s27 + $0x910] sm:$0xf]  ;;  %v6290_v4 = vor.u32 %v6864_v58, %v6289_v57  ;;  %3852 = vmatpush.bf16.msrb.mxu2 %v6034_v62  ;;  %v3588_v57 = vpop.f32.mrf.mxu1 }
 0x208   : > { %v6664_v63 = vld [vmem:[%s7151_s27 + $0x92c] sm:$0xf0]  ;;  %v6540_v57 = vld [vmem:[%s7151_s27 + $0x554] sm:$0xf] }
 0x209   : > { %v5745_v1 = vld [vmem:[%s7151_s27 + $0xb10] sm:$0xf]  ;;  %v5490_v9 = vor.u32 %v6664_v63, %v5489_v60  ;;  %3865 = vmatpush.bf16.msrb.mxu3 %v6290_v4 }
 0x20a   : > { %v6728_v5 = vld [vmem:[%s7151_s27 + $0xb2c] sm:$0xf0] }
 0x20b   : > { %v6001_v6 = vld [vmem:[%s7151_s27 + $0xd10] sm:$0xf]  ;;  %v5746_v30 = vor.u32 %v6728_v5, %v5745_v1  ;;  %3827 = vmatpush.bf16.msrb.mxu0 %v5490_v9  ;;  %v3601_v9 = vpop.f32.mrf.mxu2 }
 0x20c   : > { %v6792_v7 = vld [vmem:[%s7151_s27 + $0xd2c] sm:$0xf0]  ;;  %v5235_v9 = vld [vmem:[%s7151_s27 + $0x730] sm:$0xf0] }
 0x20d   : > { %v6257_v50 = vld [vmem:[%s7151_s27 + $0xf10] sm:$0xf]  ;;  %v6002_v11 = vor.u32 %v6792_v7, %v6001_v6  ;;  %3840 = vmatpush.bf16.msrb.mxu1 %v5746_v30 }
 0x20e   : > { %v6856_v8 = vld [vmem:[%s7151_s27 + $0xf2c] sm:$0xf0] }
 0x20f   : > { %v5457_v12 = vld [vmem:[%s7151_s27 + $0x8d0] sm:$0xf]  ;;  %v6258_v17 = vor.u32 %v6856_v8, %v6257_v50  ;;  %3853 = vmatpush.bf16.msrb.mxu2 %v6002_v11 }
 0x210   : > { %v6656_v13 = vld [vmem:[%s7151_s27 + $0x8ec] sm:$0xf0] }
 0x211   : > { %v5713_v14 = vld [vmem:[%s7151_s27 + $0xad0] sm:$0xf]  ;;  %v5458_v23 = vor.u32 %v6656_v13, %v5457_v12  ;;  %3866 = vmatpush.bf16.msrb.mxu3 %v6258_v17  ;;  %v3614_v13 = vpop.f32.mrf.mxu3 }
 0x212   : > { %v6720_v18 = vld [vmem:[%s7151_s27 + $0xaec] sm:$0xf0]  ;;  %v6396_v13 = vld [vmem:[%s7151_s27 + $0xd4] sm:$0xf] }
 0x213   : > { %v5969_v19 = vld [vmem:[%s7151_s27 + $0xcd0] sm:$0xf]  ;;  %v5714_v24 = vor.u32 %v6720_v18, %v5713_v14  ;;  %3828 = vmatpush.bf16.msrb.mxu0 %v5458_v23  ;;  %v6428_v14 = vld [vmem:[%s7151_s27 + $0x1d4] sm:$0xf] }
 0x214   : > { %v6784_v20 = vld [vmem:[%s7151_s27 + $0xcec] sm:$0xf0]  ;;  %v4819_v18 = vld [vmem:[%s7151_s27 + $0x3f0] sm:$0xf0] }
 0x215   : > { %v6225_v21 = vld [vmem:[%s7151_s27 + $0xed0] sm:$0xf]  ;;  %v5970_v27 = vor.u32 %v6784_v20, %v5969_v19  ;;  %3841 = vmatpush.bf16.msrb.mxu1 %v5714_v24  ;;  %v6556_v19 = vld [vmem:[%s7151_s27 + $0x5d4] sm:$0xf] }
 0x216   : > { %v6848_v22 = vld [vmem:[%s7151_s27 + $0xeec] sm:$0xf0]  ;;  %v5075_v20 = vld [vmem:[%s7151_s27 + $0x5f0] sm:$0xf0] }
 0x217   : > { %v5425_v28 = vld [vmem:[%s7151_s27 + $0x890] sm:$0xf]  ;;  %v6226_v35 = vor.u32 %v6848_v22, %v6225_v21  ;;  %3854 = vmatpush.bf16.msrb.mxu2 %v5970_v27  ;;  %v5331_v23 = vld [vmem:[%s7151_s27 + $0x7f0] sm:$0xf0]  ;;  %v4566_v27 = vor.u32 %v6428_v14, %v4563_v15 }
 0x218   : > { %v6648_v29 = vld [vmem:[%s7151_s27 + $0x8ac] sm:$0xf0]  ;;  %v4435_v14 = vld [vmem:[%s7151_s27 + $0xf0] sm:$0xf0] }
 0x219   : > { %v5681_v33 = vld [vmem:[%s7151_s27 + $0xa90] sm:$0xf]  ;;  %v5426_v47 = vor.u32 %v6648_v29, %v5425_v28  ;;  %3867 = vmatpush.bf16.msrb.mxu3 %v6226_v35  ;;  %v4822_v28 = vor.u32 %v6492_v16, %v4819_v18  ;;  %v5078_v29 = vor.u32 %v6556_v19, %v5075_v20  ;;  %v6484_v35 = vld [vmem:[%s7151_s27 + $0x394] sm:$0xf]  ;;  %v7922_v16 = vpop.f32.mrf.mxu1 }
 0x21a   : > { %v6712_v37 = vld [vmem:[%s7151_s27 + $0xaac] sm:$0xf0]  ;;  %v6460_v15 = vld [vmem:[%s7151_s27 + $0x2d4] sm:$0xf] }
 0x21b   : > { %v5937_v38 = vld [vmem:[%s7151_s27 + $0xc90] sm:$0xf]  ;;  %v5682_v52 = vor.u32 %v6712_v37, %v5681_v33  ;;  %3829 = vmatpush.bf16.msrb.mxu0 %v5426_v47  ;;  %v6420_v33 = vld [vmem:[%s7151_s27 + $0x194] sm:$0xf]  ;;  %v5334_v37 = vor.u32 %v6620_v49, %v5331_v23  ;;  %v4438_v49 = vor.u32 %v6396_v13, %v4435_v14 }
 0x21c   : > { %v6776_v41 = vld [vmem:[%s7151_s27 + $0xcac] sm:$0xf0]  ;;  %v4691_v18 = vld [vmem:[%s7151_s27 + $0x2f0] sm:$0xf0] }
 0x21d   : > { %v6193_v45 = vld [vmem:[%s7151_s27 + $0xe90] sm:$0xf]  ;;  %v5938_v53 = vor.u32 %v6776_v41, %v5937_v38  ;;  %3842 = vmatpush.bf16.msrb.mxu1 %v5682_v52  ;;  %v4787_v38 = vld [vmem:[%s7151_s27 + $0x3b0] sm:$0xf0]  ;;  %v4694_v23 = vor.u32 %v6460_v15, %v4691_v18 }
 0x21e   : > { %v6840_v46 = vld [vmem:[%s7151_s27 + $0xeac] sm:$0xf0]  ;;  %v6548_v41 = vld [vmem:[%s7151_s27 + $0x594] sm:$0xf]  ;;  %v4790_v47 = vor.u32 %v6484_v35, %v4787_v38 }
 0x21f   : > { %v5393_v54 = vld [vmem:[%s7151_s27 + $0x850] sm:$0xf]  ;;  %v6194_v58 = vor.u32 %v6840_v46, %v6193_v45  ;;  %3855 = vmatpush.bf16.msrb.mxu2 %v5938_v53  ;;  %v5299_v45 = vld [vmem:[%s7151_s27 + $0x7b0] sm:$0xf0]  ;;  %v4534_v46 = vor.u32 %v6420_v33, %v4531_v34  ;;  %v5046_v51 = vor.u32 %v6548_v41, %v5043_v43  ;;  %v7932_v33 = vpop.f32.mrf.mxu2  ;;  %v7937_v41 = vpop.f32.mrf.mxu3 }
 0x220   : > { %v6640_v55 = vld [vmem:[%s7151_s27 + $0x86c] sm:$0xf0]  ;;  %v6412_v52 = vld [vmem:[%s7151_s27 + $0x154] sm:$0xf] }
 0x221   : > { %v5649_v56 = vld [vmem:[%s7151_s27 + $0xa50] sm:$0xf]  ;;  %v5394_v1 = vor.u32 %v6640_v55, %v5393_v54  ;;  %3868 = vmatpush.bf16.msrb.mxu3 %v6194_v58  ;;  %v4499_v53 = vld [vmem:[%s7151_s27 + $0x170] sm:$0xf0]  ;;  %v5302_v55 = vor.u32 %v6612_v44, %v5299_v45 }
 0x222   : > { %v6704_v59 = vld [vmem:[%s7151_s27 + $0xa6c] sm:$0xf0]  ;;  %v6476_v54 = vld [vmem:[%s7151_s27 + $0x354] sm:$0xf] }
 0x223   : > { %v5905_v60 = vld [vmem:[%s7151_s27 + $0xc50] sm:$0xf]  ;;  %v5650_v5 = vor.u32 %v6704_v59, %v5649_v56  ;;  %3830 = vmatpush.bf16.msrb.mxu0 %v5394_v1  ;;  %v4755_v56 = vld [vmem:[%s7151_s27 + $0x370] sm:$0xf0] }
 0x224   : > { %v6768_v61 = vld [vmem:[%s7151_s27 + $0xc6c] sm:$0xf0]  ;;  %v5011_v58 = vld [vmem:[%s7151_s27 + $0x570] sm:$0xf0] }
 0x225   : > { %v6161_v62 = vld [vmem:[%s7151_s27 + $0xe50] sm:$0xf]  ;;  %v5906_v6 = vor.u32 %v6768_v61, %v5905_v60  ;;  %3843 = vmatpush.bf16.msrb.mxu1 %v5650_v5  ;;  %v6604_v59 = vld [vmem:[%s7151_s27 + $0x754] sm:$0xf]  ;;  %v4502_v61 = vor.u32 %v6412_v52, %v4499_v53 }
 0x226   : > { %v6832_v63 = vld [vmem:[%s7151_s27 + $0xe6c] sm:$0xf0]  ;;  %v5267_v60 = vld [vmem:[%s7151_s27 + $0x770] sm:$0xf0] }
 0x227   : > { %v5361_v3 = vld [vmem:[%s7151_s27 + $0x810] sm:$0xf]  ;;  %v6162_v10 = vor.u32 %v6832_v63, %v6161_v62  ;;  %3856 = vmatpush.bf16.msrb.mxu2 %v5906_v6  ;;  %v4758_v62 = vor.u32 %v6476_v54, %v4755_v56  ;;  %v5014_v63 = vor.u32 %v6540_v57, %v5011_v58  ;;  %v6404_v1 = vld [vmem:[%s7151_s27 + $0x114] sm:$0xf]  ;;  %v5270_v5 = vor.u32 %v6604_v59, %v5267_v60 }
 0x228   : > { %v6632_v4 = vld [vmem:[%s7151_s27 + $0x82c] sm:$0xf0]  ;;  %v4723_v6 = vld [vmem:[%s7151_s27 + $0x330] sm:$0xf0] }
 0x229   : > { %v5617_v7 = vld [vmem:[%s7151_s27 + $0xa10] sm:$0xf]  ;;  %v5362_v17 = vor.u32 %v6632_v4, %v5361_v3  ;;  %3869 = vmatpush.bf16.msrb.mxu3 %v6162_v10  ;;  %v4467_v3 = vld [vmem:[%s7151_s27 + $0x130] sm:$0xf0] }
 0x22a   : > { %v6696_v50 = vld [vmem:[%s7151_s27 + $0xa2c] sm:$0xf0]  ;;  %v6468_v4 = vld [vmem:[%s7151_s27 + $0x314] sm:$0xf]  ;;  %v4470_v10 = vor.u32 %v6404_v1, %v4467_v3 }
 0x22b   : > { %v5873_v8 = vld [vmem:[%s7151_s27 + $0xc10] sm:$0xf]  ;;  %v5618_v21 = vor.u32 %v6696_v50, %v5617_v7  ;;  %3831 = vmatpush.bf16.msrb.mxu0 %v5362_v17  ;;  %v6532_v7 = vld [vmem:[%s7151_s27 + $0x514] sm:$0xf] }
 0x22c   : > { %v6760_v30 = vld [vmem:[%s7151_s27 + $0xc2c] sm:$0xf0]  ;;  %v4979_v50 = vld [vmem:[%s7151_s27 + $0x530] sm:$0xf0] }
 0x22d   : > { %v6129_v11 = vld [vmem:[%s7151_s27 + $0xe10] sm:$0xf]  ;;  %v5874_v22 = vor.u32 %v6760_v30, %v5873_v8  ;;  %3844 = vmatpush.bf16.msrb.mxu1 %v5618_v21  ;;  %v6596_v8 = vld [vmem:[%s7151_s27 + $0x714] sm:$0xf]  ;;  %v7917_v30 = vpop.f32.mrf.mxu0 }
 0x22e   : > { %v6824_v12 = vld [vmem:[%s7151_s27 + $0xe2c] sm:$0xf0]  ;;  %3832 = vmatmul.bf16.vlgmr.msrb.gmra.mxu0 %v7327_v39  ;;  %v5238_v17 = vor.u32 %v6596_v8, %v5235_v9  ;;  %v6524_v19 = vld [vmem:[%s7151_s27 + $0x4d4] sm:$0xf] }
 0x22f   : > { %v6130_v24 = vor.u32 %v6824_v12, %v6129_v11  ;;  %3857 = vmatpush.bf16.msrb.mxu2 %v5874_v22  ;;  %3876 = vmatpush.bf16.msra.mxu0 %v4566_v27  ;;  %v4726_v11 = vor.u32 %v6468_v4, %v4723_v6  ;;  %v4982_v12 = vor.u32 %v6532_v7, %v4979_v50  ;;  %v4947_v20 = vld [vmem:[%s7151_s27 + $0x4f0] sm:$0xf0]  ;;  %v3653_v50 = vpop.f32.mrf.mxu2 }
 0x230   : > { %3845 = vmatmul.bf16.vlgmr.msrb.gmra.mxu1 %v7331_v42  ;;  %v6588_v21 = vld [vmem:[%s7151_s27 + $0x6d4] sm:$0xf] }
 0x231   : > { %3870 = vmatpush.bf16.msrb.mxu3 %v6130_v24  ;;  %3889 = vmatpush.bf16.msra.mxu1 %v4822_v28  ;;  %v5203_v22 = vld [vmem:[%s7151_s27 + $0x6f0] sm:$0xf0]  ;;  %v4950_v24 = vor.u32 %v6524_v19, %v4947_v20 }
 0x232   : > { %3858 = vmatmul.bf16.vlgmr.msrb.gmra.mxu2 %v7323_v36  ;;  %v6388_v27 = vld [vmem:[%s7151_s27 + $0x94] sm:$0xf]  ;;  %v5206_v34 = vor.u32 %v6588_v21, %v5203_v22 }
 0x233   : > { %3902 = vmatpush.bf16.msra.mxu2 %v5078_v29  ;;  %3877 = vmatpush.bf16.msra.mxu0 %v4534_v46  ;;  %v4403_v28 = vld [vmem:[%s7151_s27 + $0xb0] sm:$0xf0] }
 0x234   : > { %3871 = vmatmul.bf16.vlgmr.msrb.gmra.mxu3 %v7329_v40  ;;  %v6452_v29 = vld [vmem:[%s7151_s27 + $0x294] sm:$0xf]  ;;  %v4406_v45 = vor.u32 %v6388_v27, %v4403_v28 }
 0x235   : > { %3915 = vmatpush.bf16.msra.mxu3 %v5334_v37  ;;  %3890 = vmatpush.bf16.msra.mxu1 %v4790_v47  ;;  %v4659_v35 = vld [vmem:[%s7151_s27 + $0x2b0] sm:$0xf0]  ;;  %v3627_v46 = vpop.f32.mrf.mxu0 }
 0x236   : > { %v6516_v37 = vld [vmem:[%s7151_s27 + $0x494] sm:$0xf]  ;;  %v4662_v47 = vor.u32 %v6452_v29, %v4659_v35 }
 0x237   : > { %3903 = vmatpush.bf16.msra.mxu2 %v5046_v51  ;;  %3878 = vmatpush.bf16.msra.mxu0 %v4502_v61  ;;  %v4915_v38 = vld [vmem:[%s7151_s27 + $0x4b0] sm:$0xf0] }
 0x238   : > { %v6580_v43 = vld [vmem:[%s7151_s27 + $0x694] sm:$0xf]  ;;  %v4918_v51 = vor.u32 %v6516_v37, %v4915_v38 }
 0x239   : > { %3916 = vmatpush.bf16.msra.mxu3 %v5302_v55  ;;  %3891 = vmatpush.bf16.msra.mxu1 %v4758_v62  ;;  %v5171_v44 = vld [vmem:[%s7151_s27 + $0x6b0] sm:$0xf0]  ;;  %v3640_v55 = vpop.f32.mrf.mxu1 }
 0x23a   : > { %v6380_v52 = vld [vmem:[%s7151_s27 + $0x54] sm:$0xf]  ;;  %v5174_v56 = vor.u32 %v6580_v43, %v5171_v44 }
 0x23b   : > { %3904 = vmatpush.bf16.msra.mxu2 %v5014_v63  ;;  %3879 = vmatpush.bf16.msra.mxu0 %v4470_v10  ;;  %v4371_v53 = vld [vmem:[%s7151_s27 + $0x70] sm:$0xf0] }
 0x23c   : > { %v6444_v54 = vld [vmem:[%s7151_s27 + $0x254] sm:$0xf]  ;;  %v4374_v62 = vor.u32 %v6380_v52, %v4371_v53 }
 0x23d   : > { %3917 = vmatpush.bf16.msra.mxu3 %v5270_v5  ;;  %3892 = vmatpush.bf16.msra.mxu1 %v4726_v11  ;;  %v4627_v57 = vld [vmem:[%s7151_s27 + $0x270] sm:$0xf0] }
 0x23e   : > { %v6508_v58 = vld [vmem:[%s7151_s27 + $0x454] sm:$0xf]  ;;  %v4630_v3 = vor.u32 %v6444_v54, %v4627_v57 }
 0x23f   : > { %3905 = vmatpush.bf16.msra.mxu2 %v4982_v12  ;;  %3880 = vmatpush.bf16.msra.mxu0 %v4438_v49  ;;  %v4883_v59 = vld [vmem:[%s7151_s27 + $0x470] sm:$0xf0]  ;;  %v3666_v12 = vpop.f32.mrf.mxu3 }
 0x240   : > { %v6572_v60 = vld [vmem:[%s7151_s27 + $0x654] sm:$0xf]  ;;  %v4886_v4 = vor.u32 %v6508_v58, %v4883_v59 }
 0x241   : > { %3918 = vmatpush.bf16.msra.mxu3 %v5238_v17  ;;  %3893 = vmatpush.bf16.msra.mxu1 %v4694_v23  ;;  %v5139_v61 = vld [vmem:[%s7151_s27 + $0x670] sm:$0xf0] }
 0x242   : > { %v6372_v63 = vld [vmem:[%s7151_s27 + $0x14] sm:$0xf]  ;;  %v5142_v8 = vor.u32 %v6572_v60, %v5139_v61 }
 0x243   : > { %3906 = vmatpush.bf16.msra.mxu2 %v4950_v24  ;;  %3881 = vmatpush.bf16.msra.mxu0 %v4406_v45  ;;  %v4339_v1 = vld [vmem:[%s7151_s27 + $0x30] sm:$0xf0] }
 0x244   : > { %v6436_v5 = vld [vmem:[%s7151_s27 + $0x214] sm:$0xf]  ;;  %v4342_v17 = vor.u32 %v6372_v63, %v4339_v1 }
 0x245   : > { %3919 = vmatpush.bf16.msra.mxu3 %v5206_v34  ;;  %3894 = vmatpush.bf16.msra.mxu1 %v4662_v47  ;;  %v4595_v6 = vld [vmem:[%s7151_s27 + $0x230] sm:$0xf0] }
 0x246   : > { %v6500_v7 = vld [vmem:[%s7151_s27 + $0x414] sm:$0xf]  ;;  %v4598_v21 = vor.u32 %v6436_v5, %v4595_v6 }
 0x247   : > { %3907 = vmatpush.bf16.msra.mxu2 %v4918_v51  ;;  %v4851_v9 = vld [vmem:[%s7151_s27 + $0x430] sm:$0xf0]  ;;  %3882 = vmatpush.bf16.msra.mxu0 %v4374_v62 }
 0x248   : > { %v6564_v10 = vld [vmem:[%s7151_s27 + $0x614] sm:$0xf]  ;;  %v4854_v22 = vor.u32 %v6500_v7, %v4851_v9 }
 0x249   : > { %3920 = vmatpush.bf16.msra.mxu3 %v5174_v56  ;;  %v5107_v11 = vld [vmem:[%s7151_s27 + $0x630] sm:$0xf0]  ;;  %3895 = vmatpush.bf16.msra.mxu1 %v4630_v3 }
 0x24a   : > { %v6684_v13 = vld [vmem:[%s7151_s27 + $0x9d4] sm:$0xf]  ;;  %v5110_v24 = vor.u32 %v6564_v10, %v5107_v11 }
 0x24b   : > { %v5587_v14 = vld [vmem:[%s7151_s27 + $0x9f0] sm:$0xf0]  ;;  %3908 = vmatpush.bf16.msra.mxu2 %v4886_v4  ;;  %3883 = vmatpush.bf16.msra.mxu0 %v4342_v17 }
 0x24c   : > { %v6748_v15 = vld [vmem:[%s7151_s27 + $0xbd4] sm:$0xf]  ;;  %v5590_v27 = vor.u32 %v6684_v13, %v5587_v14  ;;  %v7993_v13 = vpop.f32.mrf.mxu0 }
 0x24d   : > { %v5843_v18 = vld [vmem:[%s7151_s27 + $0xbf0] sm:$0xf0]  ;;  %3921 = vmatpush.bf16.msra.mxu3 %v5142_v8  ;;  %3896 = vmatpush.bf16.msra.mxu1 %v4598_v21 }
 0x24e   : > { %v6812_v19 = vld [vmem:[%s7151_s27 + $0xdd4] sm:$0xf]  ;;  %v5846_v28 = vor.u32 %v6748_v15, %v5843_v18  ;;  %3884 = vmatmul.bf16.vlgmr.msra.gmra.mxu0 %v7270_v26 }
 0x24f   : > { %v6099_v20 = vld [vmem:[%s7151_s27 + $0xdf0] sm:$0xf0]  ;;  %3909 = vmatpush.bf16.msra.mxu2 %v4854_v22  ;;  %3928 = vmatpush.bf16.msrb.mxu0 %v5590_v27 }
 0x250   : > { %v6876_v49 = vld [vmem:[%s7151_s27 + $0xfd4] sm:$0xf]  ;;  %v6102_v29 = vor.u32 %v6812_v19, %v6099_v20  ;;  %3897 = vmatmul.bf16.vlgmr.msra.gmra.mxu1 %v7276_v32  ;;  %v7998_v20 = vpop.f32.mrf.mxu1 }
 0x251   : > { %v6355_v23 = vld [vmem:[%s7151_s27 + $0xff0] sm:$0xf0]  ;;  %3922 = vmatpush.bf16.msra.mxu3 %v5110_v24  ;;  %3941 = vmatpush.bf16.msrb.mxu1 %v5846_v28 }
 0x252   : > { %v6676_v34 = vld [vmem:[%s7151_s27 + $0x994] sm:$0xf]  ;;  %v6358_v38 = vor.u32 %v6876_v49, %v6355_v23  ;;  %3910 = vmatmul.bf16.vlgmr.msra.gmra.mxu2 %v7268_v25 }
 0x253   : > { %v5555_v35 = vld [vmem:[%s7151_s27 + $0x9b0] sm:$0xf0]  ;;  %3954 = vmatpush.bf16.msrb.mxu2 %v6102_v29 }
 0x254   : > { %v6740_v37 = vld [vmem:[%s7151_s27 + $0xb94] sm:$0xf]  ;;  %v5558_v51 = vor.u32 %v6676_v34, %v5555_v35  ;;  %3923 = vmatmul.bf16.vlgmr.msra.gmra.mxu3 %v7274_v31 }
 0x255   : > { %v5811_v43 = vld [vmem:[%s7151_s27 + $0xbb0] sm:$0xf0]  ;;  %3967 = vmatpush.bf16.msrb.mxu3 %v6358_v38 }
 0x256   : > { %v6804_v44 = vld [vmem:[%s7151_s27 + $0xd94] sm:$0xf]  ;;  %v5814_v52 = vor.u32 %v6740_v37, %v5811_v43  ;;  %3929 = vmatpush.bf16.msrb.mxu0 %v5558_v51  ;;  %v8008_v43 = vpop.f32.mrf.mxu2  ;;  %v8013_v51 = vpop.f32.mrf.mxu3 }
 0x257   : > { %v6067_v45 = vld [vmem:[%s7151_s27 + $0xdb0] sm:$0xf0] }
 0x258   : > { %v6868_v46 = vld [vmem:[%s7151_s27 + $0xf94] sm:$0xf]  ;;  %v6070_v53 = vor.u32 %v6804_v44, %v6067_v45  ;;  %3942 = vmatpush.bf16.msrb.mxu1 %v5814_v52 }
 0x259   : > { %v6323_v47 = vld [vmem:[%s7151_s27 + $0xfb0] sm:$0xf0] }
 0x25a   : > { %v6668_v54 = vld [vmem:[%s7151_s27 + $0x954] sm:$0xf]  ;;  %v6326_v57 = vor.u32 %v6868_v46, %v6323_v47  ;;  %3955 = vmatpush.bf16.msrb.mxu2 %v6070_v53 }
 0x25b   : > { %v5523_v55 = vld [vmem:[%s7151_s27 + $0x970] sm:$0xf0] }
 0x25c   : > { %v6732_v56 = vld [vmem:[%s7151_s27 + $0xb54] sm:$0xf]  ;;  %v5526_v63 = vor.u32 %v6668_v54, %v5523_v55  ;;  %3968 = vmatpush.bf16.msrb.mxu3 %v6326_v57  ;;  %v3679_v55 = vpop.f32.mrf.mxu0 }
 0x25d   : > { %v5779_v58 = vld [vmem:[%s7151_s27 + $0xb70] sm:$0xf0]  ;;  %v4793_v55 = vld [vmem:[%s7151_s27 + $0x398] sm:$0xf] }
 0x25e   : > { %v6796_v59 = vld [vmem:[%s7151_s27 + $0xd54] sm:$0xf]  ;;  %v5782_v1 = vor.u32 %v6732_v56, %v5779_v58  ;;  %3930 = vmatpush.bf16.msrb.mxu0 %v5526_v63 }
 0x25f   : > { %v6035_v60 = vld [vmem:[%s7151_s27 + $0xd70] sm:$0xf0] }
 0x260   : > { %v6860_v61 = vld [vmem:[%s7151_s27 + $0xf54] sm:$0xf]  ;;  %v6038_v3 = vor.u32 %v6796_v59, %v6035_v60  ;;  %3943 = vmatpush.bf16.msrb.mxu1 %v5782_v1 }
 0x261   : > { %v6291_v62 = vld [vmem:[%s7151_s27 + $0xf70] sm:$0xf0] }
 0x262   : > { %v6660_v4 = vld [vmem:[%s7151_s27 + $0x914] sm:$0xf]  ;;  %v6294_v7 = vor.u32 %v6860_v61, %v6291_v62  ;;  %3956 = vmatpush.bf16.msrb.mxu2 %v6038_v3  ;;  %v3692_v61 = vpop.f32.mrf.mxu1 }
 0x263   : > { %v5491_v5 = vld [vmem:[%s7151_s27 + $0x930] sm:$0xf0]  ;;  %v6617_v61 = vld [vmem:[%s7151_s27 + $0x7b4] sm:$0xf0] }
 0x264   : > { %v6724_v6 = vld [vmem:[%s7151_s27 + $0xb14] sm:$0xf]  ;;  %v5494_v12 = vor.u32 %v6660_v4, %v5491_v5  ;;  %3969 = vmatpush.bf16.msrb.mxu3 %v6294_v7 }
 0x265   : > { %v5747_v50 = vld [vmem:[%s7151_s27 + $0xb30] sm:$0xf0] }
 0x266   : > { %v6788_v8 = vld [vmem:[%s7151_s27 + $0xd14] sm:$0xf]  ;;  %v5750_v14 = vor.u32 %v6724_v6, %v5747_v50  ;;  %3931 = vmatpush.bf16.msrb.mxu0 %v5494_v12  ;;  %v783_v6 = vperm.slane %v7839_v2, 3  ;;  %v3705_v2 = vpop.f32.mrf.mxu2 }
 0x267   : > { %v6003_v9 = vld [vmem:[%s7151_s27 + $0xd30] sm:$0xf0]  ;;  %v4473_v2 = vld [vmem:[%s7151_s27 + $0x118] sm:$0xf] }
 0x268   : > { %v6852_v10 = vld [vmem:[%s7151_s27 + $0xf14] sm:$0xf]  ;;  %v6006_v15 = vor.u32 %v6788_v8, %v6003_v9  ;;  %3944 = vmatpush.bf16.msrb.mxu1 %v5750_v14 }
 0x269   : > { %v6259_v11 = vld [vmem:[%s7151_s27 + $0xf30] sm:$0xf0] }
 0x26a   : > { %v6652_v17 = vld [vmem:[%s7151_s27 + $0x8d4] sm:$0xf]  ;;  %v6262_v21 = vor.u32 %v6852_v10, %v6259_v11  ;;  %3957 = vmatpush.bf16.msrb.mxu2 %v6006_v15 }
 0x26b   : > { %v5459_v18 = vld [vmem:[%s7151_s27 + $0x8f0] sm:$0xf0] }
 0x26c   : > { %v6716_v19 = vld [vmem:[%s7151_s27 + $0xad4] sm:$0xf]  ;;  %v5462_v28 = vor.u32 %v6652_v17, %v5459_v18  ;;  %3970 = vmatpush.bf16.msrb.mxu3 %v6262_v21  ;;  %v3718_v21 = vpop.f32.mrf.mxu3 }
 0x26d   : > { %v5715_v22 = vld [vmem:[%s7151_s27 + $0xaf0] sm:$0xf0]  ;;  %v6537_v21 = vld [vmem:[%s7151_s27 + $0x534] sm:$0xf0] }
 0x26e   : > { %v6780_v49 = vld [vmem:[%s7151_s27 + $0xcd4] sm:$0xf]  ;;  %v5718_v29 = vor.u32 %v6716_v19, %v5715_v22  ;;  %3932 = vmatpush.bf16.msrb.mxu0 %v5462_v28  ;;  %v3678_v22 = vadd.f32 %v7993_v13, %v783_v6  ;;  %v6497_v28 = vld [vmem:[%s7151_s27 + $0x3f4] sm:$0xf0] }
 0x26f   : > { %v5971_v23 = vld [vmem:[%s7151_s27 + $0xcf0] sm:$0xf0]  ;;  %v6625_v13 = vld [vmem:[%s7151_s27 + $0x7f4] sm:$0xf0] }
 0x270   : > { %v6844_v24 = vld [vmem:[%s7151_s27 + $0xed4] sm:$0xf]  ;;  %v5974_v34 = vor.u32 %v6780_v49, %v5971_v23  ;;  %3945 = vmatpush.bf16.msrb.mxu1 %v5718_v29  ;;  %v4569_v49 = vld [vmem:[%s7151_s27 + $0x1d8] sm:$0xf] }
 0x271   : > { %v6227_v27 = vld [vmem:[%s7151_s27 + $0xef0] sm:$0xf0]  ;;  %v6433_v23 = vld [vmem:[%s7151_s27 + $0x1f4] sm:$0xf0] }
 0x272   : > { %v6644_v35 = vld [vmem:[%s7151_s27 + $0x894] sm:$0xf]  ;;  %v6230_v44 = vor.u32 %v6844_v24, %v6227_v27  ;;  %3958 = vmatpush.bf16.msrb.mxu2 %v5974_v34  ;;  %v4825_v24 = vld [vmem:[%s7151_s27 + $0x3d8] sm:$0xf] }
 0x273   : > { %v5427_v37 = vld [vmem:[%s7151_s27 + $0x8b0] sm:$0xf0]  ;;  %v5081_v29 = vld [vmem:[%s7151_s27 + $0x5d8] sm:$0xf] }
 0x274   : > { %v6708_v38 = vld [vmem:[%s7151_s27 + $0xa94] sm:$0xf]  ;;  %v5430_v54 = vor.u32 %v6644_v35, %v5427_v37  ;;  %3971 = vmatpush.bf16.msrb.mxu3 %v6230_v44  ;;  %v6561_v34 = vld [vmem:[%s7151_s27 + $0x5f4] sm:$0xf0] }
 0x275   : > { %v5683_v45 = vld [vmem:[%s7151_s27 + $0xab0] sm:$0xf0]  ;;  %v4761_v6 = vld [vmem:[%s7151_s27 + $0x358] sm:$0xf] }
 0x276   : > { %v6772_v46 = vld [vmem:[%s7151_s27 + $0xc94] sm:$0xf]  ;;  %v5686_v56 = vor.u32 %v6708_v38, %v5683_v45  ;;  %3933 = vmatpush.bf16.msrb.mxu0 %v5430_v54  ;;  %v5337_v38 = vld [vmem:[%s7151_s27 + $0x7d8] sm:$0xf]  ;;  %v4570_v45 = vor.u32 %v6433_v23, %v4569_v49 }
 0x277   : > { %v5939_v47 = vld [vmem:[%s7151_s27 + $0xcb0] sm:$0xf0]  ;;  %v6425_v54 = vld [vmem:[%s7151_s27 + $0x1b4] sm:$0xf0] }
 0x278   : > { %v6836_v52 = vld [vmem:[%s7151_s27 + $0xe94] sm:$0xf]  ;;  %v5942_v57 = vor.u32 %v6772_v46, %v5939_v47  ;;  %3946 = vmatpush.bf16.msrb.mxu1 %v5686_v56  ;;  %v3691_v46 = vadd.f32 %v7998_v20, %v3678_v22  ;;  %v4826_v47 = vor.u32 %v6497_v28, %v4825_v24  ;;  %v5338_v56 = vor.u32 %v6625_v13, %v5337_v38  ;;  %v5241_v22 = vld [vmem:[%s7151_s27 + $0x718] sm:$0xf]  ;;  %v3729_v24 = vpop.f32.mrf.mxu0 }
 0x279   : > { %v6195_v53 = vld [vmem:[%s7151_s27 + $0xeb0] sm:$0xf0]  ;;  %v3626_v20 = vadd.f32 %v7917_v30, %v7863_v48  ;;  %v6481_v30 = vld [vmem:[%s7151_s27 + $0x374] sm:$0xf0] }
 0x27a   : > { %v6636_v58 = vld [vmem:[%s7151_s27 + $0x854] sm:$0xf]  ;;  %v6198_v62 = vor.u32 %v6836_v52, %v6195_v53  ;;  %3959 = vmatpush.bf16.msrb.mxu2 %v5942_v57  ;;  %v5082_v52 = vor.u32 %v6561_v34, %v5081_v29  ;;  %v4537_v53 = vld [vmem:[%s7151_s27 + $0x198] sm:$0xf]  ;;  %v3742_v34 = vpop.f32.mrf.mxu1 }
 0x27b   : > { %v5395_v59 = vld [vmem:[%s7151_s27 + $0x870] sm:$0xf0]  ;;  %v6489_v57 = vld [vmem:[%s7151_s27 + $0x3b4] sm:$0xf0] }
 0x27c   : > { %v6700_v60 = vld [vmem:[%s7151_s27 + $0xa54] sm:$0xf]  ;;  %v5398_v7 = vor.u32 %v6636_v58, %v5395_v59  ;;  %3972 = vmatpush.bf16.msrb.mxu3 %v6198_v62  ;;  %v5049_v58 = vld [vmem:[%s7151_s27 + $0x598] sm:$0xf]  ;;  %v4538_v62 = vor.u32 %v6425_v54, %v4537_v53 }
 0x27d   : > { %v5651_v63 = vld [vmem:[%s7151_s27 + $0xa70] sm:$0xf0]  ;;  %v6553_v59 = vld [vmem:[%s7151_s27 + $0x5b4] sm:$0xf0] }
 0x27e   : > { %v6764_v1 = vld [vmem:[%s7151_s27 + $0xc54] sm:$0xf]  ;;  %v5654_v9 = vor.u32 %v6700_v60, %v5651_v63  ;;  %3934 = vmatpush.bf16.msrb.mxu0 %v5398_v7  ;;  %v5305_v60 = vld [vmem:[%s7151_s27 + $0x798] sm:$0xf]  ;;  %v3704_v63 = vadd.f32 %v8008_v43, %v3691_v46 }
 0x27f   : > { %v5907_v3 = vld [vmem:[%s7151_s27 + $0xc70] sm:$0xf0]  ;;  %v5306_v48 = vor.u32 %v6617_v61, %v5305_v60  ;;  %v5017_v7 = vld [vmem:[%s7151_s27 + $0x558] sm:$0xf] }
 0x280   : > { %v6828_v4 = vld [vmem:[%s7151_s27 + $0xe54] sm:$0xf]  ;;  %v5910_v10 = vor.u32 %v6764_v1, %v5907_v3  ;;  %3947 = vmatpush.bf16.msrb.mxu1 %v5654_v9  ;;  %v4794_v1 = vor.u32 %v6489_v57, %v4793_v55  ;;  %v5050_v3 = vor.u32 %v6553_v59, %v5049_v58  ;;  %v5273_v43 = vld [vmem:[%s7151_s27 + $0x758] sm:$0xf]  ;;  %v3639_v9 = vadd.f32 %v7922_v16, %v3626_v20  ;;  %v3755_v57 = vpop.f32.mrf.mxu2  ;;  %v3768_v20 = vpop.f32.mrf.mxu3 }
 0x281   : > { %v6163_v5 = vld [vmem:[%s7151_s27 + $0xe70] sm:$0xf0]  ;;  %v6409_v16 = vld [vmem:[%s7151_s27 + $0x134] sm:$0xf0] }
 0x282   : > { %v6628_v50 = vld [vmem:[%s7151_s27 + $0x814] sm:$0xf]  ;;  %v6166_v15 = vor.u32 %v6828_v4, %v6163_v5  ;;  %3960 = vmatpush.bf16.msrb.mxu2 %v5910_v10  ;;  %v4505_v4 = vld [vmem:[%s7151_s27 + $0x158] sm:$0xf]  ;;  %v4474_v23 = vor.u32 %v6409_v16, %v4473_v2 }
 0x283   : > { %v5363_v8 = vld [vmem:[%s7151_s27 + $0x830] sm:$0xf0]  ;;  %v6417_v5 = vld [vmem:[%s7151_s27 + $0x174] sm:$0xf0] }
 0x284   : > { %v6692_v11 = vld [vmem:[%s7151_s27 + $0xa14] sm:$0xf]  ;;  %v5366_v27 = vor.u32 %v6628_v50, %v5363_v8  ;;  %3973 = vmatpush.bf16.msrb.mxu3 %v6166_v15  ;;  %v6545_v50 = vld [vmem:[%s7151_s27 + $0x574] sm:$0xf0]  ;;  %v4506_v10 = vor.u32 %v6417_v5, %v4505_v4 }
 0x285   : > { %v5619_v12 = vld [vmem:[%s7151_s27 + $0xa30] sm:$0xf0]  ;;  %v6609_v8 = vld [vmem:[%s7151_s27 + $0x774] sm:$0xf0] }
 0x286   : > { %v6756_v14 = vld [vmem:[%s7151_s27 + $0xc14] sm:$0xf]  ;;  %v5622_v35 = vor.u32 %v6692_v11, %v5619_v12  ;;  %3935 = vmatpush.bf16.msrb.mxu0 %v5366_v27  ;;  %v3717_v11 = vadd.f32 %v8013_v51, %v3704_v63  ;;  %v4762_v12 = vor.u32 %v6481_v30, %v4761_v6  ;;  %v4729_v15 = vld [vmem:[%s7151_s27 + $0x318] sm:$0xf]  ;;  %v3652_v51 = vadd.f32 %v7932_v33, %v3639_v9 }
 0x287   : > { %v5875_v17 = vld [vmem:[%s7151_s27 + $0xc30] sm:$0xf0]  ;;  %v6601_v49 = vld [vmem:[%s7151_s27 + $0x734] sm:$0xf0] }
 0x288   : > { %v6820_v18 = vld [vmem:[%s7151_s27 + $0xe14] sm:$0xf]  ;;  %v5878_v37 = vor.u32 %v6756_v14, %v5875_v17  ;;  %3948 = vmatpush.bf16.msrb.mxu1 %v5622_v35  ;;  %v5018_v14 = vor.u32 %v6545_v50, %v5017_v7  ;;  %v5274_v17 = vor.u32 %v6609_v8, %v5273_v43  ;;  %v3730_v29 = vadd.f32 %v3729_v24, %v3717_v11  ;;  %v4441_v35 = vld [vmem:[%s7151_s27 + $0xd8] sm:$0xf]  ;;  %v3731_v7 = vpop.f32.mrf.mxu0  ;;  %v3744_v11 = vpop.f32.mrf.mxu1 }
 0x289   : > { %v6131_v19 = vld [vmem:[%s7151_s27 + $0xe30] sm:$0xf0]  ;;  %3936 = vmatmul.bf16.vlgmr.msrb.gmra.mxu0 %v7327_v39  ;;  %v4697_v33 = vld [vmem:[%s7151_s27 + $0x2d8] sm:$0xf]  ;;  %v5242_v38 = vor.u32 %v6601_v49, %v5241_v22  ;;  %v3665_v53 = vadd.f32 %v7937_v41, %v3652_v51 }
 0x28a   : > { %v6134_v44 = vor.u32 %v6820_v18, %v6131_v19  ;;  %3961 = vmatpush.bf16.msrb.mxu2 %v5878_v37  ;;  %3980 = vmatpush.bf16.msra.mxu0 %v4570_v45  ;;  %v6473_v18 = vld [vmem:[%s7151_s27 + $0x334] sm:$0xf0]  ;;  %v3743_v46 = vadd.f32 %v3742_v34, %v3730_v29  ;;  %v3757_v29 = vpop.f32.mrf.mxu2 }
 0x28b   : > { %3949 = vmatmul.bf16.vlgmr.msrb.gmra.mxu1 %v7331_v42  ;;  %v4985_v19 = vld [vmem:[%s7151_s27 + $0x518] sm:$0xf]  ;;  %v4730_v27 = vor.u32 %v6473_v18, %v4729_v15  ;;  %v4197_v5 = vrot.slane %v3665_v53, 4 }
 0x28c   : > { %3974 = vmatpush.bf16.msrb.mxu3 %v6134_v44  ;;  %3993 = vmatpush.bf16.msra.mxu1 %v4826_v47  ;;  %v4986_v28 = vor.u32 %v6537_v21, %v4985_v19  ;;  %v6401_v37 = vld [vmem:[%s7151_s27 + $0xf4] sm:$0xf0]  ;;  %v3756_v61 = vadd.f32 %v3755_v57, %v3743_v46 }
 0x28d   : > { %3962 = vmatmul.bf16.vlgmr.msrb.gmra.mxu2 %v7323_v36  ;;  %v6465_v13 = vld [vmem:[%s7151_s27 + $0x2f4] sm:$0xf0]  ;;  %v4442_v54 = vor.u32 %v6401_v37, %v4441_v35 }
 0x28e   : > { %4006 = vmatpush.bf16.msra.mxu2 %v5082_v52  ;;  %3981 = vmatpush.bf16.msra.mxu0 %v4538_v62  ;;  %v4953_v44 = vld [vmem:[%s7151_s27 + $0x4d8] sm:$0xf]  ;;  %v4698_v55 = vor.u32 %v6465_v13, %v4697_v33  ;;  %v3769_v6 = vadd.f32 %v3768_v20, %v3756_v61  ;;  %v3770_v33 = vpop.f32.mrf.mxu3 }
 0x28f   : > { %3975 = vmatmul.bf16.vlgmr.msrb.gmra.mxu3 %v7329_v40  ;;  %v6529_v45 = vld [vmem:[%s7151_s27 + $0x4f4] sm:$0xf0] }
 0x290   : > { %4019 = vmatpush.bf16.msra.mxu3 %v5338_v56  ;;  %3994 = vmatpush.bf16.msra.mxu1 %v4794_v1  ;;  %v5209_v47 = vld [vmem:[%s7151_s27 + $0x6d8] sm:$0xf]  ;;  %v4954_v56 = vor.u32 %v6529_v45, %v4953_v44 }
 0x291   : > { %v6593_v52 = vld [vmem:[%s7151_s27 + $0x6f4] sm:$0xf0] }
 0x292   : > { %4007 = vmatpush.bf16.msra.mxu2 %v5050_v3  ;;  %3982 = vmatpush.bf16.msra.mxu0 %v4506_v10  ;;  %v4409_v58 = vld [vmem:[%s7151_s27 + $0x98] sm:$0xf]  ;;  %v5210_v41 = vor.u32 %v6593_v52, %v5209_v47 }
 0x293   : > { %v6393_v59 = vld [vmem:[%s7151_s27 + $0xb4] sm:$0xf0] }
 0x294   : > { %4020 = vmatpush.bf16.msra.mxu3 %v5306_v48  ;;  %3995 = vmatpush.bf16.msra.mxu1 %v4762_v12  ;;  %v4665_v60 = vld [vmem:[%s7151_s27 + $0x298] sm:$0xf]  ;;  %v4410_v48 = vor.u32 %v6393_v59, %v4409_v58  ;;  %v4198_v12 = vrot.slane %v3769_v6, 2 }
 0x295   : > { %v6457_v62 = vld [vmem:[%s7151_s27 + $0x2b4] sm:$0xf0] }
 0x296   : > { %4008 = vmatpush.bf16.msra.mxu2 %v5018_v14  ;;  %3983 = vmatpush.bf16.msra.mxu0 %v4474_v23  ;;  %v4921_v63 = vld [vmem:[%s7151_s27 + $0x498] sm:$0xf]  ;;  %v4666_v50 = vor.u32 %v6457_v62, %v4665_v60  ;;  %v4205_v18 = vsel %vm4204_vm1, %v4197_v5, %v4198_v12 }
 0x297   : > { %v6521_v1 = vld [vmem:[%s7151_s27 + $0x4b4] sm:$0xf0]  ;;  %v4207_v49 = vsel %vm4206_vm2, %v7797_v0, %v4205_v18 }
 0x298   : > { %4021 = vmatpush.bf16.msra.mxu3 %v5274_v17  ;;  %3996 = vmatpush.bf16.msra.mxu1 %v4730_v27  ;;  %v5177_v3 = vld [vmem:[%s7151_s27 + $0x698] sm:$0xf]  ;;  %v4922_v43 = vor.u32 %v6521_v1, %v4921_v63  ;;  %4213 = vst [vmem:[%s8115_s11] sm:$0xff] %v4207_v49 }
 0x299   : > { %v6585_v4 = vld [vmem:[%s7151_s27 + $0x6b4] sm:$0xf0] }
 0x29a   : > { %4009 = vmatpush.bf16.msra.mxu2 %v4986_v28  ;;  %3984 = vmatpush.bf16.msra.mxu0 %v4442_v54  ;;  %v4377_v30 = vld [vmem:[%s7151_s27 + $0x58] sm:$0xf]  ;;  %v5178_v14 = vor.u32 %v6585_v4, %v5177_v3 }
 0x29b   : > { %v6385_v8 = vld [vmem:[%s7151_s27 + $0x74] sm:$0xf0] }
 0x29c   : > { %4022 = vmatpush.bf16.msra.mxu3 %v5242_v38  ;;  %3997 = vmatpush.bf16.msra.mxu1 %v4698_v55  ;;  %v4633_v9 = vld [vmem:[%s7151_s27 + $0x258] sm:$0xf]  ;;  %v4378_v19 = vor.u32 %v6385_v8, %v4377_v30 }
 0x29d   : > { %v6449_v10 = vld [vmem:[%s7151_s27 + $0x274] sm:$0xf0] }
 0x29e   : > { %4010 = vmatpush.bf16.msra.mxu2 %v4954_v56  ;;  %v4889_v2 = vld [vmem:[%s7151_s27 + $0x458] sm:$0xf]  ;;  %3985 = vmatpush.bf16.msra.mxu0 %v4410_v48  ;;  %v4634_v51 = vor.u32 %v6449_v10, %v4633_v9 }
 0x29f   : > { %v6513_v16 = vld [vmem:[%s7151_s27 + $0x474] sm:$0xf0] }
 0x2a0   : > { %4023 = vmatpush.bf16.msra.mxu3 %v5210_v41  ;;  %v5145_v15 = vld [vmem:[%s7151_s27 + $0x658] sm:$0xf]  ;;  %3998 = vmatpush.bf16.msra.mxu1 %v4666_v50  ;;  %v4890_v23 = vor.u32 %v6513_v16, %v4889_v2 }
 0x2a1   : > { %v6577_v17 = vld [vmem:[%s7151_s27 + $0x674] sm:$0xf0] }
 0x2a2   : > { %v4345_v21 = vld [vmem:[%s7151_s27 + $0x18] sm:$0xf]  ;;  %4011 = vmatpush.bf16.msra.mxu2 %v4922_v43  ;;  %v5146_v34 = vor.u32 %v6577_v17, %v5145_v15  ;;  %3986 = vmatpush.bf16.msra.mxu0 %v4378_v19 }
 0x2a3   : > { %v6377_v22 = vld [vmem:[%s7151_s27 + $0x34] sm:$0xf0] }
 0x2a4   : > { %v4601_v24 = vld [vmem:[%s7151_s27 + $0x218] sm:$0xf]  ;;  %4024 = vmatpush.bf16.msra.mxu3 %v5178_v14  ;;  %v4346_v45 = vor.u32 %v6377_v22, %v4345_v21  ;;  %3999 = vmatpush.bf16.msra.mxu1 %v4634_v51  ;;  %v8163_v21 = vld [vmem:[%s7157_s5] sm:$0xff] }
 0x2a5   : > { %v6441_v27 = vld [vmem:[%s7151_s27 + $0x234] sm:$0xf0]  ;;  %v784_v22 = vperm.slane %v8163_v21, 4 }
 0x2a6   : > { %v4857_v28 = vld [vmem:[%s7151_s27 + $0x418] sm:$0xf]  ;;  %4012 = vmatpush.bf16.msra.mxu2 %v4890_v23  ;;  %v4602_v53 = vor.u32 %v6441_v27, %v4601_v24  ;;  %3987 = vmatpush.bf16.msra.mxu0 %v4346_v45 }
 0x2a7   : > { %v6505_v35 = vld [vmem:[%s7151_s27 + $0x434] sm:$0xf0] }
 0x2a8   : > { %v5113_v0 = vld [vmem:[%s7151_s27 + $0x618] sm:$0xf]  ;;  %v4858_v54 = vor.u32 %v6505_v35, %v4857_v28  ;;  %4025 = vmatpush.bf16.msra.mxu3 %v5146_v34  ;;  %4000 = vmatpush.bf16.msra.mxu1 %v4602_v53  ;;  %v3781_v34 = vpop.f32.mrf.mxu0 }
 0x2a9   : > { %v6569_v37 = vld [vmem:[%s7151_s27 + $0x634] sm:$0xf0]  ;;  %3988 = vmatmul.bf16.vlgmr.msra.gmra.mxu0 %v7270_v26 }
 0x2aa   : > { %v5593_v38 = vld [vmem:[%s7151_s27 + $0x9d8] sm:$0xf]  ;;  %v5114_v57 = vor.u32 %v6569_v37, %v5113_v0  ;;  %4013 = vmatpush.bf16.msra.mxu2 %v4858_v54 }
 0x2ab   : > { %v6689_v13 = vld [vmem:[%s7151_s27 + $0x9f4] sm:$0xf0]  ;;  %4001 = vmatmul.bf16.vlgmr.msra.gmra.mxu1 %v7276_v32 }
 0x2ac   : > { %v5849_v44 = vld [vmem:[%s7151_s27 + $0xbd8] sm:$0xf]  ;;  %v5594_v58 = vor.u32 %v6689_v13, %v5593_v38  ;;  %4026 = vmatpush.bf16.msra.mxu3 %v5114_v57  ;;  %v3782_v13 = vadd.f32 %v3781_v34, %v784_v22 }
 0x2ad   : > { %v6753_v46 = vld [vmem:[%s7151_s27 + $0xbf4] sm:$0xf0]  ;;  %4014 = vmatmul.bf16.vlgmr.msra.gmra.mxu2 %v7268_v25 }
 0x2ae   : > { %v6105_v47 = vld [vmem:[%s7151_s27 + $0xdd8] sm:$0xf]  ;;  %v5850_v59 = vor.u32 %v6753_v46, %v5849_v44  ;;  %4032 = vmatpush.bf16.msrb.mxu0 %v5594_v58  ;;  %v3794_v44 = vpop.f32.mrf.mxu1 }
 0x2af   : > { %v6817_v52 = vld [vmem:[%s7151_s27 + $0xdf4] sm:$0xf0]  ;;  %4027 = vmatmul.bf16.vlgmr.msra.gmra.mxu3 %v7274_v31 }
 0x2b0   : > { %v6361_v55 = vld [vmem:[%s7151_s27 + $0xfd8] sm:$0xf]  ;;  %v6106_v60 = vor.u32 %v6817_v52, %v6105_v47  ;;  %4045 = vmatpush.bf16.msrb.mxu1 %v5850_v59 }
 0x2b1   : > { %v6881_v56 = vld [vmem:[%s7151_s27 + $0xff4] sm:$0xf0] }
 0x2b2   : > { %v5561_v41 = vld [vmem:[%s7151_s27 + $0x998] sm:$0xf]  ;;  %v6362_v62 = vor.u32 %v6881_v56, %v6361_v55  ;;  %4058 = vmatpush.bf16.msrb.mxu2 %v6106_v60  ;;  %v3795_v55 = vadd.f32 %v3794_v44, %v3782_v13  ;;  %v6493_v13 = vld [vmem:[%s7151_s27 + $0x3dc] sm:$0xf] }
 0x2b3   : > { %v6681_v61 = vld [vmem:[%s7151_s27 + $0x9b4] sm:$0xf0] }
 0x2b4   : > { %v5817_v20 = vld [vmem:[%s7151_s27 + $0xb98] sm:$0xf]  ;;  %v5562_v6 = vor.u32 %v6681_v61, %v5561_v41  ;;  %4071 = vmatpush.bf16.msrb.mxu3 %v6362_v62  ;;  %v3807_v61 = vpop.f32.mrf.mxu2 }
 0x2b5   : > { %v6745_v63 = vld [vmem:[%s7151_s27 + $0xbb4] sm:$0xf0] }
 0x2b6   : > { %v6073_v1 = vld [vmem:[%s7151_s27 + $0xd98] sm:$0xf]  ;;  %v5818_v48 = vor.u32 %v6745_v63, %v5817_v20  ;;  %4033 = vmatpush.bf16.msrb.mxu0 %v5562_v6 }
 0x2b7   : > { %v6809_v3 = vld [vmem:[%s7151_s27 + $0xdb4] sm:$0xf0] }
 0x2b8   : > { %v6329_v4 = vld [vmem:[%s7151_s27 + $0xf98] sm:$0xf]  ;;  %v6074_v30 = vor.u32 %v6809_v3, %v6073_v1  ;;  %4046 = vmatpush.bf16.msrb.mxu1 %v5818_v48  ;;  %v3808_v3 = vadd.f32 %v3807_v61, %v3795_v55  ;;  %v5339_v55 = vld [vmem:[%s7151_s27 + $0x7f8] sm:$0xf0] }
 0x2b9   : > { %v6873_v5 = vld [vmem:[%s7151_s27 + $0xfb4] sm:$0xf0]  ;;  %v6485_v61 = vld [vmem:[%s7151_s27 + $0x39c] sm:$0xf] }
 0x2ba   : > { %v5529_v7 = vld [vmem:[%s7151_s27 + $0x958] sm:$0xf]  ;;  %v6330_v8 = vor.u32 %v6873_v5, %v6329_v4  ;;  %4059 = vmatpush.bf16.msrb.mxu2 %v6074_v30  ;;  %v3820_v4 = vpop.f32.mrf.mxu3 }
 0x2bb   : > { %v6673_v50 = vld [vmem:[%s7151_s27 + $0x974] sm:$0xf0]  ;;  %v8187_v30 = vadd.f32 %v3820_v4, %v3808_v3  ;;  %v6613_v3 = vld [vmem:[%s7151_s27 + $0x79c] sm:$0xf] }
 0x2bc   : > { %v5785_v43 = vld [vmem:[%s7151_s27 + $0xb58] sm:$0xf]  ;;  %v5530_v2 = vor.u32 %v6673_v50, %v5529_v7  ;;  %4072 = vmatpush.bf16.msrb.mxu3 %v6330_v8  ;;  %v3783_v7 = vpop.f32.mrf.mxu0  ;;  %v5307_v4 = vld [vmem:[%s7151_s27 + $0x7b8] sm:$0xf0] }
 0x2bd   : > { %v6737_v9 = vld [vmem:[%s7151_s27 + $0xb74] sm:$0xf0]  ;;  %v6413_v7 = vld [vmem:[%s7151_s27 + $0x15c] sm:$0xf] }
 0x2be   : > { %v6041_v10 = vld [vmem:[%s7151_s27 + $0xd58] sm:$0xf]  ;;  %v5786_v15 = vor.u32 %v6737_v9, %v5785_v43  ;;  %4034 = vmatpush.bf16.msrb.mxu0 %v5530_v2 }
 0x2bf   : > { %v6801_v11 = vld [vmem:[%s7151_s27 + $0xd74] sm:$0xf0] }
 0x2c0   : > { %v6297_v12 = vld [vmem:[%s7151_s27 + $0xf58] sm:$0xf]  ;;  %v6042_v17 = vor.u32 %v6801_v11, %v6041_v10  ;;  %4047 = vmatpush.bf16.msrb.mxu1 %v5786_v15  ;;  %v3796_v11 = vpop.f32.mrf.mxu1 }
 0x2c1   : > { %v6865_v14 = vld [vmem:[%s7151_s27 + $0xf74] sm:$0xf0]  ;;  %v5019_v11 = vld [vmem:[%s7151_s27 + $0x578] sm:$0xf0] }
 0x2c2   : > { %v5497_v16 = vld [vmem:[%s7151_s27 + $0x918] sm:$0xf]  ;;  %v6298_v49 = vor.u32 %v6865_v14, %v6297_v12  ;;  %4060 = vmatpush.bf16.msrb.mxu2 %v6042_v17 }
 0x2c3   : > { %v6665_v18 = vld [vmem:[%s7151_s27 + $0x934] sm:$0xf0] }
 0x2c4   : > { %v5753_v19 = vld [vmem:[%s7151_s27 + $0xb18] sm:$0xf]  ;;  %v5498_v29 = vor.u32 %v6665_v18, %v5497_v16  ;;  %4073 = vmatpush.bf16.msrb.mxu3 %v6298_v49 }
 0x2c5   : > { %v6729_v51 = vld [vmem:[%s7151_s27 + $0xb34] sm:$0xf0] }
 0x2c6   : > { %v6009_v23 = vld [vmem:[%s7151_s27 + $0xd18] sm:$0xf]  ;;  %v5754_v35 = vor.u32 %v6729_v51, %v5753_v19  ;;  %4035 = vmatpush.bf16.msrb.mxu0 %v5498_v29 }
 0x2c7   : > { %v6793_v24 = vld [vmem:[%s7151_s27 + $0xd34] sm:$0xf0] }
 0x2c8   : > { %v6265_v27 = vld [vmem:[%s7151_s27 + $0xf18] sm:$0xf]  ;;  %v6010_v0 = vor.u32 %v6793_v24, %v6009_v23  ;;  %4048 = vmatpush.bf16.msrb.mxu1 %v5754_v35 }
 0x2c9   : > { %v6857_v28 = vld [vmem:[%s7151_s27 + $0xf34] sm:$0xf0] }
 0x2ca   : > { %v5465_v37 = vld [vmem:[%s7151_s27 + $0x8d8] sm:$0xf]  ;;  %v6266_v45 = vor.u32 %v6857_v28, %v6265_v27  ;;  %4061 = vmatpush.bf16.msrb.mxu2 %v6010_v0  ;;  %v3809_v28 = vpop.f32.mrf.mxu2 }
 0x2cb   : > { %v6657_v33 = vld [vmem:[%s7151_s27 + $0x8f4] sm:$0xf0] }
 0x2cc   : > { %v5721_v38 = vld [vmem:[%s7151_s27 + $0xad8] sm:$0xf]  ;;  %v5466_v56 = vor.u32 %v6657_v33, %v5465_v37  ;;  %4074 = vmatpush.bf16.msrb.mxu3 %v6266_v45  ;;  %v3822_v37 = vpop.f32.mrf.mxu3  ;;  %v6429_v33 = vld [vmem:[%s7151_s27 + $0x1dc] sm:$0xf] }
 0x2cd   : > { %v6721_v46 = vld [vmem:[%s7151_s27 + $0xaf4] sm:$0xf0]  ;;  %v4827_v45 = vld [vmem:[%s7151_s27 + $0x3f8] sm:$0xf0] }
 0x2ce   : > { %v5977_v47 = vld [vmem:[%s7151_s27 + $0xcd8] sm:$0xf]  ;;  %v5722_v57 = vor.u32 %v6721_v46, %v5721_v38  ;;  %4036 = vmatpush.bf16.msrb.mxu0 %v5466_v56  ;;  %v4571_v38 = vld [vmem:[%s7151_s27 + $0x1f8] sm:$0xf0] }
 0x2cf   : > { %v6785_v52 = vld [vmem:[%s7151_s27 + $0xcf4] sm:$0xf0]  ;;  %v6557_v46 = vld [vmem:[%s7151_s27 + $0x5dc] sm:$0xf] }
 0x2d0   : > { %v6233_v53 = vld [vmem:[%s7151_s27 + $0xed8] sm:$0xf]  ;;  %v5978_v58 = vor.u32 %v6785_v52, %v5977_v47  ;;  %4049 = vmatpush.bf16.msrb.mxu1 %v5722_v57  ;;  %v5083_v47 = vld [vmem:[%s7151_s27 + $0x5f8] sm:$0xf0]  ;;  %v4574_v57 = vor.u32 %v6429_v33, %v4571_v38 }
 0x2d1   : > { %v6849_v54 = vld [vmem:[%s7151_s27 + $0xef4] sm:$0xf0]  ;;  %v4443_v37 = vld [vmem:[%s7151_s27 + $0xf8] sm:$0xf0] }
 0x2d2   : > { %v5433_v59 = vld [vmem:[%s7151_s27 + $0x898] sm:$0xf]  ;;  %v6234_v20 = vor.u32 %v6849_v54, %v6233_v53  ;;  %4062 = vmatpush.bf16.msrb.mxu2 %v5978_v58  ;;  %v6621_v54 = vld [vmem:[%s7151_s27 + $0x7dc] sm:$0xf]  ;;  %v4830_v58 = vor.u32 %v6493_v13, %v4827_v45  ;;  %v3846_v13 = vpop.f32.mrf.mxu1 }
 0x2d3   : > { %v6649_v60 = vld [vmem:[%s7151_s27 + $0x8b4] sm:$0xf0]  ;;  %v6461_v33 = vld [vmem:[%s7151_s27 + $0x2dc] sm:$0xf] }
 0x2d4   : > { %v5689_v41 = vld [vmem:[%s7151_s27 + $0xa98] sm:$0xf]  ;;  %v5434_v48 = vor.u32 %v6649_v60, %v5433_v59  ;;  %4075 = vmatpush.bf16.msrb.mxu3 %v6234_v20  ;;  %v5086_v59 = vor.u32 %v6557_v46, %v5083_v47  ;;  %v6421_v60 = vld [vmem:[%s7151_s27 + $0x19c] sm:$0xf]  ;;  %v5342_v20 = vor.u32 %v6621_v54, %v5339_v55 }
 0x2d5   : > { %v6713_v62 = vld [vmem:[%s7151_s27 + $0xab4] sm:$0xf0]  ;;  %v4699_v45 = vld [vmem:[%s7151_s27 + $0x2f8] sm:$0xf0] }
 0x2d6   : > { %v5945_v63 = vld [vmem:[%s7151_s27 + $0xc98] sm:$0xf]  ;;  %v5690_v50 = vor.u32 %v6713_v62, %v5689_v41  ;;  %4037 = vmatpush.bf16.msrb.mxu0 %v5434_v48  ;;  %v4539_v41 = vld [vmem:[%s7151_s27 + $0x1b8] sm:$0xf0] }
 0x2d7   : > { %v6777_v1 = vld [vmem:[%s7151_s27 + $0xcb4] sm:$0xf0]  ;;  %v4795_v62 = vld [vmem:[%s7151_s27 + $0x3b8] sm:$0xf0] }
 0x2d8   : > { %v6201_v5 = vld [vmem:[%s7151_s27 + $0xe98] sm:$0xf]  ;;  %v5946_v43 = vor.u32 %v6777_v1, %v5945_v63  ;;  %4050 = vmatpush.bf16.msrb.mxu1 %v5690_v50  ;;  %v6549_v63 = vld [vmem:[%s7151_s27 + $0x59c] sm:$0xf] }
 0x2d9   : > { %v6841_v6 = vld [vmem:[%s7151_s27 + $0xeb4] sm:$0xf0]  ;;  %v5051_v1 = vld [vmem:[%s7151_s27 + $0x5b8] sm:$0xf0] }
 0x2da   : > { %v5401_v8 = vld [vmem:[%s7151_s27 + $0x858] sm:$0xf]  ;;  %v6202_v12 = vor.u32 %v6841_v6, %v6201_v5  ;;  %4063 = vmatpush.bf16.msrb.mxu2 %v5946_v43  ;;  %v4542_v5 = vor.u32 %v6421_v60, %v4539_v41  ;;  %v4798_v6 = vor.u32 %v6485_v61, %v4795_v62  ;;  %v5054_v48 = vor.u32 %v6549_v63, %v5051_v1  ;;  %v4507_v50 = vld [vmem:[%s7151_s27 + $0x178] sm:$0xf0]  ;;  %v3859_v60 = vpop.f32.mrf.mxu2  ;;  %v3872_v1 = vpop.f32.mrf.mxu3 }
 0x2db   : > { %v6641_v9 = vld [vmem:[%s7151_s27 + $0x874] sm:$0xf0]  ;;  %v6477_v43 = vld [vmem:[%s7151_s27 + $0x35c] sm:$0xf] }
 0x2dc   : > { %v5657_v10 = vld [vmem:[%s7151_s27 + $0xa58] sm:$0xf]  ;;  %v5402_v18 = vor.u32 %v6641_v9, %v5401_v8  ;;  %4076 = vmatpush.bf16.msrb.mxu3 %v6202_v12  ;;  %v5310_v8 = vor.u32 %v6613_v3, %v5307_v4  ;;  %v4763_v9 = vld [vmem:[%s7151_s27 + $0x378] sm:$0xf0] }
 0x2dd   : > { %v6705_v14 = vld [vmem:[%s7151_s27 + $0xa74] sm:$0xf0]  ;;  %v6605_v12 = vld [vmem:[%s7151_s27 + $0x75c] sm:$0xf] }
 0x2de   : > { %v5913_v2 = vld [vmem:[%s7151_s27 + $0xc58] sm:$0xf]  ;;  %v5658_v49 = vor.u32 %v6705_v14, %v5657_v10  ;;  %4038 = vmatpush.bf16.msrb.mxu0 %v5402_v18  ;;  %v6541_v10 = vld [vmem:[%s7151_s27 + $0x55c] sm:$0xf] }
 0x2df   : > { %v6769_v16 = vld [vmem:[%s7151_s27 + $0xc74] sm:$0xf0]  ;;  %v5275_v14 = vld [vmem:[%s7151_s27 + $0x778] sm:$0xf0] }
 0x2e0   : > { %v6169_v15 = vld [vmem:[%s7151_s27 + $0xe58] sm:$0xf]  ;;  %v5914_v51 = vor.u32 %v6769_v16, %v5913_v2  ;;  %4051 = vmatpush.bf16.msrb.mxu1 %v5658_v49  ;;  %v4510_v2 = vor.u32 %v6413_v7, %v4507_v50  ;;  %v4766_v16 = vor.u32 %v6477_v43, %v4763_v9  ;;  %v4475_v18 = vld [vmem:[%s7151_s27 + $0x138] sm:$0xf0] }
 0x2e1   : > { %v6833_v17 = vld [vmem:[%s7151_s27 + $0xe74] sm:$0xf0]  ;;  %v4731_v49 = vld [vmem:[%s7151_s27 + $0x338] sm:$0xf0] }
 0x2e2   : > { %v5369_v19 = vld [vmem:[%s7151_s27 + $0x818] sm:$0xf]  ;;  %v6170_v29 = vor.u32 %v6833_v17, %v6169_v15  ;;  %4064 = vmatpush.bf16.msrb.mxu2 %v5914_v51  ;;  %v5022_v15 = vor.u32 %v6541_v10, %v5019_v11  ;;  %v6405_v17 = vld [vmem:[%s7151_s27 + $0x11c] sm:$0xf]  ;;  %v3848_v10 = vpop.f32.mrf.mxu1 }
 0x2e3   : > { %v6633_v22 = vld [vmem:[%s7151_s27 + $0x834] sm:$0xf0]  ;;  %v6533_v51 = vld [vmem:[%s7151_s27 + $0x51c] sm:$0xf]  ;;  %v4478_v28 = vor.u32 %v6405_v17, %v4475_v18 }
 0x2e4   : > { %v5625_v23 = vld [vmem:[%s7151_s27 + $0xa18] sm:$0xf]  ;;  %v5370_v44 = vor.u32 %v6633_v22, %v5369_v19  ;;  %4077 = vmatpush.bf16.msrb.mxu3 %v6170_v29  ;;  %v6469_v19 = vld [vmem:[%s7151_s27 + $0x31c] sm:$0xf]  ;;  %v5278_v22 = vor.u32 %v6605_v12, %v5275_v14  ;;  %v3833_v29 = vpop.f32.mrf.mxu0 }
 0x2e5   : > { %v6697_v24 = vld [vmem:[%s7151_s27 + $0xa34] sm:$0xf0]  ;;  %v3834_v38 = vadd.f32 %v3833_v29, %v8187_v30  ;;  %v6525_v46 = vld [vmem:[%s7151_s27 + $0x4dc] sm:$0xf]  ;;  %v4702_v30 = vor.u32 %v6461_v33, %v4699_v45 }
 0x2e6   : > { %v5881_v27 = vld [vmem:[%s7151_s27 + $0xc18] sm:$0xf]  ;;  %v5626_v52 = vor.u32 %v6697_v24, %v5625_v23  ;;  %4039 = vmatpush.bf16.msrb.mxu0 %v5370_v44  ;;  %v4987_v23 = vld [vmem:[%s7151_s27 + $0x538] sm:$0xf0] }
 0x2e7   : > { %v6761_v34 = vld [vmem:[%s7151_s27 + $0xc34] sm:$0xf0]  ;;  %v6597_v24 = vld [vmem:[%s7151_s27 + $0x71c] sm:$0xf]  ;;  %v3847_v54 = vadd.f32 %v3846_v13, %v3834_v38 }
 0x2e8   : > { %v6137_v35 = vld [vmem:[%s7151_s27 + $0xe18] sm:$0xf]  ;;  %v5882_v53 = vor.u32 %v6761_v34, %v5881_v27  ;;  %4052 = vmatpush.bf16.msrb.mxu1 %v5626_v52  ;;  %v5243_v27 = vld [vmem:[%s7151_s27 + $0x738] sm:$0xf0]  ;;  %v4734_v34 = vor.u32 %v6469_v19, %v4731_v49 }
 0x2e9   : > { %v6825_v0 = vld [vmem:[%s7151_s27 + $0xe34] sm:$0xf0]  ;;  %4040 = vmatmul.bf16.vlgmr.msrb.gmra.mxu0 %v7327_v39  ;;  %v5246_v44 = vor.u32 %v6597_v24, %v5243_v27  ;;  %v4955_v47 = vld [vmem:[%s7151_s27 + $0x4f8] sm:$0xf0]  ;;  %v3860_v63 = vadd.f32 %v3859_v60, %v3847_v54  ;;  %v3861_v27 = vpop.f32.mrf.mxu2 }
 0x2ea   : > { %v6138_v56 = vor.u32 %v6825_v0, %v6137_v35  ;;  %4065 = vmatpush.bf16.msrb.mxu2 %v5882_v53  ;;  %4084 = vmatpush.bf16.msra.mxu0 %v4574_v57  ;;  %v4990_v35 = vor.u32 %v6533_v51, %v4987_v23  ;;  %v6397_v0 = vld [vmem:[%s7151_s27 + $0xdc] sm:$0xf] }
 0x2eb   : > { %4053 = vmatmul.bf16.vlgmr.msrb.gmra.mxu1 %v7331_v42  ;;  %v6589_v52 = vld [vmem:[%s7151_s27 + $0x6dc] sm:$0xf]  ;;  %v4446_v55 = vor.u32 %v6397_v0, %v4443_v37  ;;  %v3874_v0 = vpop.f32.mrf.mxu3 }
 0x2ec   : > { %4078 = vmatpush.bf16.msrb.mxu3 %v6138_v56  ;;  %4097 = vmatpush.bf16.msra.mxu1 %v4830_v58  ;;  %v5211_v53 = vld [vmem:[%s7151_s27 + $0x6f8] sm:$0xf0]  ;;  %v4958_v56 = vor.u32 %v6525_v46, %v4955_v47  ;;  %v3898_v0 = vpop.f32.mrf.mxu1 }
 0x2ed   : > { %4066 = vmatmul.bf16.vlgmr.msrb.gmra.mxu2 %v7323_v36  ;;  %v6389_v57 = vld [vmem:[%s7151_s27 + $0x9c] sm:$0xf]  ;;  %v5214_v41 = vor.u32 %v6589_v52, %v5211_v53 }
 0x2ee   : > { %4110 = vmatpush.bf16.msra.mxu2 %v5086_v59  ;;  %4085 = vmatpush.bf16.msra.mxu0 %v4542_v5  ;;  %v4411_v58 = vld [vmem:[%s7151_s27 + $0xb8] sm:$0xf0] }
 0x2ef   : > { %4079 = vmatmul.bf16.vlgmr.msrb.gmra.mxu3 %v7329_v40  ;;  %v6453_v59 = vld [vmem:[%s7151_s27 + $0x29c] sm:$0xf]  ;;  %v4414_v5 = vor.u32 %v6389_v57, %v4411_v58 }
 0x2f0   : > { %4123 = vmatpush.bf16.msra.mxu3 %v5342_v20  ;;  %4098 = vmatpush.bf16.msra.mxu1 %v4798_v6  ;;  %v4667_v61 = vld [vmem:[%s7151_s27 + $0x2b8] sm:$0xf0]  ;;  %v8258_v6 = vadd.f32 %v3872_v1, %v3860_v63 }
 0x2f1   : > { %v6517_v20 = vld [vmem:[%s7151_s27 + $0x49c] sm:$0xf]  ;;  %v4670_v7 = vor.u32 %v6453_v59, %v4667_v61 }
 0x2f2   : > { %4111 = vmatpush.bf16.msra.mxu2 %v5054_v48  ;;  %4086 = vmatpush.bf16.msra.mxu0 %v4510_v2  ;;  %v4923_v62 = vld [vmem:[%s7151_s27 + $0x4b8] sm:$0xf0]  ;;  %v3835_v48 = vpop.f32.mrf.mxu0 }
 0x2f3   : > { %v6581_v3 = vld [vmem:[%s7151_s27 + $0x69c] sm:$0xf]  ;;  %v4926_v50 = vor.u32 %v6517_v20, %v4923_v62 }
 0x2f4   : > { %4124 = vmatpush.bf16.msra.mxu3 %v5310_v8  ;;  %4099 = vmatpush.bf16.msra.mxu1 %v4766_v16  ;;  %v5179_v4 = vld [vmem:[%s7151_s27 + $0x6b8] sm:$0xf0] }
 0x2f5   : > { %v6381_v43 = vld [vmem:[%s7151_s27 + $0x5c] sm:$0xf]  ;;  %v5182_v11 = vor.u32 %v6581_v3, %v5179_v4 }
 0x2f6   : > { %4112 = vmatpush.bf16.msra.mxu2 %v5022_v15  ;;  %4087 = vmatpush.bf16.msra.mxu0 %v4478_v28  ;;  %v4379_v8 = vld [vmem:[%s7151_s27 + $0x78] sm:$0xf0] }
 0x2f7   : > { %v6445_v9 = vld [vmem:[%s7151_s27 + $0x25c] sm:$0xf]  ;;  %v4382_v17 = vor.u32 %v6381_v43, %v4379_v8 }
 0x2f8   : > { %4125 = vmatpush.bf16.msra.mxu3 %v5278_v22  ;;  %4100 = vmatpush.bf16.msra.mxu1 %v4734_v34  ;;  %v4635_v12 = vld [vmem:[%s7151_s27 + $0x278] sm:$0xf0] }
 0x2f9   : > { %v6509_v14 = vld [vmem:[%s7151_s27 + $0x45c] sm:$0xf]  ;;  %v4638_v22 = vor.u32 %v6445_v9, %v4635_v12 }
 0x2fa   : > { %4113 = vmatpush.bf16.msra.mxu2 %v4990_v35  ;;  %4088 = vmatpush.bf16.msra.mxu0 %v4446_v55  ;;  %v4891_v2 = vld [vmem:[%s7151_s27 + $0x478] sm:$0xf0] }
 0x2fb   : > { %v6573_v16 = vld [vmem:[%s7151_s27 + $0x65c] sm:$0xf]  ;;  %v4894_v49 = vor.u32 %v6509_v14, %v4891_v2 }
 0x2fc   : > { %4126 = vmatpush.bf16.msra.mxu3 %v5246_v44  ;;  %4101 = vmatpush.bf16.msra.mxu1 %v4702_v30  ;;  %v5147_v15 = vld [vmem:[%s7151_s27 + $0x678] sm:$0xf0] }
 0x2fd   : > { %v6373_v18 = vld [vmem:[%s7151_s27 + $0x1c] sm:$0xf]  ;;  %v5150_v28 = vor.u32 %v6573_v16, %v5147_v15 }
 0x2fe   : > { %4114 = vmatpush.bf16.msra.mxu2 %v4958_v56  ;;  %4089 = vmatpush.bf16.msra.mxu0 %v4414_v5  ;;  %v4347_v19 = vld [vmem:[%s7151_s27 + $0x38] sm:$0xf0] }
 0x2ff   : > { %v6437_v51 = vld [vmem:[%s7151_s27 + $0x21c] sm:$0xf]  ;;  %v4350_v13 = vor.u32 %v6373_v18, %v4347_v19 }
 0x300   : > { %4127 = vmatpush.bf16.msra.mxu3 %v5214_v41  ;;  %4102 = vmatpush.bf16.msra.mxu1 %v4670_v7  ;;  %v4603_v23 = vld [vmem:[%s7151_s27 + $0x238] sm:$0xf0] }
 0x301   : > { %v6501_v24 = vld [vmem:[%s7151_s27 + $0x41c] sm:$0xf]  ;;  %v4606_v47 = vor.u32 %v6437_v51, %v4603_v23  ;;  %v3885_v23 = vpop.f32.mrf.mxu0 }
 0x302   : > { %4115 = vmatpush.bf16.msra.mxu2 %v4926_v50  ;;  %v4859_v29 = vld [vmem:[%s7151_s27 + $0x438] sm:$0xf0]  ;;  %4090 = vmatpush.bf16.msra.mxu0 %v4382_v17  ;;  %v785_v17 = vperm.slane %v8163_v21, 5 }
 0x303   : > { %v6565_v34 = vld [vmem:[%s7151_s27 + $0x61c] sm:$0xf]  ;;  %v4862_v52 = vor.u32 %v6501_v24, %v4859_v29 }
 0x304   : > { %4128 = vmatpush.bf16.msra.mxu3 %v5182_v11  ;;  %v5115_v35 = vld [vmem:[%s7151_s27 + $0x638] sm:$0xf0]  ;;  %4103 = vmatpush.bf16.msra.mxu1 %v4638_v22 }
 0x305   : > { %v6685_v37 = vld [vmem:[%s7151_s27 + $0x9dc] sm:$0xf]  ;;  %v5118_v55 = vor.u32 %v6565_v34, %v5115_v35  ;;  %v3886_v35 = vadd.f32 %v3885_v23, %v785_v17 }
 0x306   : > { %v5595_v33 = vld [vmem:[%s7151_s27 + $0x9f8] sm:$0xf0]  ;;  %4116 = vmatpush.bf16.msra.mxu2 %v4894_v49  ;;  %4091 = vmatpush.bf16.msra.mxu0 %v4350_v13 }
 0x307   : > { %v6749_v38 = vld [vmem:[%s7151_s27 + $0xbdc] sm:$0xf]  ;;  %v5598_v30 = vor.u32 %v6685_v37, %v5595_v33 }
 0x308   : > { %v5851_v44 = vld [vmem:[%s7151_s27 + $0xbf8] sm:$0xf0]  ;;  %4129 = vmatpush.bf16.msra.mxu3 %v5150_v28  ;;  %4104 = vmatpush.bf16.msra.mxu1 %v4606_v47 }
 0x309   : > { %v6813_v45 = vld [vmem:[%s7151_s27 + $0xddc] sm:$0xf]  ;;  %v5854_v56 = vor.u32 %v6749_v38, %v5851_v44  ;;  %4092 = vmatmul.bf16.vlgmr.msra.gmra.mxu0 %v7270_v26 }
 0x30a   : > { %v6107_v46 = vld [vmem:[%s7151_s27 + $0xdf8] sm:$0xf0]  ;;  %4117 = vmatpush.bf16.msra.mxu2 %v4862_v52  ;;  %4136 = vmatpush.bf16.msrb.mxu0 %v5598_v30 }
 0x30b   : > { %v6877_v53 = vld [vmem:[%s7151_s27 + $0xfdc] sm:$0xf]  ;;  %v6110_v57 = vor.u32 %v6813_v45, %v6107_v46  ;;  %4105 = vmatmul.bf16.vlgmr.msra.gmra.mxu1 %v7276_v32  ;;  %v3899_v46 = vadd.f32 %v3898_v0, %v3886_v35 }
 0x30c   : > { %v6363_v54 = vld [vmem:[%s7151_s27 + $0xff8] sm:$0xf0]  ;;  %4130 = vmatpush.bf16.msra.mxu3 %v5118_v55  ;;  %4149 = vmatpush.bf16.msrb.mxu1 %v5854_v56  ;;  %v3911_v56 = vpop.f32.mrf.mxu2 }
 0x30d   : > { %v6677_v58 = vld [vmem:[%s7151_s27 + $0x99c] sm:$0xf]  ;;  %v6366_v41 = vor.u32 %v6877_v53, %v6363_v54  ;;  %4118 = vmatmul.bf16.vlgmr.msra.gmra.mxu2 %v7268_v25 }
 0x30e   : > { %v5563_v59 = vld [vmem:[%s7151_s27 + $0x9b8] sm:$0xf0]  ;;  %4162 = vmatpush.bf16.msrb.mxu2 %v6110_v57 }
 0x30f   : > { %v6741_v60 = vld [vmem:[%s7151_s27 + $0xb9c] sm:$0xf]  ;;  %v5566_v3 = vor.u32 %v6677_v58, %v5563_v59  ;;  %4131 = vmatmul.bf16.vlgmr.msra.gmra.mxu3 %v7274_v31 }
 0x310   : > { %v5819_v61 = vld [vmem:[%s7151_s27 + $0xbb8] sm:$0xf0]  ;;  %4175 = vmatpush.bf16.msrb.mxu3 %v6366_v41  ;;  %v3912_v41 = vadd.f32 %v3911_v56, %v3899_v46 }
 0x311   : > { %v6805_v20 = vld [vmem:[%s7151_s27 + $0xd9c] sm:$0xf]  ;;  %v5822_v4 = vor.u32 %v6741_v60, %v5819_v61  ;;  %4137 = vmatpush.bf16.msrb.mxu0 %v5566_v3  ;;  %v3924_v61 = vpop.f32.mrf.mxu3  ;;  %v3887_v3 = vpop.f32.mrf.mxu0 }
 0x312   : > { %v6075_v62 = vld [vmem:[%s7151_s27 + $0xdb8] sm:$0xf0] }
 0x313   : > { %v6869_v63 = vld [vmem:[%s7151_s27 + $0xf9c] sm:$0xf]  ;;  %v6078_v5 = vor.u32 %v6805_v20, %v6075_v62  ;;  %4150 = vmatpush.bf16.msrb.mxu1 %v5822_v4 }
 0x314   : > { %v6331_v1 = vld [vmem:[%s7151_s27 + $0xfb8] sm:$0xf0] }
 0x315   : > { %v6669_v48 = vld [vmem:[%s7151_s27 + $0x95c] sm:$0xf]  ;;  %v6334_v43 = vor.u32 %v6869_v63, %v6331_v1  ;;  %4163 = vmatpush.bf16.msrb.mxu2 %v6078_v5  ;;  %v3925_v1 = vadd.f32 %v3924_v61, %v3912_v41 }
 0x316   : > { %v5531_v7 = vld [vmem:[%s7151_s27 + $0x978] sm:$0xf0] }
 0x317   : > { %v6733_v50 = vld [vmem:[%s7151_s27 + $0xb5c] sm:$0xf]  ;;  %v5534_v14 = vor.u32 %v6669_v48, %v5531_v7  ;;  %4176 = vmatpush.bf16.msrb.mxu3 %v6334_v43  ;;  %v3900_v43 = vpop.f32.mrf.mxu1 }
 0x318   : > { %v5787_v8 = vld [vmem:[%s7151_s27 + $0xb78] sm:$0xf0] }
 0x319   : > { %v6797_v9 = vld [vmem:[%s7151_s27 + $0xd5c] sm:$0xf]  ;;  %v5790_v2 = vor.u32 %v6733_v50, %v5787_v8  ;;  %4138 = vmatpush.bf16.msrb.mxu0 %v5534_v14 }
 0x31a   : > { %v6043_v10 = vld [vmem:[%s7151_s27 + $0xd78] sm:$0xf0] }
 0x31b   : > { %v6861_v11 = vld [vmem:[%s7151_s27 + $0xf5c] sm:$0xf]  ;;  %v6046_v16 = vor.u32 %v6797_v9, %v6043_v10  ;;  %4151 = vmatpush.bf16.msrb.mxu1 %v5790_v2 }
 0x31c   : > { %v6299_v12 = vld [vmem:[%s7151_s27 + $0xf78] sm:$0xf0] }
 0x31d   : > { %v6661_v25 = vld [vmem:[%s7151_s27 + $0x91c] sm:$0xf]  ;;  %v6302_v26 = vor.u32 %v6861_v11, %v6299_v12  ;;  %4164 = vmatpush.bf16.msrb.mxu2 %v6046_v16 }
 0x31e   : > { %v5499_v15 = vld [vmem:[%s7151_s27 + $0x938] sm:$0xf0] }
 0x31f   : > { %v6725_v31 = vld [vmem:[%s7151_s27 + $0xb1c] sm:$0xf]  ;;  %v5502_v51 = vor.u32 %v6661_v25, %v5499_v15  ;;  %4177 = vmatpush.bf16.msrb.mxu3 %v6302_v26  ;;  %v3913_v26 = vpop.f32.mrf.mxu2  ;;  %v3950_v0 = vpop.f32.mrf.mxu1 }
 0x320   : > { %v5755_v18 = vld [vmem:[%s7151_s27 + $0xb38] sm:$0xf0] }
 0x321   : > { %v6789_v19 = vld [vmem:[%s7151_s27 + $0xd1c] sm:$0xf]  ;;  %v5758_v24 = vor.u32 %v6725_v31, %v5755_v18  ;;  %4139 = vmatpush.bf16.msrb.mxu0 %v5502_v51 }
 0x322   : > { %v6011_v22 = vld [vmem:[%s7151_s27 + $0xd38] sm:$0xf0] }
 0x323   : > { %v6853_v49 = vld [vmem:[%s7151_s27 + $0xf1c] sm:$0xf]  ;;  %v6014_v27 = vor.u32 %v6789_v19, %v6011_v22  ;;  %4152 = vmatpush.bf16.msrb.mxu1 %v5758_v24 }
 0x324   : > { %v6267_v32 = vld [vmem:[%s7151_s27 + $0xf38] sm:$0xf0] }
 0x325   : > { %v6653_v28 = vld [vmem:[%s7151_s27 + $0x8dc] sm:$0xf]  ;;  %v6270_v37 = vor.u32 %v6853_v49, %v6267_v32  ;;  %4165 = vmatpush.bf16.msrb.mxu2 %v6014_v27  ;;  %v3926_v32 = vpop.f32.mrf.mxu3 }
 0x326   : > { %v5467_v29 = vld [vmem:[%s7151_s27 + $0x8f8] sm:$0xf0] }
 0x327   : > { %v6717_v34 = vld [vmem:[%s7151_s27 + $0xadc] sm:$0xf]  ;;  %v5470_v47 = vor.u32 %v6653_v28, %v5467_v29  ;;  %4178 = vmatpush.bf16.msrb.mxu3 %v6270_v37  ;;  %v3952_v46 = vpop.f32.mrf.mxu1 }
 0x328   : > { %v5723_v33 = vld [vmem:[%s7151_s27 + $0xaf8] sm:$0xf0] }
 0x329   : > { %v6781_v38 = vld [vmem:[%s7151_s27 + $0xcdc] sm:$0xf]  ;;  %v5726_v52 = vor.u32 %v6717_v34, %v5723_v33  ;;  %4140 = vmatpush.bf16.msrb.mxu0 %v5470_v47  ;;  %v3937_v34 = vpop.f32.mrf.mxu0  ;;  %v3963_v33 = vpop.f32.mrf.mxu2 }
 0x32a   : > { %v5979_v13 = vld [vmem:[%s7151_s27 + $0xcf8] sm:$0xf0]  ;;  %v3938_v35 = vadd.f32 %v3937_v34, %v3925_v1 }
 0x32b   : > { %v6845_v44 = vld [vmem:[%s7151_s27 + $0xedc] sm:$0xf]  ;;  %v5982_v53 = vor.u32 %v6781_v38, %v5979_v13  ;;  %4153 = vmatpush.bf16.msrb.mxu1 %v5726_v52 }
 0x32c   : > { %v6235_v45 = vld [vmem:[%s7151_s27 + $0xef8] sm:$0xf0]  ;;  %v3951_v37 = vadd.f32 %v3950_v0, %v3938_v35 }
 0x32d   : > { %v6645_v54 = vld [vmem:[%s7151_s27 + $0x89c] sm:$0xf]  ;;  %v6238_v57 = vor.u32 %v6845_v44, %v6235_v45  ;;  %4166 = vmatpush.bf16.msrb.mxu2 %v5982_v53  ;;  %v3976_v13 = vpop.f32.mrf.mxu3 }
 0x32e   : > { %v5435_v55 = vld [vmem:[%s7151_s27 + $0x8b8] sm:$0xf0]  ;;  %v3964_v38 = vadd.f32 %v3963_v33, %v3951_v37 }
 0x32f   : > { %v6709_v30 = vld [vmem:[%s7151_s27 + $0xa9c] sm:$0xf]  ;;  %v5438_v63 = vor.u32 %v6645_v54, %v5435_v55  ;;  %4179 = vmatpush.bf16.msrb.mxu3 %v6238_v57  ;;  %v4002_v54 = vpop.f32.mrf.mxu1 }
 0x330   : > { %v5691_v58 = vld [vmem:[%s7151_s27 + $0xab8] sm:$0xf0]  ;;  %v3977_v44 = vadd.f32 %v3976_v13, %v3964_v38 }
 0x331   : > { %v6773_v59 = vld [vmem:[%s7151_s27 + $0xc9c] sm:$0xf]  ;;  %v5694_v4 = vor.u32 %v6709_v30, %v5691_v58  ;;  %4141 = vmatpush.bf16.msrb.mxu0 %v5438_v63  ;;  %v3939_v45 = vpop.f32.mrf.mxu0  ;;  %v3965_v52 = vpop.f32.mrf.mxu2 }
 0x332   : > { %v5947_v60 = vld [vmem:[%s7151_s27 + $0xcb8] sm:$0xf0]  ;;  %v4199_v47 = vrot.slane %v3977_v44, 6 }
 0x333   : > { %v6837_v20 = vld [vmem:[%s7151_s27 + $0xe9c] sm:$0xf]  ;;  %v5950_v5 = vor.u32 %v6773_v59, %v5947_v60  ;;  %4154 = vmatpush.bf16.msrb.mxu1 %v5694_v4 }
 0x334   : > { %v6203_v62 = vld [vmem:[%s7151_s27 + $0xeb8] sm:$0xf0] }
 0x335   : > { %v6637_v48 = vld [vmem:[%s7151_s27 + $0x85c] sm:$0xf]  ;;  %v6206_v8 = vor.u32 %v6837_v20, %v6203_v62  ;;  %4167 = vmatpush.bf16.msrb.mxu2 %v5950_v5 }
 0x336   : > { %v5403_v7 = vld [vmem:[%s7151_s27 + $0x878] sm:$0xf0] }
 0x337   : > { %v6701_v50 = vld [vmem:[%s7151_s27 + $0xa5c] sm:$0xf]  ;;  %v5406_v25 = vor.u32 %v6637_v48, %v5403_v7  ;;  %4180 = vmatpush.bf16.msrb.mxu3 %v6206_v8  ;;  %v4004_v60 = vpop.f32.mrf.mxu1 }
 0x338   : > { %v5659_v9 = vld [vmem:[%s7151_s27 + $0xa78] sm:$0xf0] }
 0x339   : > { %v6765_v10 = vld [vmem:[%s7151_s27 + $0xc5c] sm:$0xf]  ;;  %v5662_v2 = vor.u32 %v6701_v50, %v5659_v9  ;;  %4142 = vmatpush.bf16.msrb.mxu0 %v5406_v25  ;;  %v3989_v53 = vpop.f32.mrf.mxu0  ;;  %v4015_v30 = vpop.f32.mrf.mxu2 }
 0x33a   : > { %v5915_v11 = vld [vmem:[%s7151_s27 + $0xc78] sm:$0xf0] }
 0x33b   : > { %v6829_v12 = vld [vmem:[%s7151_s27 + $0xe5c] sm:$0xf]  ;;  %v5918_v16 = vor.u32 %v6765_v10, %v5915_v11  ;;  %4155 = vmatpush.bf16.msrb.mxu1 %v5662_v2  ;;  %v787_v10 = vperm.slane %v8163_v21, 7 }
 0x33c   : > { %v6171_v14 = vld [vmem:[%s7151_s27 + $0xe78] sm:$0xf0] }
 0x33d   : > { %v6629_v15 = vld [vmem:[%s7151_s27 + $0x81c] sm:$0xf]  ;;  %v6174_v18 = vor.u32 %v6829_v12, %v6171_v14  ;;  %4168 = vmatpush.bf16.msrb.mxu2 %v5918_v16 }
 0x33e   : > { %v5371_v31 = vld [vmem:[%s7151_s27 + $0x838] sm:$0xf0] }
 0x33f   : > { %v6693_v17 = vld [vmem:[%s7151_s27 + $0xa1c] sm:$0xf]  ;;  %v5374_v24 = vor.u32 %v6629_v15, %v5371_v31  ;;  %4181 = vmatpush.bf16.msrb.mxu3 %v6174_v18 }
 0x340   : > { %v5627_v19 = vld [vmem:[%s7151_s27 + $0xa38] sm:$0xf0] }
 0x341   : > { %v6757_v22 = vld [vmem:[%s7151_s27 + $0xc1c] sm:$0xf]  ;;  %v5630_v27 = vor.u32 %v6693_v17, %v5627_v19  ;;  %4143 = vmatpush.bf16.msrb.mxu0 %v5374_v24  ;;  %v3991_v59 = vpop.f32.mrf.mxu0  ;;  %v4017_v41 = vpop.f32.mrf.mxu2 }
 0x342   : > { %v5883_v49 = vld [vmem:[%s7151_s27 + $0xc38] sm:$0xf0] }
 0x343   : > { %v6821_v51 = vld [vmem:[%s7151_s27 + $0xe1c] sm:$0xf]  ;;  %v5886_v28 = vor.u32 %v6757_v22, %v5883_v49  ;;  %4156 = vmatpush.bf16.msrb.mxu1 %v5630_v27 }
 0x344   : > { %v6139_v23 = vld [vmem:[%s7151_s27 + $0xe38] sm:$0xf0]  ;;  %4144 = vmatmul.bf16.vlgmr.msrb.gmra.mxu0 %v7327_v39  ;;  %v4208_v39 = vsel %vm4202_vm0, %v8258_v6, %v4199_v47 }
 0x345   : > { %v6142_v29 = vor.u32 %v6821_v51, %v6139_v23  ;;  %4169 = vmatpush.bf16.msrb.mxu2 %v5886_v28 }
 0x346   : > { %4157 = vmatmul.bf16.vlgmr.msrb.gmra.mxu1 %v7331_v42  ;;  %v3978_v42 = vpop.f32.mrf.mxu3 }
 0x347   : > { %4182 = vmatpush.bf16.msrb.mxu3 %v6142_v29 }
 0x348   : > { %4170 = vmatmul.bf16.vlgmr.msrb.gmra.mxu2 %v7323_v36  ;;  %v786_v36 = vperm.slane %v8163_v21, 6 }
 0x34a   : > { %4183 = vmatmul.bf16.vlgmr.msrb.gmra.mxu3 %v7329_v40  ;;  %v3990_v40 = vadd.f32 %v3989_v53, %v786_v36 }
 0x34c   : > { %v4003_v55 = vadd.f32 %v4002_v54, %v3990_v40 }
 0x34e   : > { %v4016_v56 = vadd.f32 %v4015_v30, %v4003_v55  ;;  %v4028_v57 = vpop.f32.mrf.mxu3 }
 0x350   : > { %v4029_v58 = vadd.f32 %v4028_v57, %v4016_v56 }
 0x356   : > { %v4030_v61 = vpop.f32.mrf.mxu3 }
 0x366   : > { %v4041_v20 = vpop.f32.mrf.mxu0 }
 0x367   : > { %v4042_v2 = vadd.f32 %v4041_v20, %v4029_v58 }
 0x368   : > { %v4054_v62 = vpop.f32.mrf.mxu1 }
 0x369   : > { %v4055_v15 = vadd.f32 %v4054_v62, %v4042_v2 }
 0x36e   : > { %v4043_v1 = vpop.f32.mrf.mxu0 }
 0x370   : > { %v4067_v63 = vpop.f32.mrf.mxu2  ;;  %v4056_v3 = vpop.f32.mrf.mxu1 }
 0x371   : > { %v4068_v19 = vadd.f32 %v4067_v63, %v4055_v15 }
 0x372   : > { %v4080_v6 = vpop.f32.mrf.mxu3 }
 0x373   : > { %v4081_v32 = vadd.f32 %v4080_v6, %v4068_v19 }
 0x375   : > { %v4200_v28 = vrot.slane %v4081_v32, 4 }
 0x378   : > { %v4069_v4 = vpop.f32.mrf.mxu2 }
 0x37a   : > { %v4082_v5 = vpop.f32.mrf.mxu3 }
 0x386   : > { %v4093_v48 = vpop.f32.mrf.mxu0 }
 0x387   : > { %v4094_v14 = vadd.f32 %v4093_v48, %v787_v10 }
 0x388   : > { %v4106_v7 = vpop.f32.mrf.mxu1 }
 0x389   : > { %v4107_v25 = vadd.f32 %v4106_v7, %v4094_v14 }
 0x38e   : > { %v4095_v8 = vpop.f32.mrf.mxu0 }
 0x390   : > { %v4119_v50 = vpop.f32.mrf.mxu2  ;;  %v4108_v9 = vpop.f32.mrf.mxu1 }
 0x391   : > { %v4120_v16 = vadd.f32 %v4119_v50, %v4107_v25 }
 0x392   : > { %v4132_v43 = vpop.f32.mrf.mxu3 }
 0x393   : > { %v4133_v31 = vadd.f32 %v4132_v43, %v4120_v16 }
 0x398   : > { %v4121_v11 = vpop.f32.mrf.mxu2 }
 0x39a   : > { %v4134_v12 = vpop.f32.mrf.mxu3 }
 0x3c1   : > { %v4145_v17 = vpop.f32.mrf.mxu0 }
 0x3c2   : > { %v4146_v18 = vadd.f32 %v4145_v17, %v4133_v31 }
 0x3c3   : > { %v4158_v26 = vpop.f32.mrf.mxu1 }
 0x3c4   : > { %v4159_v22 = vadd.f32 %v4158_v26, %v4146_v18 }
 0x3c9   : > { %v4147_v24 = vpop.f32.mrf.mxu0 }
 0x3cb   : > { %v4171_v49 = vpop.f32.mrf.mxu2  ;;  %v4160_v21 = vpop.f32.mrf.mxu1 }
 0x3cc   : > { %v4172_v51 = vadd.f32 %v4171_v49, %v4159_v22 }
 0x3cd   : > { %v4184_v23 = vpop.f32.mrf.mxu3 }
 0x3ce   : > { %v4185_v27 = vadd.f32 %v4184_v23, %v4172_v51 }
 0x3d0   : > { %v4201_v29 = vrot.slane %v4185_v27, 2 }
 0x3d2   : > { %v4209_v34 = vsel %vm4204_vm1, %v4200_v28, %v4201_v29 }
 0x3d3   : > { %v4210_v35 = vsel %vm4206_vm2, %v4208_v39, %v4209_v34  ;;  %v4173_v0 = vpop.f32.mrf.mxu2 }
 0x3d4   : > { %4214 = vst [vmem:[%s8115_s11 + $0x8] sm:$0xff] %v4210_v35 }
 0x3d5   : > { %v4186_v37 = vpop.f32.mrf.mxu3 }
 0x3d6 PF: > { %p16_p8 = scmp.ge.s32.totalorder %s7074_s17, 4   ;;  %s8377_s12 = smov %s7021_s13 }
 0x3d7   : > { %s8378_s13 = smov %s7025_s14  ;;  %s8379_s14 = smov %s7084_s20 }
 0x3d8   : > { %s8380_s15 = smov %s7074_s17  ;;  %18 = sbr.rel (!%p16_p8) target bundleno = 5 (0x5), region = 86 }
 0x3dd   :  { %4237 = vsyncpa [#allocation3], 1 }
 0x3de   :  { %4239 = vsyncpa [#allocation3 + $0x1], 1 }
 0x3df   :  { %4240 = vsyncpa [#allocation5], 1 }
 0x3e0   :  { %4242 = vsyncpa [#allocation5 + $0x1], 1 }

// kernel: decoder_forward.4
= control target key start
LH: loop header
LB: loop body
LE: loop exit
PB: predicated region body
PF: predicated region fallthrough
CT: control target
= control target key end

     0   :  { %vm176_vm0 = vcmask 261120   ;;  %s1034_s1 = inlined_call_operand.vmem [shape: f32[288,512], index: 1, kind: input, shape index: {}]   ;;  %s1035_s0 = inlined_call_operand.vmem [shape: f32[16,288], index: 0, kind: input, shape index: {}]   ;;  %s1036_s2 = inlined_call_operand.vmem [shape: f32[16,1], index: 2, kind: input, shape index: {}]   ;;  %s1037_s3 = inlined_call_operand.vmem [shape: f32[16,512], index: 3, kind: output, shape index: {}]  }
   0x1   :  { %v80_v0 = vld [vmem:[%s1034_s1 + $0x1e0] sm:$0xff]  ;;  %v145_v3 = vld [vmem:[%s1034_s1 + $0x3e8] sm:$0xff]  ;;  %v654_v47 = vld [vmem:[%s1035_s0 + $0x10] sm:$0xff] }
   0x2   :  { %v144_v1 = vld [vmem:[%s1034_s1 + $0x3e0] sm:$0xff]  ;;  %183 = vmatpush.msra.mxu0 %v80_v0  ;;  %275 = vmatpush.msra.mxu2 %v145_v3  ;;  %v141_v7 = vld [vmem:[%s1034_s1 + $0x3c8] sm:$0xff] }
   0x3   :  { %v160_v2 = vld [vmem:[%s1034_s1 + $0x460] sm:$0xff]  ;;  %206 = vmatpush.msra.mxu1 %v144_v1  ;;  %v137_v11 = vld [vmem:[%s1034_s1 + $0x3a8] sm:$0xff] }
   0x4   :  { %v76_v4 = vld [vmem:[%s1034_s1 + $0x1c0] sm:$0xff]  ;;  %241 = vmatpush.msra.mxu3 %v160_v2  ;;  %276 = vmatpush.msra.mxu2 %v141_v7  ;;  %v133_v15 = vld [vmem:[%s1034_s1 + $0x388] sm:$0xff] }
   0x5   :  { %v140_v5 = vld [vmem:[%s1034_s1 + $0x3c0] sm:$0xff]  ;;  %184 = vmatpush.msra.mxu0 %v76_v4  ;;  %v81_v16 = vld [vmem:[%s1034_s1 + $0x1e8] sm:$0xff]  ;;  %v82_v4 = vld [vmem:[%s1034_s1 + $0x1f0] sm:$0xff] }
   0x6   :  { %v156_v6 = vld [vmem:[%s1034_s1 + $0x440] sm:$0xff]  ;;  %207 = vmatpush.msra.mxu1 %v140_v5  ;;  %277 = vmatpush.msra.mxu2 %v137_v11  ;;  %v129_v19 = vld [vmem:[%s1034_s1 + $0x368] sm:$0xff]  ;;  %v162_v5 = vld [vmem:[%s1034_s1 + $0x470] sm:$0xff] }
   0x7   :  { %v72_v8 = vld [vmem:[%s1034_s1 + $0x1a0] sm:$0xff]  ;;  %242 = vmatpush.msra.mxu3 %v156_v6  ;;  %v77_v20 = vld [vmem:[%s1034_s1 + $0x1c8] sm:$0xff] }
   0x8   :  { %v136_v9 = vld [vmem:[%s1034_s1 + $0x3a0] sm:$0xff]  ;;  %185 = vmatpush.msra.mxu0 %v72_v8  ;;  %278 = vmatpush.msra.mxu2 %v133_v15  ;;  %v125_v23 = vld [vmem:[%s1034_s1 + $0x348] sm:$0xff] }
   0x9   :  { %v152_v10 = vld [vmem:[%s1034_s1 + $0x420] sm:$0xff]  ;;  %208 = vmatpush.msra.mxu1 %v136_v9  ;;  %v73_v24 = vld [vmem:[%s1034_s1 + $0x1a8] sm:$0xff]  ;;  %v78_v9 = vld [vmem:[%s1034_s1 + $0x1d0] sm:$0xff] }
   0xa   :  { %v68_v12 = vld [vmem:[%s1034_s1 + $0x180] sm:$0xff]  ;;  %243 = vmatpush.msra.mxu3 %v152_v10  ;;  %279 = vmatpush.msra.mxu2 %v129_v19  ;;  %v121_v27 = vld [vmem:[%s1034_s1 + $0x328] sm:$0xff]  ;;  %v158_v10 = vld [vmem:[%s1034_s1 + $0x450] sm:$0xff] }
   0xb   :  { %v132_v13 = vld [vmem:[%s1034_s1 + $0x380] sm:$0xff]  ;;  %186 = vmatpush.msra.mxu0 %v68_v12  ;;  %v69_v28 = vld [vmem:[%s1034_s1 + $0x188] sm:$0xff]  ;;  %v150_v19 = vld [vmem:[%s1034_s1 + $0x410] sm:$0xff] }
   0xc   :  { %v148_v14 = vld [vmem:[%s1034_s1 + $0x400] sm:$0xff]  ;;  %209 = vmatpush.msra.mxu1 %v132_v13  ;;  %280 = vmatpush.msra.mxu2 %v125_v23  ;;  %v117_v31 = vld [vmem:[%s1034_s1 + $0x308] sm:$0xff]  ;;  %v74_v13 = vld [vmem:[%s1034_s1 + $0x1b0] sm:$0xff] }
   0xd   :  { %v64_v17 = vld [vmem:[%s1034_s1 + $0x160] sm:$0xff]  ;;  %244 = vmatpush.msra.mxu3 %v148_v14  ;;  %v65_v32 = vld [vmem:[%s1034_s1 + $0x168] sm:$0xff]  ;;  %v154_v14 = vld [vmem:[%s1034_s1 + $0x430] sm:$0xff] }
   0xe   :  { %v128_v18 = vld [vmem:[%s1034_s1 + $0x360] sm:$0xff]  ;;  %187 = vmatpush.msra.mxu0 %v64_v17  ;;  %281 = vmatpush.msra.mxu2 %v121_v27  ;;  %v113_v35 = vld [vmem:[%s1034_s1 + $0x2e8] sm:$0xff]  ;;  %v66_v23 = vld [vmem:[%s1034_s1 + $0x170] sm:$0xff] }
   0xf   :  { %v60_v21 = vld [vmem:[%s1034_s1 + $0x140] sm:$0xff]  ;;  %252 = vmatpush.msrb.mxu3 %v81_v16  ;;  %210 = vmatpush.msra.mxu1 %v128_v18  ;;  %v61_v36 = vld [vmem:[%s1034_s1 + $0x148] sm:$0xff]  ;;  %v70_v18 = vld [vmem:[%s1034_s1 + $0x190] sm:$0xff] }
  0x10   :  { %v124_v22 = vld [vmem:[%s1034_s1 + $0x340] sm:$0xff]  ;;  %188 = vmatpush.msra.mxu0 %v60_v21  ;;  %282 = vmatpush.msra.mxu2 %v117_v31  ;;  %v109_v39 = vld [vmem:[%s1034_s1 + $0x2c8] sm:$0xff]  ;;  %v146_v21 = vld [vmem:[%s1034_s1 + $0x3f0] sm:$0xff] }
  0x11   :  { %v56_v25 = vld [vmem:[%s1034_s1 + $0x120] sm:$0xff]  ;;  %253 = vmatpush.msrb.mxu3 %v77_v20  ;;  %211 = vmatpush.msra.mxu1 %v124_v22  ;;  %v57_v40 = vld [vmem:[%s1034_s1 + $0x128] sm:$0xff]  ;;  %v83_v20 = vld [vmem:[%s1034_s1 + $0x1f8] sm:$0xff] }
  0x12   :  { %v120_v26 = vld [vmem:[%s1034_s1 + $0x320] sm:$0xff]  ;;  %189 = vmatpush.msra.mxu0 %v56_v25  ;;  %283 = vmatpush.msra.mxu2 %v113_v35  ;;  %v105_v43 = vld [vmem:[%s1034_s1 + $0x2a8] sm:$0xff]  ;;  %v147_v22 = vld [vmem:[%s1034_s1 + $0x3f8] sm:$0xff] }
  0x13   :  { %v52_v29 = vld [vmem:[%s1034_s1 + $0x100] sm:$0xff]  ;;  %254 = vmatpush.msrb.mxu3 %v73_v24  ;;  %212 = vmatpush.msra.mxu1 %v120_v26  ;;  %v53_v44 = vld [vmem:[%s1034_s1 + $0x108] sm:$0xff]  ;;  %v791_v24 = vld [vmem:[%s1035_s0 + $0x18] sm:$0xff] }
  0x14   :  { %v116_v30 = vld [vmem:[%s1034_s1 + $0x300] sm:$0xff]  ;;  %190 = vmatpush.msra.mxu0 %v52_v29  ;;  %284 = vmatpush.msra.mxu2 %v109_v39  ;;  %v101_v48 = vld [vmem:[%s1034_s1 + $0x288] sm:$0xff]  ;;  %v142_v25 = vld [vmem:[%s1034_s1 + $0x3d0] sm:$0xff] }
  0x15   :  { %v48_v33 = vld [vmem:[%s1034_s1 + $0xe0] sm:$0xff]  ;;  %255 = vmatpush.msrb.mxu3 %v69_v28  ;;  %213 = vmatpush.msra.mxu1 %v116_v30  ;;  %v49_v49 = vld [vmem:[%s1034_s1 + $0xe8] sm:$0xff]  ;;  %v79_v26 = vld [vmem:[%s1034_s1 + $0x1d8] sm:$0xff] }
  0x16   :  { %v112_v34 = vld [vmem:[%s1034_s1 + $0x2e0] sm:$0xff]  ;;  %191 = vmatpush.msra.mxu0 %v48_v33  ;;  %285 = vmatpush.msra.mxu2 %v105_v43  ;;  %v97_v52 = vld [vmem:[%s1034_s1 + $0x268] sm:$0xff]  ;;  %v143_v27 = vld [vmem:[%s1034_s1 + $0x3d8] sm:$0xff] }
  0x17   :  { %v44_v37 = vld [vmem:[%s1034_s1 + $0xc0] sm:$0xff]  ;;  %256 = vmatpush.msrb.mxu3 %v65_v32  ;;  %214 = vmatpush.msra.mxu1 %v112_v34  ;;  %v45_v53 = vld [vmem:[%s1034_s1 + $0xc8] sm:$0xff]  ;;  %v62_v28 = vld [vmem:[%s1034_s1 + $0x150] sm:$0xff] }
  0x18   :  { %v108_v38 = vld [vmem:[%s1034_s1 + $0x2c0] sm:$0xff]  ;;  %192 = vmatpush.msra.mxu0 %v44_v37  ;;  %479 = vmatmul.msk.f32.vlgmr.msra.gmra.mxu3 %vm176_vm0, %v654_v47  ;;  %v93_v56 = vld [vmem:[%s1034_s1 + $0x248] sm:$0xff]  ;;  %v138_v29 = vld [vmem:[%s1034_s1 + $0x3b0] sm:$0xff] }
  0x19   :  { %v40_v41 = vld [vmem:[%s1034_s1 + $0xa0] sm:$0xff]  ;;  %257 = vmatpush.msrb.mxu3 %v61_v36  ;;  %215 = vmatpush.msra.mxu1 %v108_v38  ;;  %v41_v57 = vld [vmem:[%s1034_s1 + $0xa8] sm:$0xff]  ;;  %v75_v30 = vld [vmem:[%s1034_s1 + $0x1b8] sm:$0xff] }
  0x1a   :  { %v104_v42 = vld [vmem:[%s1034_s1 + $0x2a0] sm:$0xff]  ;;  %193 = vmatpush.msra.mxu0 %v40_v41  ;;  %286 = vmatpush.msra.mxu2 %v101_v48  ;;  %v89_v60 = vld [vmem:[%s1034_s1 + $0x228] sm:$0xff]  ;;  %v139_v31 = vld [vmem:[%s1034_s1 + $0x3b8] sm:$0xff] }
  0x1b   :  { %v36_v45 = vld [vmem:[%s1034_s1 + $0x80] sm:$0xff]  ;;  %258 = vmatpush.msrb.mxu3 %v57_v40  ;;  %216 = vmatpush.msra.mxu1 %v104_v42  ;;  %v37_v61 = vld [vmem:[%s1034_s1 + $0x88] sm:$0xff]  ;;  %v58_v32 = vld [vmem:[%s1034_s1 + $0x130] sm:$0xff] }
  0x1c   :  { %v100_v46 = vld [vmem:[%s1034_s1 + $0x280] sm:$0xff]  ;;  %194 = vmatpush.msra.mxu0 %v36_v45  ;;  %287 = vmatpush.msra.mxu2 %v97_v52  ;;  %v709_v0 = vld [vmem:[%s1035_s0 + $0x28] sm:$0xff]  ;;  %v134_v33 = vld [vmem:[%s1034_s1 + $0x390] sm:$0xff] }
  0x1d   :  { %259 = vmatpush.msrb.mxu3 %v53_v44  ;;  %v32_v50 = vld [vmem:[%s1034_s1 + $0x60] sm:$0xff]  ;;  %217 = vmatpush.msra.mxu1 %v100_v46  ;;  %v85_v1 = vld [vmem:[%s1034_s1 + $0x208] sm:$0xff]  ;;  %v71_v34 = vld [vmem:[%s1034_s1 + $0x198] sm:$0xff] }
  0x1e   :  { %v96_v51 = vld [vmem:[%s1034_s1 + $0x260] sm:$0xff]  ;;  %195 = vmatpush.msra.mxu0 %v32_v50  ;;  %288 = vmatpush.msra.mxu2 %v93_v56  ;;  %v33_v2 = vld [vmem:[%s1034_s1 + $0x68] sm:$0xff]  ;;  %v135_v35 = vld [vmem:[%s1034_s1 + $0x398] sm:$0xff] }
  0x1f   :  { %260 = vmatpush.msrb.mxu3 %v49_v49  ;;  %v28_v54 = vld [vmem:[%s1034_s1 + $0x40] sm:$0xff]  ;;  %218 = vmatpush.msra.mxu1 %v96_v51  ;;  %v161_v3 = vld [vmem:[%s1034_s1 + $0x468] sm:$0xff]  ;;  %v54_v37 = vld [vmem:[%s1034_s1 + $0x110] sm:$0xff]  ;;  %v489_v51 = vmov 0  }
  0x20   :  { %v92_v55 = vld [vmem:[%s1034_s1 + $0x240] sm:$0xff]  ;;  %196 = vmatpush.msra.mxu0 %v28_v54  ;;  %289 = vmatpush.msra.mxu2 %v89_v60  ;;  %v29_v7 = vld [vmem:[%s1034_s1 + $0x48] sm:$0xff]  ;;  %v67_v38 = vld [vmem:[%s1034_s1 + $0x178] sm:$0xff] }
  0x21   :  { %261 = vmatpush.msrb.mxu3 %v45_v53  ;;  %v24_v58 = vld [vmem:[%s1034_s1 + $0x20] sm:$0xff]  ;;  %219 = vmatpush.msra.mxu1 %v92_v55  ;;  %v157_v8 = vld [vmem:[%s1034_s1 + $0x448] sm:$0xff]  ;;  %v130_v39 = vld [vmem:[%s1034_s1 + $0x370] sm:$0xff] }
  0x22   :  { %v88_v59 = vld [vmem:[%s1034_s1 + $0x220] sm:$0xff]  ;;  %197 = vmatpush.msra.mxu0 %v24_v58  ;;  %480 = vmatmul.msk.f32.gmra.mxu3 %vm176_vm0, %v709_v0  ;;  %v25_v11 = vld [vmem:[%s1034_s1 + $0x28] sm:$0xff]  ;;  %v131_v40 = vld [vmem:[%s1034_s1 + $0x378] sm:$0xff] }
  0x23   :  { %262 = vmatpush.msrb.mxu3 %v41_v57  ;;  %v20_v62 = vld [vmem:[%s1034_s1] sm:$0xff]  ;;  %220 = vmatpush.msra.mxu1 %v88_v59  ;;  %v153_v12 = vld [vmem:[%s1034_s1 + $0x428] sm:$0xff]  ;;  %v50_v41 = vld [vmem:[%s1034_s1 + $0xf0] sm:$0xff] }
  0x24   :  { %v84_v63 = vld [vmem:[%s1034_s1 + $0x200] sm:$0xff]  ;;  %198 = vmatpush.msra.mxu0 %v20_v62  ;;  %290 = vmatpush.msra.mxu2 %v85_v1  ;;  %v21_v15 = vld [vmem:[%s1034_s1 + $0x8] sm:$0xff]  ;;  %v126_v42 = vld [vmem:[%s1034_s1 + $0x350] sm:$0xff] }
  0x25   :  { %263 = vmatpush.msrb.mxu3 %v37_v61  ;;  %221 = vmatpush.msra.mxu1 %v84_v63  ;;  %v731_v6 = vld [vmem:[%s1035_s0] sm:$0xff]  ;;  %v764_v16 = vld [vmem:[%s1035_s0 + $0x8] sm:$0xff]  ;;  %v63_v43 = vld [vmem:[%s1034_s1 + $0x158] sm:$0xff] }
  0x26   :  { %310 = vmatpush.msrb.mxu0 %v161_v3  ;;  %379 = vmatpush.msrb.mxu2 %v162_v5  ;;  %v149_v17 = vld [vmem:[%s1034_s1 + $0x408] sm:$0xff]  ;;  %v832_v36 = vld [vmem:[%s1035_s0 + $0x20] sm:$0xff]  ;;  %v127_v44 = vld [vmem:[%s1034_s1 + $0x358] sm:$0xff] }
  0x27   :  { %264 = vmatpush.msrb.mxu3 %v33_v2  ;;  %321 = vmatpush.msrb.mxu1 %v82_v4  ;;  %v46_v45 = vld [vmem:[%s1034_s1 + $0xd0] sm:$0xff]  ;;  %v59_v48 = vld [vmem:[%s1034_s1 + $0x138] sm:$0xff]  ;;  %v164_v50 = vld [vmem:[%s1036_s2] sm:$0xff] }
  0x28   :  { %199 = vmatmul.f32.vlgmr.msra.gmra.mxu0 %v731_v6  ;;  %380 = vmatpush.msrb.mxu2 %v158_v10  ;;  %v122_v46 = vld [vmem:[%s1034_s1 + $0x330] sm:$0xff]  ;;  %v123_v49 = vld [vmem:[%s1034_s1 + $0x338] sm:$0xff]  ;;  %v165_v5 = vld [vmem:[%s1036_s2 + $0x8] sm:$0xff] }
  0x29   :  { %265 = vmatpush.msrb.mxu3 %v29_v7  ;;  %311 = vmatpush.msrb.mxu0 %v157_v8  ;;  %v42_v52 = vld [vmem:[%s1034_s1 + $0xb0] sm:$0xff]  ;;  %v55_v54 = vld [vmem:[%s1034_s1 + $0x118] sm:$0xff] }
  0x2a   :  { %322 = vmatpush.msrb.mxu1 %v78_v9  ;;  %381 = vmatpush.msrb.mxu2 %v154_v14  ;;  %v118_v53 = vld [vmem:[%s1034_s1 + $0x310] sm:$0xff]  ;;  %v119_v55 = vld [vmem:[%s1034_s1 + $0x318] sm:$0xff] }
  0x2b   :  { %266 = vmatpush.msrb.mxu3 %v25_v11  ;;  %312 = vmatpush.msrb.mxu0 %v153_v12  ;;  %v38_v56 = vld [vmem:[%s1034_s1 + $0x90] sm:$0xff]  ;;  %v51_v58 = vld [vmem:[%s1034_s1 + $0xf8] sm:$0xff] }
  0x2c   :  { %323 = vmatpush.msrb.mxu1 %v74_v13  ;;  %291 = vmatmul.f32.vlgmr.msra.gmra.mxu2 %v764_v16  ;;  %v114_v57 = vld [vmem:[%s1034_s1 + $0x2f0] sm:$0xff]  ;;  %v115_v59 = vld [vmem:[%s1034_s1 + $0x2f8] sm:$0xff] }
  0x2d   :  { %267 = vmatpush.msrb.mxu3 %v21_v15  ;;  %313 = vmatpush.msrb.mxu0 %v149_v17  ;;  %v34_v60 = vld [vmem:[%s1034_s1 + $0x70] sm:$0xff]  ;;  %v47_v62 = vld [vmem:[%s1034_s1 + $0xd8] sm:$0xff] }
  0x2e   :  { %324 = vmatpush.msrb.mxu1 %v70_v18  ;;  %382 = vmatpush.msrb.mxu2 %v150_v19  ;;  %v110_v61 = vld [vmem:[%s1034_s1 + $0x2d0] sm:$0xff]  ;;  %v111_v63 = vld [vmem:[%s1034_s1 + $0x2d8] sm:$0xff] }
  0x2f   :  { %268 = vmatmul.f32.vlgmr.msrb.gmra.mxu3 %v731_v6  ;;  %390 = vmatpush.msra.mxu0 %v83_v20  ;;  %v30_v1 = vld [vmem:[%s1034_s1 + $0x50] sm:$0xff]  ;;  %v43_v3 = vld [vmem:[%s1034_s1 + $0xb8] sm:$0xff] }
  0x30   :  { %344 = vmatpush.msra.mxu3 %v146_v21  ;;  %413 = vmatpush.msra.mxu2 %v147_v22  ;;  %v106_v2 = vld [vmem:[%s1034_s1 + $0x2b0] sm:$0xff]  ;;  %v107_v4 = vld [vmem:[%s1034_s1 + $0x2b8] sm:$0xff] }
  0x31   :  { %325 = vmatpush.msrb.mxu1 %v66_v23  ;;  %202 = vmatmul.f32.gmra.mxu0 %v791_v24  ;;  %v26_v7 = vld [vmem:[%s1034_s1 + $0x30] sm:$0xff]  ;;  %v39_v9 = vld [vmem:[%s1034_s1 + $0x98] sm:$0xff] }
  0x32   :  { %345 = vmatpush.msra.mxu3 %v142_v25  ;;  %391 = vmatpush.msra.mxu0 %v79_v26  ;;  %v102_v8 = vld [vmem:[%s1034_s1 + $0x290] sm:$0xff]  ;;  %v103_v10 = vld [vmem:[%s1034_s1 + $0x298] sm:$0xff] }
  0x33   :  { %414 = vmatpush.msra.mxu2 %v143_v27  ;;  %326 = vmatpush.msrb.mxu1 %v62_v28  ;;  %v22_v11 = vld [vmem:[%s1034_s1 + $0x10] sm:$0xff]  ;;  %v35_v13 = vld [vmem:[%s1034_s1 + $0x78] sm:$0xff] }
  0x34   :  { %222 = vmatmul.f32.vlgmr.msra.gmra.mxu1 %v764_v16  ;;  %346 = vmatpush.msra.mxu3 %v138_v29  ;;  %v98_v12 = vld [vmem:[%s1034_s1 + $0x270] sm:$0xff]  ;;  %v99_v14 = vld [vmem:[%s1034_s1 + $0x278] sm:$0xff] }
  0x35   :  { %392 = vmatpush.msra.mxu0 %v75_v30  ;;  %415 = vmatpush.msra.mxu2 %v139_v31  ;;  %v163_v15 = vld [vmem:[%s1034_s1 + $0x478] sm:$0xff]  ;;  %v94_v17 = vld [vmem:[%s1034_s1 + $0x250] sm:$0xff] }
  0x36   :  { %327 = vmatpush.msrb.mxu1 %v58_v32  ;;  %347 = vmatpush.msra.mxu3 %v134_v33  ;;  %v31_v18 = vld [vmem:[%s1034_s1 + $0x58] sm:$0xff]  ;;  %v90_v21 = vld [vmem:[%s1034_s1 + $0x230] sm:$0xff] }
  0x37   :  { %393 = vmatpush.msra.mxu0 %v71_v34  ;;  %416 = vmatpush.msra.mxu2 %v135_v35  ;;  %v95_v19 = vld [vmem:[%s1034_s1 + $0x258] sm:$0xff]  ;;  %v86_v26 = vld [vmem:[%s1034_s1 + $0x210] sm:$0xff] }
  0x38   :  { %294 = vmatmul.f32.gmra.mxu2 %v832_v36  ;;  %328 = vmatpush.msrb.mxu1 %v54_v37  ;;  %v159_v20 = vld [vmem:[%s1034_s1 + $0x458] sm:$0xff] }
  0x39   :  { %271 = vmatmul.f32.gmra.mxu3 %v791_v24  ;;  %394 = vmatpush.msra.mxu0 %v67_v38  ;;  %v27_v22 = vld [vmem:[%s1034_s1 + $0x38] sm:$0xff] }
  0x3a   :  { %348 = vmatpush.msra.mxu3 %v130_v39  ;;  %417 = vmatpush.msra.mxu2 %v131_v40  ;;  %v91_v23 = vld [vmem:[%s1034_s1 + $0x238] sm:$0xff] }
  0x3b   :  { %329 = vmatpush.msrb.mxu1 %v50_v41  ;;  %481 = vmatmul.msk.f32.vlgmr.msrb.gmra.mxu0 %vm176_vm0, %v654_v47  ;;  %v155_v25 = vld [vmem:[%s1034_s1 + $0x438] sm:$0xff] }
  0x3c   :  { %349 = vmatpush.msra.mxu3 %v126_v42  ;;  %395 = vmatpush.msra.mxu0 %v63_v43  ;;  %v23_v27 = vld [vmem:[%s1034_s1 + $0x18] sm:$0xff] }
  0x3d   :  { %418 = vmatpush.msra.mxu2 %v127_v44  ;;  %330 = vmatpush.msrb.mxu1 %v46_v45  ;;  %v87_v28 = vld [vmem:[%s1034_s1 + $0x218] sm:$0xff] }
  0x3e   :  { %488 = vset.pattern.permute.xlu0 %v489_v51  ;;  %225 = vmatmul.f32.gmra.mxu1 %v832_v36  ;;  %v151_v29 = vld [vmem:[%s1034_s1 + $0x418] sm:$0xff] }
  0x3f   :  { %350 = vmatpush.msra.mxu3 %v122_v46  ;;  %396 = vmatpush.msra.mxu0 %v59_v48 }
  0x40   :  { %419 = vmatpush.msra.mxu2 %v123_v49  ;;  %168 = vperm.xlu0 %488, %v164_v50  }
  0x41   :  { %331 = vmatpush.msrb.mxu1 %v42_v52  ;;  %351 = vmatpush.msra.mxu3 %v118_v53 }
  0x42   :  { %397 = vmatpush.msra.mxu0 %v55_v54  ;;  %420 = vmatpush.msra.mxu2 %v119_v55 }
  0x43   :  { %332 = vmatpush.msrb.mxu1 %v38_v56  ;;  %483 = vmatmul.msk.f32.vlgmr.msrb.gmra.mxu2 %vm176_vm0, %v654_v47 }
  0x44   :  { %352 = vmatpush.msra.mxu3 %v114_v57  ;;  %398 = vmatpush.msra.mxu0 %v51_v58 }
  0x45   :  { %421 = vmatpush.msra.mxu2 %v115_v59  ;;  %333 = vmatpush.msrb.mxu1 %v34_v60 }
  0x46   :  { %482 = vmatmul.msk.f32.gmra.mxu0 %vm176_vm0, %v709_v0  ;;  %353 = vmatpush.msra.mxu3 %v110_v61 }
  0x47   :  { %399 = vmatpush.msra.mxu0 %v47_v62  ;;  %422 = vmatpush.msra.mxu2 %v111_v63 }
  0x48   :  { %334 = vmatpush.msrb.mxu1 %v30_v1  ;;  %354 = vmatpush.msra.mxu3 %v106_v2 }
  0x49   :  { %400 = vmatpush.msra.mxu0 %v43_v3  ;;  %423 = vmatpush.msra.mxu2 %v107_v4 }
  0x4a   :  { %173 = vperm.xlu0 %488, %v165_v5   ;;  %335 = vmatpush.msrb.mxu1 %v26_v7 }
  0x4b   :  { %355 = vmatpush.msra.mxu3 %v102_v8  ;;  %401 = vmatpush.msra.mxu0 %v39_v9 }
  0x4c   :  { %424 = vmatpush.msra.mxu2 %v103_v10  ;;  %336 = vmatpush.msrb.mxu1 %v22_v11 }
  0x4d   :  { %484 = vmatmul.msk.f32.gmra.mxu2 %vm176_vm0, %v709_v0  ;;  %337 = vmatmul.f32.vlgmr.msrb.gmra.mxu1 %v731_v6 }
  0x4e   :  { %356 = vmatpush.msra.mxu3 %v98_v12  ;;  %402 = vmatpush.msra.mxu0 %v35_v13 }
  0x4f   :  { %425 = vmatpush.msra.mxu2 %v99_v14  ;;  %448 = vmatpush.msra.mxu1 %v163_v15 }
  0x50   :  { %357 = vmatpush.msra.mxu3 %v94_v17  ;;  %403 = vmatpush.msra.mxu0 %v31_v18 }
  0x51   :  { %426 = vmatpush.msra.mxu2 %v95_v19  ;;  %449 = vmatpush.msra.mxu1 %v159_v20 }
  0x52   :  { %358 = vmatpush.msra.mxu3 %v90_v21  ;;  %404 = vmatpush.msra.mxu0 %v27_v22 }
  0x53   :  { %427 = vmatpush.msra.mxu2 %v91_v23  ;;  %450 = vmatpush.msra.mxu1 %v155_v25 }
  0x54   :  { %359 = vmatpush.msra.mxu3 %v86_v26  ;;  %405 = vmatpush.msra.mxu0 %v23_v27 }
  0x55   :  { %428 = vmatpush.msra.mxu2 %v87_v28  ;;  %360 = vmatmul.f32.vlgmr.msra.gmra.mxu3 %v764_v16 }
  0x56   :  { %406 = vmatmul.f32.vlgmr.msra.gmra.mxu0 %v731_v6  ;;  %429 = vmatmul.f32.vlgmr.msra.gmra.mxu2 %v764_v16 }
  0x57   :  { %340 = vmatmul.f32.gmra.mxu1 %v791_v24 }
  0x58   :  { %451 = vmatpush.msra.mxu1 %v151_v29 }
  0x5d   :  { %363 = vmatmul.f32.gmra.mxu3 %v832_v36 }
  0x5e   :  { %409 = vmatmul.f32.gmra.mxu0 %v791_v24  ;;  %432 = vmatmul.f32.gmra.mxu2 %v832_v36 }
  0x5f   :  { %485 = vmatmul.msk.f32.vlgmr.msra.gmra.mxu1 %vm176_vm0, %v654_v47 }
  0x67   :  { %486 = vmatmul.msk.f32.gmra.mxu1 %vm176_vm0, %v709_v0 }
  0x9b   :  { %v246_v30 = vpop.f32.mrf.mxu3 }
  0xa5   :  { %v200_v31 = vpop.f32.mrf.mxu0  ;;  %v249_v6 = vpop.f32.mrf.mxu3 }
  0xae   :  { %v203_v32 = vpop.f32.mrf.mxu0 }
  0xaf   :  { %v292_v33 = vpop.f32.mrf.mxu2 }
  0xb1   :  { %v223_v16 = vpop.f32.mrf.mxu1 }
  0xb2   :  { %v169_v34 = vpop.permute.xlu0 %168  ;;  %v269_v35 = vpop.f32.mrf.mxu3 }
  0xb3   :  { %v201_v37 = vadd.f32 %v200_v31, %v169_v34  ;;  %v270_v38 = vadd.f32 %v269_v35, %v169_v34 }
  0xb5   :  { %v224_v39 = vadd.f32 %v223_v16, %v201_v37  ;;  %v293_v24 = vadd.f32 %v292_v33, %v270_v38 }
  0xb7   :  { %v247_v40 = vadd.f32 %v246_v30, %v224_v39 }
  0xb8   :  { %v315_v36 = vpop.f32.mrf.mxu0 }
  0xb9   :  { %v459_v41 = vmax.f32 %v247_v40, 0.0  ;;  %v316_v42 = vadd.f32 %v315_v36, %v293_v24 }
  0xbb   :  { %467 = vst [vmem:[%s1037_s3] sm:$0xff] %v459_v41  ;;  %v460_v47 = vmax.f32 %v316_v42, 0.0  ;;  %v226_v0 = vpop.f32.mrf.mxu1  ;;  %v295_v43 = vpop.f32.mrf.mxu2 }
  0xbc   :  { %v174_v44 = vpop.permute.xlu0 %173  ;;  %v272_v45 = vpop.f32.mrf.mxu3 }
  0xbd   :  { %468 = vst [vmem:[%s1037_s3 + $0x8] sm:$0xff] %v460_v47  ;;  %v204_v46 = vadd.f32 %v203_v32, %v174_v44  ;;  %v273_v48 = vadd.f32 %v272_v45, %v174_v44 }
  0xbf   :  { %v227_v49 = vadd.f32 %v226_v0, %v204_v46  ;;  %v296_v50 = vadd.f32 %v295_v43, %v273_v48 }
  0xc1   :  { %v250_v51 = vadd.f32 %v249_v6, %v227_v49 }
  0xc3   :  { %v463_v52 = vmax.f32 %v250_v51, 0.0  ;;  %v318_v53 = vpop.f32.mrf.mxu0 }
  0xc4   :  { %v319_v54 = vadd.f32 %v318_v53, %v296_v50 }
  0xc5   :  { %471 = vst [vmem:[%s1037_s3 + $0x20] sm:$0xff] %v463_v52 }
  0xc6   :  { %v464_v55 = vmax.f32 %v319_v54, 0.0  ;;  %v384_v56 = vpop.f32.mrf.mxu2 }
  0xc8   :  { %472 = vst [vmem:[%s1037_s3 + $0x28] sm:$0xff] %v464_v55 }
  0xca   :  { %v338_v57 = vpop.f32.mrf.mxu1 }
  0xcb   :  { %v339_v62 = vadd.f32 %v338_v57, %v169_v34 }
  0xd0   :  { %v387_v58 = vpop.f32.mrf.mxu2 }
  0xd3   :  { %v407_v59 = vpop.f32.mrf.mxu0 }
  0xd4   :  { %v341_v60 = vpop.f32.mrf.mxu1  ;;  %v408_v61 = vadd.f32 %v407_v59, %v169_v34 }
  0xd5   :  { %v342_v10 = vadd.f32 %v341_v60, %v174_v44 }
  0xd8   :  { %v361_v63 = vpop.f32.mrf.mxu3 }
  0xd9   :  { %v362_v1 = vadd.f32 %v361_v63, %v339_v62  ;;  %v430_v2 = vpop.f32.mrf.mxu2 }
  0xda   :  { %v431_v3 = vadd.f32 %v430_v2, %v408_v61 }
  0xdb   :  { %v385_v4 = vadd.f32 %v384_v56, %v362_v1  ;;  %v410_v8 = vpop.f32.mrf.mxu0 }
  0xdc   :  { %v453_v5 = vpop.f32.mrf.mxu1  ;;  %v411_v12 = vadd.f32 %v410_v8, %v174_v44 }
  0xdd   :  { %v461_v7 = vmax.f32 %v385_v4, 0.0  ;;  %v454_v9 = vadd.f32 %v453_v5, %v431_v3 }
  0xdf   :  { %469 = vst [vmem:[%s1037_s3 + $0x10] sm:$0xff] %v461_v7  ;;  %v462_v11 = vmax.f32 %v454_v9, 0.0 }
  0xe0   :  { %v364_v13 = vpop.f32.mrf.mxu3 }
  0xe1   :  { %470 = vst [vmem:[%s1037_s3 + $0x18] sm:$0xff] %v462_v11  ;;  %v365_v14 = vadd.f32 %v364_v13, %v342_v10  ;;  %v433_v15 = vpop.f32.mrf.mxu2 }
  0xe2   :  { %v434_v17 = vadd.f32 %v433_v15, %v411_v12 }
  0xe3   :  { %v388_v18 = vadd.f32 %v387_v58, %v365_v14 }
  0xe4   :  { %v456_v19 = vpop.f32.mrf.mxu1 }
  0xe5   :  { %v465_v20 = vmax.f32 %v388_v18, 0.0  ;;  %v457_v21 = vadd.f32 %v456_v19, %v434_v17 }
  0xe7   :  { %473 = vst [vmem:[%s1037_s3 + $0x30] sm:$0xff] %v465_v20  ;;  %v466_v22 = vmax.f32 %v457_v21, 0.0 }
  0xe9   :  { %474 = vst [vmem:[%s1037_s3 + $0x38] sm:$0xff] %v466_v22 }

// kernel: decoder_forward.5
= control target key start
LH: loop header
LB: loop body
LE: loop exit
PB: predicated region body
PF: predicated region fallthrough
CT: control target
= control target key end

     0   :  { %s784_s12 = smov 0   ;;  %s786_s13 = smov 0   ;;  %s1068_s0 = inlined_call_operand.vmem [shape: f32[2,144], index: 0, kind: input, shape index: {}]   ;;  %s1069_s1 = inlined_call_operand.vmem [shape: f32[144,2048], index: 1, kind: input, shape index: {}]   ;;  %s1070_s2 = inlined_call_operand.vmem [shape: f32[2,1], index: 2, kind: input, shape index: {}]   ;;  %s1071_s3 = inlined_call_operand.vmem [shape: f32[2,2048], index: 3, kind: output, shape index: {}]  }
   0x1   :  { %s788_s14 = smov 0  }
   0x2 LB: > { %s679_s15 = sadd.s32 4294967295, %s761_s14   ;;  %s801_s16 = sadd.s32 1, %s761_s14   ;;  %s761_s14 = sphi %s788_s14, %s1074_s14   ;;  %s757_s13 = sphi %s786_s13, %s1073_s13   ;;  %s753_s12 = sphi %s784_s12, %s1072_s12  }
   0x3   : > { %s38_s17 = ssub.s32 %s761_s14, %s801_s16  ;;  %s41_s18 = sadd.s32 1, %s757_s13 }
   0x4   : > { %p39_p0 = scmp.eq.s32.totalorder %s38_s17, 0  ;;  %p48_p1 = scmp.ne.s32.totalorder %s757_s13, %s753_s12 }
   0x5   : > { %p49_p2 = scmp.eq.s32.totalorder %s761_s14, 0  ;;  %p682_p4 = scmp.ge.s32.totalorder %s761_s14, 4 }
   0x6   : > { %s810_s19 = scalar_select %p39_p0, %s757_s13, %s41_s18  }
   0x7   : > { %p50_p3 = por %p49_p2, %p48_p1  ;;  %127 = sbr.rel (%p682_p4) target bundleno = 88 (0x58), region = 24 }
   0xc   : > { %130 = sbr.rel (!%p50_p3) target bundleno = 88 (0x58), region = 28  ;;  %s132_s20 = sand.u32 (%p50_p3), 1, %s757_s13  }
   0xd   : > { %s694_s21 = sshll.u32 (%p50_p3), %s761_s14, 5  ;;  %s695_s22 = smul.u32 (%p50_p3), 576, %s132_s20 }
   0xe   : > { %s818_s25 = scalar_lea.vmem (%p50_p3), %s1069_s1, %s694_s21 }
   0xf   : > { %v150_v0 = vld [vmem:[%s818_s25] sm:$0xff] (%p50_p3)  ;;  %v152_v1 = vld [vmem:[%s818_s25 + $0x8] sm:$0xff] (%p50_p3)  ;;  %v154_v2 = vld [vmem:[%s818_s25 + $0x10] sm:$0xff] (%p50_p3)  ;;  %s823_s26 = scalar_lea.vmem (%p50_p3), [#allocation2], %s695_s22 }
  0x10   : > { %151 = vst [vmem:[%s823_s26] sm:$0xff] (%p50_p3), %v150_v0  ;;  %v156_v3 = vld [vmem:[%s818_s25 + $0x18] sm:$0xff] (%p50_p3)  ;;  %v158_v4 = vld [vmem:[%s818_s25 + $0x80] sm:$0xff] (%p50_p3)  ;;  %v160_v5 = vld [vmem:[%s818_s25 + $0x88] sm:$0xff] (%p50_p3) }
  0x11   : > { %153 = vst [vmem:[%s823_s26 + $0x8] sm:$0xff] %v152_v1  ;;  %v162_v6 = vld [vmem:[%s818_s25 + $0x90] sm:$0xff]  ;;  %v164_v7 = vld [vmem:[%s818_s25 + $0x98] sm:$0xff]  ;;  %v166_v8 = vld [vmem:[%s818_s25 + $0x100] sm:$0xff] }
  0x12   : > { %155 = vst [vmem:[%s823_s26 + $0x10] sm:$0xff] %v154_v2  ;;  %v168_v9 = vld [vmem:[%s818_s25 + $0x108] sm:$0xff]  ;;  %v170_v10 = vld [vmem:[%s818_s25 + $0x110] sm:$0xff]  ;;  %v172_v11 = vld [vmem:[%s818_s25 + $0x118] sm:$0xff] }
  0x13   : > { %157 = vst [vmem:[%s823_s26 + $0x18] sm:$0xff] %v156_v3  ;;  %v174_v12 = vld [vmem:[%s818_s25 + $0x180] sm:$0xff]  ;;  %v176_v13 = vld [vmem:[%s818_s25 + $0x188] sm:$0xff]  ;;  %v178_v14 = vld [vmem:[%s818_s25 + $0x190] sm:$0xff] }
  0x14   : > { %159 = vst [vmem:[%s823_s26 + $0x20] sm:$0xff] %v158_v4  ;;  %v180_v15 = vld [vmem:[%s818_s25 + $0x198] sm:$0xff]  ;;  %v182_v16 = vld [vmem:[%s818_s25 + $0x200] sm:$0xff]  ;;  %v184_v17 = vld [vmem:[%s818_s25 + $0x208] sm:$0xff] }
  0x15   : > { %161 = vst [vmem:[%s823_s26 + $0x28] sm:$0xff] %v160_v5  ;;  %v186_v18 = vld [vmem:[%s818_s25 + $0x210] sm:$0xff]  ;;  %v188_v19 = vld [vmem:[%s818_s25 + $0x218] sm:$0xff]  ;;  %v190_v20 = vld [vmem:[%s818_s25 + $0x280] sm:$0xff] }
  0x16   : > { %163 = vst [vmem:[%s823_s26 + $0x30] sm:$0xff] %v162_v6  ;;  %v192_v21 = vld [vmem:[%s818_s25 + $0x288] sm:$0xff]  ;;  %v194_v22 = vld [vmem:[%s818_s25 + $0x290] sm:$0xff]  ;;  %v196_v23 = vld [vmem:[%s818_s25 + $0x298] sm:$0xff] }
  0x17   : > { %165 = vst [vmem:[%s823_s26 + $0x38] sm:$0xff] %v164_v7  ;;  %v198_v24 = vld [vmem:[%s818_s25 + $0x300] sm:$0xff]  ;;  %v200_v25 = vld [vmem:[%s818_s25 + $0x308] sm:$0xff]  ;;  %v202_v26 = vld [vmem:[%s818_s25 + $0x310] sm:$0xff] }
  0x18   : > { %167 = vst [vmem:[%s823_s26 + $0x40] sm:$0xff] %v166_v8  ;;  %v204_v27 = vld [vmem:[%s818_s25 + $0x318] sm:$0xff]  ;;  %v206_v28 = vld [vmem:[%s818_s25 + $0x380] sm:$0xff]  ;;  %v208_v29 = vld [vmem:[%s818_s25 + $0x388] sm:$0xff] }
  0x19   : > { %169 = vst [vmem:[%s823_s26 + $0x48] sm:$0xff] %v168_v9  ;;  %v210_v30 = vld [vmem:[%s818_s25 + $0x390] sm:$0xff]  ;;  %v212_v31 = vld [vmem:[%s818_s25 + $0x398] sm:$0xff]  ;;  %v214_v32 = vld [vmem:[%s818_s25 + $0x400] sm:$0xff] }
  0x1a   : > { %171 = vst [vmem:[%s823_s26 + $0x50] sm:$0xff] %v170_v10  ;;  %v216_v33 = vld [vmem:[%s818_s25 + $0x408] sm:$0xff]  ;;  %v218_v34 = vld [vmem:[%s818_s25 + $0x410] sm:$0xff]  ;;  %v220_v35 = vld [vmem:[%s818_s25 + $0x418] sm:$0xff] }
  0x1b   : > { %173 = vst [vmem:[%s823_s26 + $0x58] sm:$0xff] %v172_v11  ;;  %v222_v36 = vld [vmem:[%s818_s25 + $0x480] sm:$0xff]  ;;  %v224_v37 = vld [vmem:[%s818_s25 + $0x488] sm:$0xff]  ;;  %v226_v38 = vld [vmem:[%s818_s25 + $0x490] sm:$0xff] }
  0x1c   : > { %175 = vst [vmem:[%s823_s26 + $0x60] sm:$0xff] %v174_v12  ;;  %v228_v39 = vld [vmem:[%s818_s25 + $0x498] sm:$0xff]  ;;  %v230_v40 = vld [vmem:[%s818_s25 + $0x500] sm:$0xff]  ;;  %v232_v41 = vld [vmem:[%s818_s25 + $0x508] sm:$0xff] }
  0x1d   : > { %177 = vst [vmem:[%s823_s26 + $0x68] sm:$0xff] %v176_v13  ;;  %v234_v42 = vld [vmem:[%s818_s25 + $0x510] sm:$0xff]  ;;  %v236_v43 = vld [vmem:[%s818_s25 + $0x518] sm:$0xff]  ;;  %v238_v44 = vld [vmem:[%s818_s25 + $0x580] sm:$0xff] }
  0x1e   : > { %179 = vst [vmem:[%s823_s26 + $0x70] sm:$0xff] %v178_v14  ;;  %v240_v45 = vld [vmem:[%s818_s25 + $0x588] sm:$0xff]  ;;  %v242_v46 = vld [vmem:[%s818_s25 + $0x590] sm:$0xff]  ;;  %v244_v47 = vld [vmem:[%s818_s25 + $0x598] sm:$0xff] }
  0x1f   : > { %181 = vst [vmem:[%s823_s26 + $0x78] sm:$0xff] %v180_v15  ;;  %v246_v48 = vld [vmem:[%s818_s25 + $0x600] sm:$0xff]  ;;  %v248_v49 = vld [vmem:[%s818_s25 + $0x608] sm:$0xff]  ;;  %v250_v50 = vld [vmem:[%s818_s25 + $0x610] sm:$0xff] }
  0x20   : > { %183 = vst [vmem:[%s823_s26 + $0x80] sm:$0xff] %v182_v16  ;;  %v252_v51 = vld [vmem:[%s818_s25 + $0x618] sm:$0xff]  ;;  %v254_v52 = vld [vmem:[%s818_s25 + $0x680] sm:$0xff]  ;;  %v256_v53 = vld [vmem:[%s818_s25 + $0x688] sm:$0xff] }
  0x21   : > { %185 = vst [vmem:[%s823_s26 + $0x88] sm:$0xff] %v184_v17  ;;  %v258_v54 = vld [vmem:[%s818_s25 + $0x690] sm:$0xff]  ;;  %v260_v55 = vld [vmem:[%s818_s25 + $0x698] sm:$0xff]  ;;  %v262_v56 = vld [vmem:[%s818_s25 + $0x700] sm:$0xff] }
  0x22   : > { %187 = vst [vmem:[%s823_s26 + $0x90] sm:$0xff] %v186_v18  ;;  %v264_v57 = vld [vmem:[%s818_s25 + $0x708] sm:$0xff]  ;;  %v266_v58 = vld [vmem:[%s818_s25 + $0x710] sm:$0xff]  ;;  %v268_v59 = vld [vmem:[%s818_s25 + $0x718] sm:$0xff] }
  0x23   : > { %189 = vst [vmem:[%s823_s26 + $0x98] sm:$0xff] %v188_v19  ;;  %v270_v60 = vld [vmem:[%s818_s25 + $0x780] sm:$0xff]  ;;  %v272_v61 = vld [vmem:[%s818_s25 + $0x788] sm:$0xff]  ;;  %v274_v62 = vld [vmem:[%s818_s25 + $0x790] sm:$0xff] }
  0x24   : > { %191 = vst [vmem:[%s823_s26 + $0xa0] sm:$0xff] %v190_v20  ;;  %v276_v63 = vld [vmem:[%s818_s25 + $0x798] sm:$0xff]  ;;  %v278_v0 = vld [vmem:[%s818_s25 + $0x800] sm:$0xff]  ;;  %v280_v1 = vld [vmem:[%s818_s25 + $0x808] sm:$0xff] }
  0x25   : > { %193 = vst [vmem:[%s823_s26 + $0xa8] sm:$0xff] %v192_v21  ;;  %v282_v2 = vld [vmem:[%s818_s25 + $0x810] sm:$0xff]  ;;  %v284_v3 = vld [vmem:[%s818_s25 + $0x818] sm:$0xff]  ;;  %v286_v4 = vld [vmem:[%s818_s25 + $0x880] sm:$0xff] }
  0x26   : > { %195 = vst [vmem:[%s823_s26 + $0xb0] sm:$0xff] %v194_v22  ;;  %v288_v5 = vld [vmem:[%s818_s25 + $0x888] sm:$0xff]  ;;  %v290_v6 = vld [vmem:[%s818_s25 + $0x890] sm:$0xff]  ;;  %v292_v7 = vld [vmem:[%s818_s25 + $0x898] sm:$0xff] }
  0x27   : > { %197 = vst [vmem:[%s823_s26 + $0xb8] sm:$0xff] %v196_v23 }
  0x28   : > { %199 = vst [vmem:[%s823_s26 + $0xc0] sm:$0xff] %v198_v24 }
  0x29   : > { %201 = vst [vmem:[%s823_s26 + $0xc8] sm:$0xff] %v200_v25 }
  0x2a   : > { %203 = vst [vmem:[%s823_s26 + $0xd0] sm:$0xff] %v202_v26 }
  0x2b   : > { %205 = vst [vmem:[%s823_s26 + $0xd8] sm:$0xff] %v204_v27 }
  0x2c   : > { %207 = vst [vmem:[%s823_s26 + $0xe0] sm:$0xff] %v206_v28 }
  0x2d   : > { %209 = vst [vmem:[%s823_s26 + $0xe8] sm:$0xff] %v208_v29 }
  0x2e   : > { %211 = vst [vmem:[%s823_s26 + $0xf0] sm:$0xff] %v210_v30 }
  0x2f   : > { %213 = vst [vmem:[%s823_s26 + $0xf8] sm:$0xff] %v212_v31 }
  0x30   : > { %215 = vst [vmem:[%s823_s26 + $0x100] sm:$0xff] %v214_v32 }
  0x31   : > { %217 = vst [vmem:[%s823_s26 + $0x108] sm:$0xff] %v216_v33 }
  0x32   : > { %219 = vst [vmem:[%s823_s26 + $0x110] sm:$0xff] %v218_v34 }
  0x33   : > { %221 = vst [vmem:[%s823_s26 + $0x118] sm:$0xff] %v220_v35 }
  0x34   : > { %223 = vst [vmem:[%s823_s26 + $0x120] sm:$0xff] %v222_v36 }
  0x35   : > { %225 = vst [vmem:[%s823_s26 + $0x128] sm:$0xff] %v224_v37 }
  0x36   : > { %227 = vst [vmem:[%s823_s26 + $0x130] sm:$0xff] %v226_v38 }
  0x37   : > { %229 = vst [vmem:[%s823_s26 + $0x138] sm:$0xff] %v228_v39 }
  0x38   : > { %231 = vst [vmem:[%s823_s26 + $0x140] sm:$0xff] %v230_v40 }
  0x39   : > { %233 = vst [vmem:[%s823_s26 + $0x148] sm:$0xff] %v232_v41 }
  0x3a   : > { %235 = vst [vmem:[%s823_s26 + $0x150] sm:$0xff] %v234_v42 }
  0x3b   : > { %237 = vst [vmem:[%s823_s26 + $0x158] sm:$0xff] %v236_v43 }
  0x3c   : > { %239 = vst [vmem:[%s823_s26 + $0x160] sm:$0xff] %v238_v44 }
  0x3d   : > { %241 = vst [vmem:[%s823_s26 + $0x168] sm:$0xff] %v240_v45 }
  0x3e   : > { %243 = vst [vmem:[%s823_s26 + $0x170] sm:$0xff] %v242_v46 }
  0x3f   : > { %245 = vst [vmem:[%s823_s26 + $0x178] sm:$0xff] %v244_v47 }
  0x40   : > { %247 = vst [vmem:[%s823_s26 + $0x180] sm:$0xff] %v246_v48 }
  0x41   : > { %249 = vst [vmem:[%s823_s26 + $0x188] sm:$0xff] %v248_v49 }
  0x42   : > { %251 = vst [vmem:[%s823_s26 + $0x190] sm:$0xff] %v250_v50 }
  0x43   : > { %253 = vst [vmem:[%s823_s26 + $0x198] sm:$0xff] %v252_v51 }
  0x44   : > { %255 = vst [vmem:[%s823_s26 + $0x1a0] sm:$0xff] %v254_v52 }
  0x45   : > { %257 = vst [vmem:[%s823_s26 + $0x1a8] sm:$0xff] %v256_v53 }
  0x46   : > { %259 = vst [vmem:[%s823_s26 + $0x1b0] sm:$0xff] %v258_v54 }
  0x47   : > { %261 = vst [vmem:[%s823_s26 + $0x1b8] sm:$0xff] %v260_v55 }
  0x48   : > { %263 = vst [vmem:[%s823_s26 + $0x1c0] sm:$0xff] %v262_v56 }
  0x49   : > { %265 = vst [vmem:[%s823_s26 + $0x1c8] sm:$0xff] %v264_v57 }
  0x4a   : > { %267 = vst [vmem:[%s823_s26 + $0x1d0] sm:$0xff] %v266_v58 }
  0x4b   : > { %269 = vst [vmem:[%s823_s26 + $0x1d8] sm:$0xff] %v268_v59 }
  0x4c   : > { %271 = vst [vmem:[%s823_s26 + $0x1e0] sm:$0xff] %v270_v60 }
  0x4d   : > { %273 = vst [vmem:[%s823_s26 + $0x1e8] sm:$0xff] %v272_v61 }
  0x4e   : > { %275 = vst [vmem:[%s823_s26 + $0x1f0] sm:$0xff] %v274_v62 }
  0x4f   : > { %277 = vst [vmem:[%s823_s26 + $0x1f8] sm:$0xff] %v276_v63 }
  0x50   : > { %279 = vst [vmem:[%s823_s26 + $0x200] sm:$0xff] %v278_v0 }
  0x51   : > { %281 = vst [vmem:[%s823_s26 + $0x208] sm:$0xff] %v280_v1 }
  0x52   : > { %283 = vst [vmem:[%s823_s26 + $0x210] sm:$0xff] %v282_v2 }
  0x53   : > { %285 = vst [vmem:[%s823_s26 + $0x218] sm:$0xff] %v284_v3 }
  0x54   : > { %287 = vst [vmem:[%s823_s26 + $0x220] sm:$0xff] %v286_v4 }
  0x55   : > { %289 = vst [vmem:[%s823_s26 + $0x228] sm:$0xff] %v288_v5 }
  0x56   : > { %291 = vst [vmem:[%s823_s26 + $0x230] sm:$0xff] %v290_v6 }
  0x57   : > { %293 = vst [vmem:[%s823_s26 + $0x238] sm:$0xff] %v292_v7 }
  0x58 PF: > { %p685_p5 = scmp.ge.s32.totalorder %s761_s14, 1  ;;  %p298_p6 = scmp.lt.s32.totalorder %s761_s14, 5 }
  0x5a   : > { %p299_p7 = pnand %p685_p5, %p298_p6 }
  0x5b   : > { %s305_s27 = sand.u32 (!%p299_p7), 1, %s753_s12   ;;  %s686_s7 = sshll.u32 (!%p299_p7), %s679_s15, 2 }
  0x5c   : > { %302 = sbr.rel (%p299_p7) target bundleno = 298 (0x12a), region = 51  ;;  %p330_p8 = scmp.lt.s32.totalorder (!%p299_p7), %s686_s7, 15 }
  0x5d   : > { %s696_s30 = smul.u32 (!%p299_p7), 576, %s305_s27 }
  0x5f   : > { %s972_s4 = scalar_lea.vmem (!%p299_p7), [#allocation2], %s696_s30 }
  0x61   : > { %v335_v8 = vld [vmem:[%s1068_s0] sm:$0xf]  ;;  %v404_v9 = vld [vmem:[%s972_s4 + $0x220] sm:$0xff]  ;;  %v397_v10 = vld [vmem:[%s972_s4 + $0x1e8] sm:$0xff]  ;;  %vm419_vm0 = vcmask 130048   ;;  %s1076_s7 = smov (!%p330_p8, %s686_s7), 15 }
  0x62   : > { %415 = vst [vmem:[#allocation1] ss:$4 sm:$0xff] %v335_v8  ;;  %v406_v11 = vld [vmem:[%s972_s4 + $0x230] sm:$0xff]  ;;  %456 = vmatpush.msra.mxu1 %v404_v9  ;;  %462 = vmatpush.msra.mxu2 %v397_v10  ;;  %v396_v12 = vld [vmem:[%s972_s4 + $0x1e0] sm:$0xff]  ;;  %v393_v14 = vld [vmem:[%s972_s4 + $0x1c8] sm:$0xff]  ;;  %s687_s8 = sshll.u32 %s1076_s7, 1 }
  0x63   : > { %v400_v13 = vld [vmem:[%s972_s4 + $0x200] sm:$0xff]  ;;  %536 = vmatpush.msra.mxu3 %v406_v11  ;;  %422 = vmatpush.msra.mxu0 %v396_v12  ;;  %v402_v15 = vld [vmem:[%s972_s4 + $0x210] sm:$0xff]  ;;  %v399_v17 = vld [vmem:[%s972_s4 + $0x1f8] sm:$0xff]  ;;  %vm611_vm1 = vcmask 1045508   ;;  %vm609_vm2 = vcmask 1041408   ;;  %vm613_vm3 = vcmask 1043456   ;;  %s333_s11 = scalar_lea.vmem %s1071_s3, %s687_s8 }
  0x64   : > { %v398_v16 = vld [vmem:[%s972_s4 + $0x1f0] sm:$0xff]  ;;  %457 = vmatpush.msra.mxu1 %v400_v13  ;;  %463 = vmatpush.msra.mxu2 %v393_v14  ;;  %v392_v18 = vld [vmem:[%s972_s4 + $0x1c0] sm:$0xff]  ;;  %v389_v19 = vld [vmem:[%s972_s4 + $0x1a8] sm:$0xff] }
  0x65   : > { %v394_v20 = vld [vmem:[%s972_s4 + $0x1d0] sm:$0xff]  ;;  %537 = vmatpush.msra.mxu3 %v402_v15  ;;  %v395_v21 = vld [vmem:[%s972_s4 + $0x1d8] sm:$0xff]  ;;  %v388_v22 = vld [vmem:[%s972_s4 + $0x1a0] sm:$0xff]  ;;  %423 = vmatpush.msra.mxu0 %v392_v18 }
  0x66   : > { %502 = vmatpush.msrb.mxu1 %v398_v16  ;;  %v385_v23 = vld [vmem:[%s972_s4 + $0x188] sm:$0xff]  ;;  %v390_v24 = vld [vmem:[%s972_s4 + $0x1b0] sm:$0xff]  ;;  %464 = vmatpush.msra.mxu2 %v389_v19  ;;  %v391_v25 = vld [vmem:[%s972_s4 + $0x1b8] sm:$0xff] }
  0x67   : > { %542 = vmatpush.msrb.mxu3 %v399_v17  ;;  %v384_v26 = vld [vmem:[%s972_s4 + $0x180] sm:$0xff]  ;;  %424 = vmatpush.msra.mxu0 %v388_v22  ;;  %v381_v27 = vld [vmem:[%s972_s4 + $0x168] sm:$0xff]  ;;  %v386_v28 = vld [vmem:[%s972_s4 + $0x190] sm:$0xff] }
  0x68   : > { %503 = vmatpush.msrb.mxu1 %v394_v20  ;;  %465 = vmatpush.msra.mxu2 %v385_v23  ;;  %v387_v29 = vld [vmem:[%s972_s4 + $0x198] sm:$0xff]  ;;  %v380_v30 = vld [vmem:[%s972_s4 + $0x160] sm:$0xff]  ;;  %v377_v31 = vld [vmem:[%s972_s4 + $0x148] sm:$0xff]  ;;  %v763_v20 = vmov 0  }
  0x69   : > { %543 = vmatpush.msrb.mxu3 %v395_v21  ;;  %425 = vmatpush.msra.mxu0 %v384_v26  ;;  %v382_v32 = vld [vmem:[%s972_s4 + $0x170] sm:$0xff]  ;;  %v383_v33 = vld [vmem:[%s972_s4 + $0x178] sm:$0xff]  ;;  %v376_v34 = vld [vmem:[%s972_s4 + $0x140] sm:$0xff] }
  0x6a   : > { %504 = vmatpush.msrb.mxu1 %v390_v24  ;;  %466 = vmatpush.msra.mxu2 %v381_v27  ;;  %v373_v35 = vld [vmem:[%s972_s4 + $0x128] sm:$0xff]  ;;  %v378_v36 = vld [vmem:[%s972_s4 + $0x150] sm:$0xff]  ;;  %v379_v37 = vld [vmem:[%s972_s4 + $0x158] sm:$0xff] }
  0x6b   : > { %544 = vmatpush.msrb.mxu3 %v391_v25  ;;  %426 = vmatpush.msra.mxu0 %v380_v30  ;;  %v372_v38 = vld [vmem:[%s972_s4 + $0x120] sm:$0xff]  ;;  %v369_v39 = vld [vmem:[%s972_s4 + $0x108] sm:$0xff]  ;;  %v374_v40 = vld [vmem:[%s972_s4 + $0x130] sm:$0xff] }
  0x6c   : > { %505 = vmatpush.msrb.mxu1 %v386_v28  ;;  %467 = vmatpush.msra.mxu2 %v377_v31  ;;  %v375_v41 = vld [vmem:[%s972_s4 + $0x138] sm:$0xff]  ;;  %v368_v42 = vld [vmem:[%s972_s4 + $0x100] sm:$0xff]  ;;  %v365_v43 = vld [vmem:[%s972_s4 + $0xe8] sm:$0xff] }
  0x6d   : > { %545 = vmatpush.msrb.mxu3 %v387_v29  ;;  %427 = vmatpush.msra.mxu0 %v376_v34  ;;  %v370_v44 = vld [vmem:[%s972_s4 + $0x110] sm:$0xff]  ;;  %v371_v45 = vld [vmem:[%s972_s4 + $0x118] sm:$0xff]  ;;  %v364_v46 = vld [vmem:[%s972_s4 + $0xe0] sm:$0xff] }
  0x6e   : > { %506 = vmatpush.msrb.mxu1 %v382_v32  ;;  %468 = vmatpush.msra.mxu2 %v373_v35  ;;  %v361_v47 = vld [vmem:[%s972_s4 + $0xc8] sm:$0xff]  ;;  %v366_v48 = vld [vmem:[%s972_s4 + $0xf0] sm:$0xff]  ;;  %v367_v49 = vld [vmem:[%s972_s4 + $0xf8] sm:$0xff] }
  0x6f   : > { %546 = vmatpush.msrb.mxu3 %v383_v33  ;;  %428 = vmatpush.msra.mxu0 %v372_v38  ;;  %v360_v50 = vld [vmem:[%s972_s4 + $0xc0] sm:$0xff]  ;;  %v357_v51 = vld [vmem:[%s972_s4 + $0xa8] sm:$0xff]  ;;  %v362_v52 = vld [vmem:[%s972_s4 + $0xd0] sm:$0xff] }
  0x70   : > { %507 = vmatpush.msrb.mxu1 %v378_v36  ;;  %469 = vmatpush.msra.mxu2 %v369_v39  ;;  %v363_v53 = vld [vmem:[%s972_s4 + $0xd8] sm:$0xff]  ;;  %v356_v54 = vld [vmem:[%s972_s4 + $0xa0] sm:$0xff]  ;;  %v353_v55 = vld [vmem:[%s972_s4 + $0x88] sm:$0xff] }
  0x71   : > { %547 = vmatpush.msrb.mxu3 %v379_v37  ;;  %429 = vmatpush.msra.mxu0 %v368_v42  ;;  %v358_v56 = vld [vmem:[%s972_s4 + $0xb0] sm:$0xff]  ;;  %v359_v57 = vld [vmem:[%s972_s4 + $0xb8] sm:$0xff]  ;;  %v352_v58 = vld [vmem:[%s972_s4 + $0x80] sm:$0xff] }
  0x72   : > { %508 = vmatpush.msrb.mxu1 %v374_v40  ;;  %470 = vmatpush.msra.mxu2 %v365_v43  ;;  %v349_v59 = vld [vmem:[%s972_s4 + $0x68] sm:$0xff]  ;;  %v354_v60 = vld [vmem:[%s972_s4 + $0x90] sm:$0xff]  ;;  %v355_v61 = vld [vmem:[%s972_s4 + $0x98] sm:$0xff] }
  0x73   : > { %548 = vmatpush.msrb.mxu3 %v375_v41  ;;  %430 = vmatpush.msra.mxu0 %v364_v46  ;;  %v348_v62 = vld [vmem:[%s972_s4 + $0x60] sm:$0xff]  ;;  %v345_v0 = vld [vmem:[%s972_s4 + $0x48] sm:$0xff]  ;;  %v350_v1 = vld [vmem:[%s972_s4 + $0x70] sm:$0xff] }
  0x74   : > { %509 = vmatpush.msrb.mxu1 %v370_v44  ;;  %471 = vmatpush.msra.mxu2 %v361_v47  ;;  %v417_v63 = vld.sshfl [vmem:[#allocation1 + $0x8] sm:$0xff pattern:$0x73625140]  ;;  %v351_v2 = vld [vmem:[%s972_s4 + $0x78] sm:$0xff]  ;;  %v341_v4 = vld [vmem:[%s972_s4 + $0x28] sm:$0xff] }
  0x75   : > { %549 = vmatpush.msrb.mxu3 %v371_v45  ;;  %431 = vmatpush.msra.mxu0 %v360_v50  ;;  %v344_v3 = vld [vmem:[%s972_s4 + $0x40] sm:$0xff]  ;;  %v346_v5 = vld [vmem:[%s972_s4 + $0x50] sm:$0xff]  ;;  %v347_v6 = vld [vmem:[%s972_s4 + $0x58] sm:$0xff] }
  0x76   : > { %510 = vmatpush.msrb.mxu1 %v366_v48  ;;  %472 = vmatpush.msra.mxu2 %v357_v51  ;;  %v340_v7 = vld [vmem:[%s972_s4 + $0x20] sm:$0xff]  ;;  %v337_v8 = vld [vmem:[%s972_s4 + $0x8] sm:$0xff]  ;;  %v342_v9 = vld [vmem:[%s972_s4 + $0x30] sm:$0xff] }
  0x77   : > { %550 = vmatpush.msrb.mxu3 %v367_v49  ;;  %432 = vmatpush.msra.mxu0 %v356_v54  ;;  %v416_v10 = vld.sshfl [vmem:[#allocation1] sm:$0xff pattern:$0x73625140]  ;;  %v405_v12 = vld [vmem:[%s972_s4 + $0x228] sm:$0xff]  ;;  %v336_v13 = vld [vmem:[%s972_s4] sm:$0xff] }
  0x78   : > { %511 = vmatpush.msrb.mxu1 %v362_v52  ;;  %473 = vmatpush.msra.mxu2 %v353_v55  ;;  %v343_v11 = vld [vmem:[%s972_s4 + $0x38] sm:$0xff]  ;;  %v338_v14 = vld [vmem:[%s972_s4 + $0x10] sm:$0xff]  ;;  %v401_v16 = vld [vmem:[%s972_s4 + $0x208] sm:$0xff] }
  0x79   : > { %551 = vmatpush.msrb.mxu3 %v363_v53  ;;  %433 = vmatpush.msra.mxu0 %v352_v58  ;;  %v339_v15 = vld [vmem:[%s972_s4 + $0x18] sm:$0xff] }
  0x7a   : > { %512 = vmatpush.msrb.mxu1 %v358_v56  ;;  %474 = vmatpush.msra.mxu2 %v349_v59  ;;  %v407_v17 = vld [vmem:[%s972_s4 + $0x238] sm:$0xff] }
  0x7b   : > { %552 = vmatpush.msrb.mxu3 %v359_v57  ;;  %434 = vmatpush.msra.mxu0 %v348_v62  ;;  %v408_v18 = vld [vmem:[%s1070_s2] sm:$0x3] }
  0x7c   : > { %513 = vmatpush.msrb.mxu1 %v354_v60  ;;  %475 = vmatpush.msra.mxu2 %v345_v0  ;;  %v403_v19 = vld [vmem:[%s972_s4 + $0x218] sm:$0xff] }
  0x7d   : > { %553 = vmatpush.msrb.mxu3 %v355_v61  ;;  %688 = vmatmul.msk.f32.vlgmr.msra.gmra.mxu1 %vm419_vm0, %v417_v63 }
  0x7e   : > { %690 = vmatmul.msk.f32.vlgmr.msra.gmra.mxu3 %vm419_vm0, %v417_v63  ;;  %514 = vmatpush.msrb.mxu1 %v350_v1 }
  0x7f   : > { %554 = vmatpush.msrb.mxu3 %v351_v2  ;;  %435 = vmatpush.msra.mxu0 %v344_v3 }
  0x80   : > { %476 = vmatpush.msra.mxu2 %v341_v4  ;;  %515 = vmatpush.msrb.mxu1 %v346_v5 }
  0x81   : > { %555 = vmatpush.msrb.mxu3 %v347_v6  ;;  %436 = vmatpush.msra.mxu0 %v340_v7 }
  0x82   : > { %477 = vmatpush.msra.mxu2 %v337_v8  ;;  %516 = vmatpush.msrb.mxu1 %v342_v9 }
  0x83   : > { %478 = vmatmul.f32.vlgmr.msra.gmra.mxu2 %v416_v10  ;;  %556 = vmatpush.msrb.mxu3 %v343_v11 }
  0x84   : > { %496 = vmatpush.msrb.mxu2 %v405_v12  ;;  %437 = vmatpush.msra.mxu0 %v336_v13 }
  0x85   : > { %438 = vmatmul.f32.vlgmr.msra.gmra.mxu0 %v416_v10  ;;  %517 = vmatpush.msrb.mxu1 %v338_v14 }
  0x86   : > { %557 = vmatpush.msrb.mxu3 %v339_v15  ;;  %518 = vmatmul.f32.vlgmr.msrb.gmra.mxu1 %v416_v10 }
  0x87   : > { %558 = vmatmul.f32.vlgmr.msrb.gmra.mxu3 %v416_v10  ;;  %497 = vmatpush.msrb.mxu2 %v401_v16 }
  0x88   : > { %576 = vmatpush.msrb.mxu0 %v407_v17  ;;  %722 = vset.pattern.permute.xlu0 %v763_v20 }
  0x89   : > { %411 = vperm.xlu0 %722, %v408_v18  }
  0x8a   : > { %577 = vmatpush.msrb.mxu0 %v403_v19 }
  0x8b   : > { %689 = vmatmul.msk.f32.vlgmr.msrb.gmra.mxu2 %vm419_vm0, %v417_v63 }
  0x8d   : > { %691 = vmatmul.msk.f32.vlgmr.msrb.gmra.mxu0 %vm419_vm0, %v417_v63 }
  0xfa   : > { %v459_v21 = vpop.f32.mrf.mxu1 }
  0xfb   : > { %v412_v23 = vpop.permute.xlu0 %411 }
 0x101   : > { %v539_v22 = vpop.f32.mrf.mxu3 }
 0x102   : > { %v439_v24 = vpop.f32.mrf.mxu0 }
 0x103   : > { %v519_v25 = vpop.f32.mrf.mxu1  ;;  %v440_v26 = vadd.f32 %v439_v24, %v412_v23 }
 0x104   : > { %v520_v27 = vadd.f32 %v519_v25, %v412_v23 }
 0x105   : > { %v460_v30 = vadd.f32 %v459_v21, %v440_v26 }
 0x106   : > { %v540_v28 = vadd.f32 %v539_v22, %v520_v27  ;;  %v479_v29 = vpop.f32.mrf.mxu2 }
 0x107   : > { %v582_v35 = vsub.f32 0.0, %v460_v30  ;;  %v480_v37 = vadd.f32 %v479_v29, %v412_v23 }
 0x108   : > { %v584_v31 = vsub.f32 0.0, %v540_v28 }
 0x109   : > { %v586_v42 = vmul.f32 1.442695, %v582_v35 }
 0x10a   : > { %v559_v32 = vpop.f32.mrf.mxu3  ;;  %v579_v33 = vpop.f32.mrf.mxu0  ;;  %v590_v36 = vmul.f32 1.442695, %v584_v31 }
 0x10b   : > { %v560_v34 = vadd.f32 %v559_v32, %v412_v23 }
 0x10c   : > { %723 = vpow2.f32 %v590_v36 }
 0x10d   : > { %v580_v38 = vadd.f32 %v579_v33, %v560_v34 }
 0x10e   : > { %v499_v39 = vpop.f32.mrf.mxu2 }
 0x10f   : > { %v585_v40 = vsub.f32 0.0, %v580_v38  ;;  %v500_v41 = vadd.f32 %v499_v39, %v480_v37 }
 0x111   : > { %v592_v43 = vmul.f32 1.442695, %v585_v40  ;;  %v583_v44 = vsub.f32 0.0, %v500_v41 }
 0x112   : > { %v724_v46 = vpop.eup %723 }
 0x113   : > { %725 = vpow2.f32 %v592_v43  ;;  %v588_v45 = vmul.f32 1.442695, %v583_v44  ;;  %v596_v48 = vadd.f32 1.0, %v724_v46 }
 0x114   : > { %727 = vpow2.f32 %v586_v42 }
 0x115   : > { %729 = vpow2.f32 %v588_v45 }
 0x119   : > { %v726_v47 = vpop.eup %725 }
 0x11a   : > { %v728_v49 = vpop.eup %727  ;;  %v597_v50 = vadd.f32 1.0, %v726_v47 }
 0x11b   : > { %v730_v51 = vpop.eup %729  ;;  %v594_v52 = vadd.f32 1.0, %v728_v49 }
 0x11c   : > { %731 = vrcp.f32 %v597_v50  ;;  %v595_v53 = vadd.f32 1.0, %v730_v51 }
 0x11d   : > { %733 = vrcp.f32 %v596_v48 }
 0x11e   : > { %735 = vrcp.f32 %v595_v53 }
 0x11f   : > { %737 = vrcp.f32 %v594_v52 }
 0x122   : > { %v732_v54 = vpop.eup %731 }
 0x123   : > { %v734_v55 = vpop.eup %733  ;;  %v608_v56 = vrot.slane %v732_v54, 2 }
 0x124   : > { %v736_v57 = vpop.eup %735  ;;  %v607_v58 = vrot.slane %v734_v55, 4 }
 0x125   : > { %v606_v59 = vrot.slane %v736_v57, 6  ;;  %v738_v60 = vpop.eup %737 }
 0x126   : > { %v612_v61 = vsel %vm611_vm1, %v607_v58, %v608_v56 }
 0x127   : > { %v610_v62 = vsel %vm609_vm2, %v738_v60, %v606_v59 }
 0x128   : > { %v614_v63 = vsel %vm613_vm3, %v610_v62, %v612_v61 }
 0x129   : > { %616 = vst [vmem:[%s333_s11] sm:$0xff] %v614_v63 }
 0x12a PF: > { %p10_p9 = scmp.ge.s32.totalorder %s801_s16, 6   ;;  %s1072_s12 = smov %s757_s13 }
 0x12b   : > { %s1073_s13 = smov %s810_s19  ;;  %s1074_s14 = smov %s801_s16 }
 0x12c   :  { %12 = sbr.rel (!%p10_p9) target bundleno = 2 (0x2), region = 90 }

</bundles_post_ra>
